<compile_context>
chip_gen: v7x
topology: tpu7x:2x2x1
jax: 0.10.0
libtpu: 0.0.40
codegen_flags: <defaults>
</compile_context>

<pallas_src>
import functools
import math

import jax
import jax.numpy as jnp
from jax.experimental import pallas as pl
from jax.experimental.pallas import tpu as pltpu


_C1 = 32      # conv1 output channels
_C2 = 64      # conv2 output channels
_FC1 = 128    # fc1 width
_NCLS = 10    # fc2 width (padded to 128 lanes inside the kernel)
_INV_SQRT2 = 1.0 / math.sqrt(2.0)


def _round_up(v, m):
    return (v + m - 1) // m * m


def _gelu(x):
    """Exact (erf) GELU, matching nn.GELU() default. Keep in f32."""
    return 0.5 * x * (1.0 + jax.lax.erf(x * jnp.float32(_INV_SQRT2)))


# ------------------------------ fused kernel ------------------------------- #

def _mnist_fused_kernel(x_ref, w1_ref, b1_ref, w2_ref, b2_ref,
                        wfc1_ref, bfc1_ref, wfc2_ref, bfc2_ref,
                        out_ref, *, img, bb):
    """B images per grid step: (P+2, B, P+2) block -> (B, 128) padded logits.

    Row order everywhere is (conv-output-row, image); because bb % 8 == 0 all
    the reshapes below only merge/split leading dims on whole sublane groups
    (layout no-ops), so the 2x2 pools are pure elementwise maxima.
    """
    f32 = jnp.float32
    bf16 = jnp.bfloat16

    P = img
    B = bb
    ow1 = P              # conv1 output spatial size (padding=1)
    pw1 = P // 2         # after pool1
    ow2 = pw1 - 2        # conv2 output spatial size (no padding)
    pw2 = ow2 // 2       # after pool2
    la1p = w1_ref.shape[2] // 2   # 128-aligned pooled-1 lane width (w*32+c)
    la2p = w2_ref.shape[2] // 2   # 128-aligned pooled-2 lane width (w*64+c)

    x = x_ref[0]                                           # (P+2, B, P+2) bf16

    # ---- conv1 (3x3, pad=1, 1->32): 3 Toeplitz matmuls, M = ow1*B rows.
    #      Even/odd output columns live in lanes [0:la1p) / [la1p:2*la1p).
    acc = jnp.zeros((ow1 * B, 2 * la1p), f32)
    for kh in range(3):
        xk = x[kh:kh + ow1].reshape(ow1 * B, P + 2)        # leading-dim merge
        acc = acc + jnp.dot(xk, w1_ref[kh], preferred_element_type=f32)
    b1 = b1_ref[...]                                       # (1, la1p) f32
    ge = _gelu(acc[:, :la1p] + b1)
    go = _gelu(acc[:, la1p:] + b1)
    m1 = jnp.maximum(ge, go)                               # W-pool, (ow1*B, la1p)
    m1r = m1.reshape(pw1, 2, B, la1p)                      # rows -> (h, pair, img)
    p1 = jnp.maximum(m1r[:, 0], m1r[:, 1]).astype(bf16)    # H-pool, (pw1, B, la1p)

    # ---- conv2 (3x3, valid, 32->64): same structure, M = ow2*B rows.
    acc = jnp.zeros((ow2 * B, 2 * la2p), f32)
    for kh in range(3):
        ak = p1[kh:kh + ow2].reshape(ow2 * B, la1p)
        acc = acc + jnp.dot(ak, w2_ref[kh], preferred_element_type=f32)
    b2 = b2_ref[...]                                       # (1, la2p) f32
    ge = _gelu(acc[:, :la2p] + b2)
    go = _gelu(acc[:, la2p:] + b2)
    m2 = jnp.maximum(ge, go).reshape(pw2, 2, B, la2p)
    p2 = jnp.maximum(m2[:, 0], m2[:, 1]).astype(bf16)      # (pw2, B, la2p)

    # ---- fc1 + GELU. The NCHW flatten is folded into wfc1's (h, w, c)-ordered
    #      row blocking; padded (w, c) lanes are exactly zero on both sides.
    h = jnp.zeros((B, _FC1), f32)
    for r in range(pw2):
        h = h + jnp.dot(p2[r], wfc1_ref[r], preferred_element_type=f32)
    h = _gelu(h + bfc1_ref[...]).astype(bf16)

    # ---- fc2, output padded to 128 lanes (cols >= 10 are zero).
    logits = jnp.dot(h, wfc2_ref[...], preferred_element_type=f32)
    out_ref[0] = logits + bfc2_ref[...]                    # (B, 128) f32


# --------------------- parameter-load-time weight prep --------------------- #

def _toeplitz_lanes(w, in_w, out_w):
    """w: (KH, KW, IC, OC) -> (KH, in_w*IC, out_w*OC) banded matmul weight.

    G[kh, col*IC + ic, ow*OC + oc] = w[kh, col - ow, ic, oc] if 0 <= col-ow < KW
    so that a row of the (H, W*C)-laid-out activation times G[kh] performs the
    kw/ic part of the convolution for every output column at once.
    """
    kh_, kw_, ic, oc = w.shape
    col = jnp.arange(in_w)[:, None]
    ow = jnp.arange(out_w)[None, :]
    k = col - ow
    valid = ((k >= 0) & (k < kw_)).astype(w.dtype)         # (in_w, out_w)
    g = w[:, jnp.clip(k, 0, kw_ - 1)]                      # (KH,in_w,out_w,IC,OC)
    g = g * valid[None, :, :, None, None]
    g = jnp.transpose(g, (0, 1, 3, 2, 4))                  # (KH,in_w,IC,out_w,OC)
    return g.reshape(kh_, in_w * ic, out_w * oc)


def prepare_params(raw, img_size):
    """Static weight expansion / even-odd merge / 128-lane padding / bf16."""
    P = img_size
    assert P % 4 == 0 and P >= 8
    pw1 = P // 2
    ow2 = pw1 - 2
    pw2 = ow2 // 2
    la1 = pw1 * _C1
    la2 = pw2 * _C2
    la1p = _round_up(la1, 128)
    la2p = _round_up(la2, 128)

    # conv1: Toeplitz over padded width; even/odd output cols merged along N.
    g1 = _toeplitz_lanes(raw["w1"], P + 2, P).reshape(3, P + 2, P, _C1)
    g1e = g1[:, :, 0::2, :].reshape(3, P + 2, la1)
    g1o = g1[:, :, 1::2, :].reshape(3, P + 2, la1)
    pad1 = [(0, 0), (0, 0), (0, la1p - la1)]
    w1m = jnp.concatenate([jnp.pad(g1e, pad1), jnp.pad(g1o, pad1)], axis=-1)

    # conv2: same; K rows padded la1 -> la1p with zeros (safe: padded p1 lanes
    # are zero anyway), N cols padded la2 -> la2p per even/odd half.
    h2 = _toeplitz_lanes(raw["w2"], pw1, ow2).reshape(3, la1, ow2, _C2)
    h2e = h2[:, :, 0::2, :].reshape(3, la1, la2)
    h2o = h2[:, :, 1::2, :].reshape(3, la1, la2)
    pad2 = [(0, 0), (0, la1p - la1), (0, la2p - la2)]
    w2m = jnp.concatenate([jnp.pad(h2e, pad2), jnp.pad(h2o, pad2)], axis=-1)

    # biases tiled across the fused (w, c) lane axis, zero in padded lanes.
    b1t = jnp.pad(jnp.tile(raw["b1"], pw1), (0, la1p - la1)).reshape(1, la1p)
    b2t = jnp.pad(jnp.tile(raw["b2"], pw2), (0, la2p - la2)).reshape(1, la2p)

    # fc1: rows in flattened (h, w, c) order (== torch fc1.weight
    # .reshape(128, 64, H, W).permute(2, 3, 1, 0).reshape(flat, 128)); blocked
    # by pooled row h, K padded to la2p with zero rows.
    wfc1b = jnp.pad(raw["wfc1"].reshape(pw2, la2, _FC1),
                    [(0, 0), (0, la2p - la2), (0, 0)])
    bfc1r = raw["bfc1"].reshape(1, _FC1)

    # fc2: pad 10 -> 128 output lanes with zero columns (lane-dense store).
    wfc2p = jnp.zeros((_FC1, 128), jnp.float32).at[:, :_NCLS].set(raw["wfc2"])
    bfc2p = jnp.zeros((1, 128), jnp.float32).at[0, :_NCLS].set(raw["bfc2"])

    return {
        "w1": w1m.astype(jnp.bfloat16), "b1": b1t.astype(jnp.float32),
        "w2": w2m.astype(jnp.bfloat16), "b2": b2t.astype(jnp.float32),
        "wfc1": wfc1b.astype(jnp.bfloat16), "bfc1": bfc1r.astype(jnp.float32),
        "wfc2": wfc2p.astype(jnp.bfloat16), "bfc2": bfc2p,
    }


# --------------------------------- forward --------------------------------- #

def mnist_clf_forward(x_nchw, kp, *, block_batch=32):
    """x_nchw: (N, 1, img, img) f32 -> (N, 10) f32 logits."""
    N, _, P, _ = x_nchw.shape
    pw2 = (P // 2 - 2) // 2
    la1p = kp["w1"].shape[-1] // 2
    la2p = kp["w2"].shape[-1] // 2

    # Images per grid step: multiple of 8 (keeps every in-kernel reshape a
    # layout no-op); batch zero-padded up to a multiple of B.
    B = _round_up(min(block_batch, max(N, 1)), 8)
    Np = _round_up(N, B)
    nb = Np // B

    xpad = jnp.pad(x_nchw[:, 0, :, :], ((0, Np - N), (1, 1), (1, 1)))
    # (nb, B, P+2, P+2) -> (nb, P+2, B, P+2): block rows ordered (row, image).
    xblk = jnp.transpose(xpad.reshape(nb, B, P + 2, P + 2), (0, 2, 1, 3))
    xblk = xblk.astype(jnp.bfloat16)           # bf16 MXU operand for conv1

    kernel = functools.partial(_mnist_fused_kernel, img=P, bb=B)
    c3 = lambda i: (0, 0, 0)
    c2 = lambda i: (0, 0)

    out = pl.pallas_call(
        kernel,
        out_shape=jax.ShapeDtypeStruct((nb, B, 128), jnp.float32),
        grid=(nb,),
        in_specs=[
            pl.BlockSpec((1, P + 2, B, P + 2), lambda i: (i, 0, 0, 0)),  # imgs
            pl.BlockSpec((3, P + 2, 2 * la1p), c3),                      # w1
            pl.BlockSpec((1, la1p), c2),                                 # b1
            pl.BlockSpec((3, la1p, 2 * la2p), c3),                       # w2
            pl.BlockSpec((1, la2p), c2),                                 # b2
            pl.BlockSpec((pw2, la2p, _FC1), c3),                         # wfc1
            pl.BlockSpec((1, _FC1), c2),                                 # bfc1
            pl.BlockSpec((_FC1, 128), c2),                               # wfc2
            pl.BlockSpec((1, 128), c2),                                  # bfc2
        ],
        out_specs=pl.BlockSpec((1, B, 128), lambda i: (i, 0, 0)),
        compiler_params=pltpu.CompilerParams(
            dimension_semantics=("parallel",)),
    )(xblk, kp["w1"], kp["b1"], kp["w2"], kp["b2"],
      kp["wfc1"], kp["bfc1"], kp["wfc2"], kp["bfc2"])

    return out.reshape(Np, 128)[:N, :_NCLS]


# ----------------------------- parameter init ------------------------------ #

def init_raw_params(key, img_size):
    flat = _C2 * (img_size // 4 - 1) ** 2
    ks = jax.random.split(key, 8)

    def uinit(k, shape, fan_in):
        bound = 1.0 / math.sqrt(fan_in)
        return jax.random.uniform(k, shape, jnp.float32, -bound, bound)

    return {
        # conv weights stored (KH, KW, IC, OC) == torch weight.permute(2,3,1,0)
        "w1": uinit(ks[0], (3, 3, 1, _C1), 9),
        "b1": uinit(ks[1], (_C1,), 9),
        "w2": uinit(ks[2], (3, 3, _C1, _C2), 9 * _C1),
        "b2": uinit(ks[3], (_C2,), 9 * _C1),
        # fc1 weight stored (in, out) with input rows in (H, W, C) order
        "wfc1": uinit(ks[4], (flat, _FC1), flat),
        "bfc1": uinit(ks[5], (_FC1,), flat),
        # fc2 weight stored (in, out) == torch fc2.weight.T
        "wfc2": uinit(ks[6], (_FC1, _NCLS), _FC1),
        "bfc2": uinit(ks[7], (_NCLS,), _FC1),
    }


# --------------------------- pure-JAX reference ----------------------------- #

def _maxpool2(y):
    n, c, hh, ww = y.shape
    return y.reshape(n, c, hh // 2, 2, ww // 2, 2).max(axis=(3, 5))


def _reference_forward(x_nchw, raw):
    """f32 reference matching the PyTorch module (same parameterization)."""
    dn = ("NCHW", "HWIO", "NCHW")
    y = jax.lax.conv_general_dilated(x_nchw, raw["w1"], (1, 1),
                                     ((1, 1), (1, 1)), dimension_numbers=dn)
    y = _maxpool2(_gelu(y + raw["b1"][None, :, None, None]))
    y = jax.lax.conv_general_dilated(y, raw["w2"], (1, 1), "VALID",
                                     dimension_numbers=dn)
    y = _maxpool2(_gelu(y + raw["b2"][None, :, None, None]))
    y = jnp.transpose(y, (0, 2, 3, 1)).reshape(y.shape[0], -1)  # (h, w, c) flat
    h = _gelu(y @ raw["wfc1"] + raw["bfc1"])
    return h @ raw["wfc2"] + raw["bfc2"]


# ---------------------------------- main ------------------------------------ #

if __name__ == "__main__":
    img_size = 16
    batch = 16
    block_batch = 8     # -> grid=(2,), keeps both v7x TensorCores busy

    key = jax.random.PRNGKey(0)
    kparams_key, kx = jax.random.split(key)
    raw = init_raw_params(kparams_key, img_size)
    kparams = prepare_params(raw, img_size)

    x = jax.random.normal(kx, (batch, 1, img_size, img_size), dtype=jnp.float32)

    fwd = jax.jit(functools.partial(mnist_clf_forward, block_batch=block_batch))
    out = jax.block_until_ready(fwd(x, kparams))

    assert out.shape == (batch, _NCLS) and out.dtype == jnp.float32
    assert bool(jnp.all(jnp.isfinite(out)))

    # bf16-MXU / f32-accumulate policy: check against the f32 reference with a
    # tolerance that absorbs the documented bf16 drift.
    ref = _reference_forward(x, raw)
    max_err = float(jnp.max(jnp.abs(out - ref)))
    assert max_err < 7.5e-2, f"max abs err vs f32 reference: {max_err}"

    print("KERNEL_OK")
</pallas_src>

<mosaic_0001>
module attributes {stable_mosaic.version = 11 : i64} {
  func.func @_mnist_fused_kernel(%arg0: i32, %arg1: memref<1x18x8x18xbf16, #tpu.memory_space<vmem>>, %arg2: memref<3x18x512xbf16, #tpu.memory_space<vmem>>, %arg3: memref<1x256xf32, #tpu.memory_space<vmem>>, %arg4: memref<3x256x512xbf16, #tpu.memory_space<vmem>>, %arg5: memref<1x256xf32, #tpu.memory_space<vmem>>, %arg6: memref<3x256x128xbf16, #tpu.memory_space<vmem>>, %arg7: memref<1x128xf32, #tpu.memory_space<vmem>>, %arg8: memref<128x128xbf16, #tpu.memory_space<vmem>>, %arg9: memref<1x128xf32, #tpu.memory_space<vmem>>, %arg10: memref<1x8x128xf32, #tpu.memory_space<vmem>>) attributes {dimension_semantics = [#tpu.dimension_semantics<parallel>], iteration_bounds = array<i64: 2>, scalar_prefetch = 0 : i64, scratch_operands = 0 : i64, tpu.core_type = #tpu.core_type<tc>, window_params = [{transform_indices = @transform_0, window_bounds = array<i64: 1, 18, 8, 18>}, {pipeline_mode = #tpu.pipeline_mode<synchronous>, transform_indices = @transform_1, window_bounds = array<i64: 3, 18, 512>}, {pipeline_mode = #tpu.pipeline_mode<synchronous>, transform_indices = @transform_2, window_bounds = array<i64: 1, 256>}, {pipeline_mode = #tpu.pipeline_mode<synchronous>, transform_indices = @transform_3, window_bounds = array<i64: 3, 256, 512>}, {pipeline_mode = #tpu.pipeline_mode<synchronous>, transform_indices = @transform_4, window_bounds = array<i64: 1, 256>}, {pipeline_mode = #tpu.pipeline_mode<synchronous>, transform_indices = @transform_5, window_bounds = array<i64: 3, 256, 128>}, {pipeline_mode = #tpu.pipeline_mode<synchronous>, transform_indices = @transform_6, window_bounds = array<i64: 1, 128>}, {pipeline_mode = #tpu.pipeline_mode<synchronous>, transform_indices = @transform_7, window_bounds = array<i64: 128, 128>}, {pipeline_mode = #tpu.pipeline_mode<synchronous>, transform_indices = @transform_8, window_bounds = array<i64: 1, 128>}, {transform_indices = @transform_9, window_bounds = array<i64: 1, 8, 128>}]} {
    %c0 = arith.constant 0 : index
    %c0_0 = arith.constant 0 : index
    %c0_1 = arith.constant 0 : index
    %c0_2 = arith.constant 0 : index
    %0 = vector.load %arg1[%c0, %c0_0, %c0_1, %c0_2] : memref<1x18x8x18xbf16, #tpu.memory_space<vmem>>, vector<1x18x8x18xbf16>
    %1 = vector.shape_cast %0 : vector<1x18x8x18xbf16> to vector<18x8x18xbf16>
    %cst = arith.constant 0.000000e+00 : f32
    %2 = vector.broadcast %cst : f32 to vector<128x512xf32>
    %3 = vector.extract_strided_slice %1 {offsets = [0, 0, 0], sizes = [16, 8, 18], strides = [1, 1, 1]} : vector<18x8x18xbf16> to vector<16x8x18xbf16>
    %4 = vector.shape_cast %3 : vector<16x8x18xbf16> to vector<128x18xbf16>
    %c0_3 = arith.constant 0 : index
    %c0_4 = arith.constant 0 : index
    %c0_5 = arith.constant 0 : index
    %5 = vector.load %arg2[%c0_3, %c0_4, %c0_5] : memref<3x18x512xbf16, #tpu.memory_space<vmem>>, vector<1x18x512xbf16>
    %6 = vector.shape_cast %5 : vector<1x18x512xbf16> to vector<18x512xbf16>
    %cst_6 = arith.constant dense<0.000000e+00> : vector<128x512xf32>
    %7 = tpu.matmul %4, %6, %cst_6 {dimension_numbers = #tpu.dot_dimension_numbers<[1], [0], [0], [1], [0, 0, 1, 1], [], []>} : vector<128x18xbf16>, vector<18x512xbf16>, vector<128x512xf32> -> vector<128x512xf32>
    %8 = arith.addf %2, %7 : vector<128x512xf32>
    %9 = vector.extract_strided_slice %1 {offsets = [1, 0, 0], sizes = [16, 8, 18], strides = [1, 1, 1]} : vector<18x8x18xbf16> to vector<16x8x18xbf16>
    %10 = vector.shape_cast %9 : vector<16x8x18xbf16> to vector<128x18xbf16>
    %c1 = arith.constant 1 : index
    %c0_7 = arith.constant 0 : index
    %c0_8 = arith.constant 0 : index
    %11 = vector.load %arg2[%c1, %c0_7, %c0_8] : memref<3x18x512xbf16, #tpu.memory_space<vmem>>, vector<1x18x512xbf16>
    %12 = vector.shape_cast %11 : vector<1x18x512xbf16> to vector<18x512xbf16>
    %cst_9 = arith.constant dense<0.000000e+00> : vector<128x512xf32>
    %13 = tpu.matmul %10, %12, %cst_9 {dimension_numbers = #tpu.dot_dimension_numbers<[1], [0], [0], [1], [0, 0, 1, 1], [], []>} : vector<128x18xbf16>, vector<18x512xbf16>, vector<128x512xf32> -> vector<128x512xf32>
    %14 = arith.addf %8, %13 : vector<128x512xf32>
    %15 = vector.extract_strided_slice %1 {offsets = [2, 0, 0], sizes = [16, 8, 18], strides = [1, 1, 1]} : vector<18x8x18xbf16> to vector<16x8x18xbf16>
    %16 = vector.shape_cast %15 : vector<16x8x18xbf16> to vector<128x18xbf16>
    %c2 = arith.constant 2 : index
    %c0_10 = arith.constant 0 : index
    %c0_11 = arith.constant 0 : index
    %17 = vector.load %arg2[%c2, %c0_10, %c0_11] : memref<3x18x512xbf16, #tpu.memory_space<vmem>>, vector<1x18x512xbf16>
    %18 = vector.shape_cast %17 : vector<1x18x512xbf16> to vector<18x512xbf16>
    %cst_12 = arith.constant dense<0.000000e+00> : vector<128x512xf32>
    %19 = tpu.matmul %16, %18, %cst_12 {dimension_numbers = #tpu.dot_dimension_numbers<[1], [0], [0], [1], [0, 0, 1, 1], [], []>} : vector<128x18xbf16>, vector<18x512xbf16>, vector<128x512xf32> -> vector<128x512xf32>
    %20 = arith.addf %14, %19 : vector<128x512xf32>
    %c0_13 = arith.constant 0 : index
    %c0_14 = arith.constant 0 : index
    %21 = vector.load %arg3[%c0_13, %c0_14] : memref<1x256xf32, #tpu.memory_space<vmem>>, vector<1x256xf32>
    %22 = vector.extract_strided_slice %20 {offsets = [0, 0], sizes = [128, 256], strides = [1, 1]} : vector<128x512xf32> to vector<128x256xf32>
    %23 = vector.broadcast %21 : vector<1x256xf32> to vector<128x256xf32>
    %24 = arith.addf %22, %23 : vector<128x256xf32>
    %cst_15 = arith.constant 5.000000e-01 : f32
    %25 = vector.broadcast %cst_15 : f32 to vector<128x256xf32>
    %26 = arith.mulf %25, %24 : vector<128x256xf32>
    %cst_16 = arith.constant 0.707106769 : f32
    %27 = vector.broadcast %cst_16 : f32 to vector<128x256xf32>
    %28 = arith.mulf %24, %27 : vector<128x256xf32>
    %29 = math.erf %28 : vector<128x256xf32>
    %cst_17 = arith.constant 1.000000e+00 : f32
    %30 = vector.broadcast %cst_17 : f32 to vector<128x256xf32>
    %31 = arith.addf %30, %29 : vector<128x256xf32>
    %32 = arith.mulf %26, %31 : vector<128x256xf32>
    %33 = vector.extract_strided_slice %20 {offsets = [0, 256], sizes = [128, 256], strides = [1, 1]} : vector<128x512xf32> to vector<128x256xf32>
    %34 = vector.broadcast %21 : vector<1x256xf32> to vector<128x256xf32>
    %35 = arith.addf %33, %34 : vector<128x256xf32>
    %cst_18 = arith.constant 5.000000e-01 : f32
    %36 = vector.broadcast %cst_18 : f32 to vector<128x256xf32>
    %37 = arith.mulf %36, %35 : vector<128x256xf32>
    %cst_19 = arith.constant 0.707106769 : f32
    %38 = vector.broadcast %cst_19 : f32 to vector<128x256xf32>
    %39 = arith.mulf %35, %38 : vector<128x256xf32>
    %40 = math.erf %39 : vector<128x256xf32>
    %cst_20 = arith.constant 1.000000e+00 : f32
    %41 = vector.broadcast %cst_20 : f32 to vector<128x256xf32>
    %42 = arith.addf %41, %40 : vector<128x256xf32>
    %43 = arith.mulf %37, %42 : vector<128x256xf32>
    %44 = arith.maximumf %32, %43 : vector<128x256xf32>
    %45 = vector.shape_cast %44 : vector<128x256xf32> to vector<8x2x8x256xf32>
    %46 = vector.extract_strided_slice %45 {offsets = [0, 0, 0, 0], sizes = [8, 1, 8, 256], strides = [1, 1, 1, 1]} : vector<8x2x8x256xf32> to vector<8x1x8x256xf32>
    %47 = vector.shape_cast %46 : vector<8x1x8x256xf32> to vector<8x8x256xf32>
    %48 = vector.extract_strided_slice %45 {offsets = [0, 1, 0, 0], sizes = [8, 1, 8, 256], strides = [1, 1, 1, 1]} : vector<8x2x8x256xf32> to vector<8x1x8x256xf32>
    %49 = vector.shape_cast %48 : vector<8x1x8x256xf32> to vector<8x8x256xf32>
    %50 = arith.maximumf %47, %49 : vector<8x8x256xf32>
    %51 = arith.truncf %50 : vector<8x8x256xf32> to vector<8x8x256xbf16>
    %cst_21 = arith.constant 0.000000e+00 : f32
    %52 = vector.broadcast %cst_21 : f32 to vector<48x512xf32>
    %53 = vector.extract_strided_slice %51 {offsets = [0, 0, 0], sizes = [6, 8, 256], strides = [1, 1, 1]} : vector<8x8x256xbf16> to vector<6x8x256xbf16>
    %54 = vector.shape_cast %53 : vector<6x8x256xbf16> to vector<48x256xbf16>
    %c0_22 = arith.constant 0 : index
    %c0_23 = arith.constant 0 : index
    %c0_24 = arith.constant 0 : index
    %55 = vector.load %arg4[%c0_22, %c0_23, %c0_24] : memref<3x256x512xbf16, #tpu.memory_space<vmem>>, vector<1x256x512xbf16>
    %56 = vector.shape_cast %55 : vector<1x256x512xbf16> to vector<256x512xbf16>
    %cst_25 = arith.constant dense<0.000000e+00> : vector<48x512xf32>
    %57 = tpu.matmul %54, %56, %cst_25 {dimension_numbers = #tpu.dot_dimension_numbers<[1], [0], [0], [1], [0, 0, 1, 1], [], []>} : vector<48x256xbf16>, vector<256x512xbf16>, vector<48x512xf32> -> vector<48x512xf32>
    %58 = arith.addf %52, %57 : vector<48x512xf32>
    %59 = vector.extract_strided_slice %51 {offsets = [1, 0, 0], sizes = [6, 8, 256], strides = [1, 1, 1]} : vector<8x8x256xbf16> to vector<6x8x256xbf16>
    %60 = vector.shape_cast %59 : vector<6x8x256xbf16> to vector<48x256xbf16>
    %c1_26 = arith.constant 1 : index
    %c0_27 = arith.constant 0 : index
    %c0_28 = arith.constant 0 : index
    %61 = vector.load %arg4[%c1_26, %c0_27, %c0_28] : memref<3x256x512xbf16, #tpu.memory_space<vmem>>, vector<1x256x512xbf16>
    %62 = vector.shape_cast %61 : vector<1x256x512xbf16> to vector<256x512xbf16>
    %cst_29 = arith.constant dense<0.000000e+00> : vector<48x512xf32>
    %63 = tpu.matmul %60, %62, %cst_29 {dimension_numbers = #tpu.dot_dimension_numbers<[1], [0], [0], [1], [0, 0, 1, 1], [], []>} : vector<48x256xbf16>, vector<256x512xbf16>, vector<48x512xf32> -> vector<48x512xf32>
    %64 = arith.addf %58, %63 : vector<48x512xf32>
    %65 = vector.extract_strided_slice %51 {offsets = [2, 0, 0], sizes = [6, 8, 256], strides = [1, 1, 1]} : vector<8x8x256xbf16> to vector<6x8x256xbf16>
    %66 = vector.shape_cast %65 : vector<6x8x256xbf16> to vector<48x256xbf16>
    %c2_30 = arith.constant 2 : index
    %c0_31 = arith.constant 0 : index
    %c0_32 = arith.constant 0 : index
    %67 = vector.load %arg4[%c2_30, %c0_31, %c0_32] : memref<3x256x512xbf16, #tpu.memory_space<vmem>>, vector<1x256x512xbf16>
    %68 = vector.shape_cast %67 : vector<1x256x512xbf16> to vector<256x512xbf16>
    %cst_33 = arith.constant dense<0.000000e+00> : vector<48x512xf32>
    %69 = tpu.matmul %66, %68, %cst_33 {dimension_numbers = #tpu.dot_dimension_numbers<[1], [0], [0], [1], [0, 0, 1, 1], [], []>} : vector<48x256xbf16>, vector<256x512xbf16>, vector<48x512xf32> -> vector<48x512xf32>
    %70 = arith.addf %64, %69 : vector<48x512xf32>
    %c0_34 = arith.constant 0 : index
    %c0_35 = arith.constant 0 : index
    %71 = vector.load %arg5[%c0_34, %c0_35] : memref<1x256xf32, #tpu.memory_space<vmem>>, vector<1x256xf32>
    %72 = vector.extract_strided_slice %70 {offsets = [0, 0], sizes = [48, 256], strides = [1, 1]} : vector<48x512xf32> to vector<48x256xf32>
    %73 = vector.broadcast %71 : vector<1x256xf32> to vector<48x256xf32>
    %74 = arith.addf %72, %73 : vector<48x256xf32>
    %cst_36 = arith.constant 5.000000e-01 : f32
    %75 = vector.broadcast %cst_36 : f32 to vector<48x256xf32>
    %76 = arith.mulf %75, %74 : vector<48x256xf32>
    %cst_37 = arith.constant 0.707106769 : f32
    %77 = vector.broadcast %cst_37 : f32 to vector<48x256xf32>
    %78 = arith.mulf %74, %77 : vector<48x256xf32>
    %79 = math.erf %78 : vector<48x256xf32>
    %cst_38 = arith.constant 1.000000e+00 : f32
    %80 = vector.broadcast %cst_38 : f32 to vector<48x256xf32>
    %81 = arith.addf %80, %79 : vector<48x256xf32>
    %82 = arith.mulf %76, %81 : vector<48x256xf32>
    %83 = vector.extract_strided_slice %70 {offsets = [0, 256], sizes = [48, 256], strides = [1, 1]} : vector<48x512xf32> to vector<48x256xf32>
    %84 = vector.broadcast %71 : vector<1x256xf32> to vector<48x256xf32>
    %85 = arith.addf %83, %84 : vector<48x256xf32>
    %cst_39 = arith.constant 5.000000e-01 : f32
    %86 = vector.broadcast %cst_39 : f32 to vector<48x256xf32>
    %87 = arith.mulf %86, %85 : vector<48x256xf32>
    %cst_40 = arith.constant 0.707106769 : f32
    %88 = vector.broadcast %cst_40 : f32 to vector<48x256xf32>
    %89 = arith.mulf %85, %88 : vector<48x256xf32>
    %90 = math.erf %89 : vector<48x256xf32>
    %cst_41 = arith.constant 1.000000e+00 : f32
    %91 = vector.broadcast %cst_41 : f32 to vector<48x256xf32>
    %92 = arith.addf %91, %90 : vector<48x256xf32>
    %93 = arith.mulf %87, %92 : vector<48x256xf32>
    %94 = arith.maximumf %82, %93 : vector<48x256xf32>
    %95 = vector.shape_cast %94 : vector<48x256xf32> to vector<3x2x8x256xf32>
    %96 = vector.extract_strided_slice %95 {offsets = [0, 0, 0, 0], sizes = [3, 1, 8, 256], strides = [1, 1, 1, 1]} : vector<3x2x8x256xf32> to vector<3x1x8x256xf32>
    %97 = vector.shape_cast %96 : vector<3x1x8x256xf32> to vector<3x8x256xf32>
    %98 = vector.extract_strided_slice %95 {offsets = [0, 1, 0, 0], sizes = [3, 1, 8, 256], strides = [1, 1, 1, 1]} : vector<3x2x8x256xf32> to vector<3x1x8x256xf32>
    %99 = vector.shape_cast %98 : vector<3x1x8x256xf32> to vector<3x8x256xf32>
    %100 = arith.maximumf %97, %99 : vector<3x8x256xf32>
    %101 = arith.truncf %100 : vector<3x8x256xf32> to vector<3x8x256xbf16>
    %cst_42 = arith.constant 0.000000e+00 : f32
    %102 = vector.broadcast %cst_42 : f32 to vector<8x128xf32>
    %103 = vector.extract_strided_slice %101 {offsets = [0, 0, 0], sizes = [1, 8, 256], strides = [1, 1, 1]} : vector<3x8x256xbf16> to vector<1x8x256xbf16>
    %104 = vector.shape_cast %103 : vector<1x8x256xbf16> to vector<8x256xbf16>
    %c0_43 = arith.constant 0 : index
    %c0_44 = arith.constant 0 : index
    %c0_45 = arith.constant 0 : index
    %105 = vector.load %arg6[%c0_43, %c0_44, %c0_45] : memref<3x256x128xbf16, #tpu.memory_space<vmem>>, vector<1x256x128xbf16>
    %106 = vector.shape_cast %105 : vector<1x256x128xbf16> to vector<256x128xbf16>
    %cst_46 = arith.constant dense<0.000000e+00> : vector<8x128xf32>
    %107 = tpu.matmul %104, %106, %cst_46 {dimension_numbers = #tpu.dot_dimension_numbers<[1], [0], [0], [1], [0, 0, 1, 1], [], []>} : vector<8x256xbf16>, vector<256x128xbf16>, vector<8x128xf32> -> vector<8x128xf32>
    %108 = arith.addf %102, %107 : vector<8x128xf32>
    %109 = vector.extract_strided_slice %101 {offsets = [1, 0, 0], sizes = [1, 8, 256], strides = [1, 1, 1]} : vector<3x8x256xbf16> to vector<1x8x256xbf16>
    %110 = vector.shape_cast %109 : vector<1x8x256xbf16> to vector<8x256xbf16>
    %c1_47 = arith.constant 1 : index
    %c0_48 = arith.constant 0 : index
    %c0_49 = arith.constant 0 : index
    %111 = vector.load %arg6[%c1_47, %c0_48, %c0_49] : memref<3x256x128xbf16, #tpu.memory_space<vmem>>, vector<1x256x128xbf16>
    %112 = vector.shape_cast %111 : vector<1x256x128xbf16> to vector<256x128xbf16>
    %cst_50 = arith.constant dense<0.000000e+00> : vector<8x128xf32>
    %113 = tpu.matmul %110, %112, %cst_50 {dimension_numbers = #tpu.dot_dimension_numbers<[1], [0], [0], [1], [0, 0, 1, 1], [], []>} : vector<8x256xbf16>, vector<256x128xbf16>, vector<8x128xf32> -> vector<8x128xf32>
    %114 = arith.addf %108, %113 : vector<8x128xf32>
    %115 = vector.extract_strided_slice %101 {offsets = [2, 0, 0], sizes = [1, 8, 256], strides = [1, 1, 1]} : vector<3x8x256xbf16> to vector<1x8x256xbf16>
    %116 = vector.shape_cast %115 : vector<1x8x256xbf16> to vector<8x256xbf16>
    %c2_51 = arith.constant 2 : index
    %c0_52 = arith.constant 0 : index
    %c0_53 = arith.constant 0 : index
    %117 = vector.load %arg6[%c2_51, %c0_52, %c0_53] : memref<3x256x128xbf16, #tpu.memory_space<vmem>>, vector<1x256x128xbf16>
    %118 = vector.shape_cast %117 : vector<1x256x128xbf16> to vector<256x128xbf16>
    %cst_54 = arith.constant dense<0.000000e+00> : vector<8x128xf32>
    %119 = tpu.matmul %116, %118, %cst_54 {dimension_numbers = #tpu.dot_dimension_numbers<[1], [0], [0], [1], [0, 0, 1, 1], [], []>} : vector<8x256xbf16>, vector<256x128xbf16>, vector<8x128xf32> -> vector<8x128xf32>
    %120 = arith.addf %114, %119 : vector<8x128xf32>
    %c0_55 = arith.constant 0 : index
    %c0_56 = arith.constant 0 : index
    %121 = vector.load %arg7[%c0_55, %c0_56] : memref<1x128xf32, #tpu.memory_space<vmem>>, vector<1x128xf32>
    %122 = vector.broadcast %121 : vector<1x128xf32> to vector<8x128xf32>
    %123 = arith.addf %120, %122 : vector<8x128xf32>
    %cst_57 = arith.constant 5.000000e-01 : f32
    %124 = vector.broadcast %cst_57 : f32 to vector<8x128xf32>
    %125 = arith.mulf %124, %123 : vector<8x128xf32>
    %cst_58 = arith.constant 0.707106769 : f32
    %126 = vector.broadcast %cst_58 : f32 to vector<8x128xf32>
    %127 = arith.mulf %123, %126 : vector<8x128xf32>
    %128 = math.erf %127 : vector<8x128xf32>
    %cst_59 = arith.constant 1.000000e+00 : f32
    %129 = vector.broadcast %cst_59 : f32 to vector<8x128xf32>
    %130 = arith.addf %129, %128 : vector<8x128xf32>
    %131 = arith.mulf %125, %130 : vector<8x128xf32>
    %132 = arith.truncf %131 : vector<8x128xf32> to vector<8x128xbf16>
    %c0_60 = arith.constant 0 : index
    %c0_61 = arith.constant 0 : index
    %133 = vector.load %arg8[%c0_60, %c0_61] : memref<128x128xbf16, #tpu.memory_space<vmem>>, vector<128x128xbf16>
    %cst_62 = arith.constant dense<0.000000e+00> : vector<8x128xf32>
    %134 = tpu.matmul %132, %133, %cst_62 {dimension_numbers = #tpu.dot_dimension_numbers<[1], [0], [0], [1], [0, 0, 1, 1], [], []>} : vector<8x128xbf16>, vector<128x128xbf16>, vector<8x128xf32> -> vector<8x128xf32>
    %c0_63 = arith.constant 0 : index
    %c0_64 = arith.constant 0 : index
    %135 = vector.load %arg9[%c0_63, %c0_64] : memref<1x128xf32, #tpu.memory_space<vmem>>, vector<1x128xf32>
    %136 = vector.broadcast %135 : vector<1x128xf32> to vector<8x128xf32>
    %137 = arith.addf %134, %136 : vector<8x128xf32>
    %c0_65 = arith.constant 0 : index
    %c0_66 = arith.constant 0 : index
    %c0_67 = arith.constant 0 : index
    %138 = vector.load %arg10[%c0_65, %c0_66, %c0_67] : memref<1x8x128xf32, #tpu.memory_space<vmem>>, vector<1x8x128xf32>
    %139 = vector.shape_cast %138 : vector<1x8x128xf32> to vector<8x128xf32>
    %140 = vector.shape_cast %137 : vector<8x128xf32> to vector<1x8x128xf32>
    tpu.vector_store %arg10[%c0_65, %c0_66, %c0_67], %140 {strides = array<i32>} : memref<1x8x128xf32, #tpu.memory_space<vmem>>, vector<1x8x128xf32>,
    return
  }
  func.func @transform_0(%arg0: i32) -> (i32, i32, i32, i32) {
    %c0_i32 = arith.constant 0 : i32
    %c0_i32_0 = arith.constant 0 : i32
    %c0_i32_1 = arith.constant 0 : i32
    %c0_i32_2 = arith.constant 0 : i32
    return %arg0, %c0_i32, %c0_i32_0, %c0_i32_1 : i32, i32, i32, i32
  }
  func.func @transform_1(%arg0: i32) -> (i32, i32, i32) {
    %c0_i32 = arith.constant 0 : i32
    %c0_i32_0 = arith.constant 0 : i32
    %c0_i32_1 = arith.constant 0 : i32
    %c0_i32_2 = arith.constant 0 : i32
    return %c0_i32, %c0_i32_0, %c0_i32_1 : i32, i32, i32
  }
  func.func @transform_2(%arg0: i32) -> (i32, i32) {
    %c0_i32 = arith.constant 0 : i32
    %c0_i32_0 = arith.constant 0 : i32
    %c0_i32_1 = arith.constant 0 : i32
    return %c0_i32, %c0_i32_0 : i32, i32
  }
  func.func @transform_3(%arg0: i32) -> (i32, i32, i32) {
    %c0_i32 = arith.constant 0 : i32
    %c0_i32_0 = arith.constant 0 : i32
    %c0_i32_1 = arith.constant 0 : i32
    %c0_i32_2 = arith.constant 0 : i32
    return %c0_i32, %c0_i32_0, %c0_i32_1 : i32, i32, i32
  }
  func.func @transform_4(%arg0: i32) -> (i32, i32) {
    %c0_i32 = arith.constant 0 : i32
    %c0_i32_0 = arith.constant 0 : i32
    %c0_i32_1 = arith.constant 0 : i32
    return %c0_i32, %c0_i32_0 : i32, i32
  }
  func.func @transform_5(%arg0: i32) -> (i32, i32, i32) {
    %c0_i32 = arith.constant 0 : i32
    %c0_i32_0 = arith.constant 0 : i32
    %c0_i32_1 = arith.constant 0 : i32
    %c0_i32_2 = arith.constant 0 : i32
    return %c0_i32, %c0_i32_0, %c0_i32_1 : i32, i32, i32
  }
  func.func @transform_6(%arg0: i32) -> (i32, i32) {
    %c0_i32 = arith.constant 0 : i32
    %c0_i32_0 = arith.constant 0 : i32
    %c0_i32_1 = arith.constant 0 : i32
    return %c0_i32, %c0_i32_0 : i32, i32
  }
  func.func @transform_7(%arg0: i32) -> (i32, i32) {
    %c0_i32 = arith.constant 0 : i32
    %c0_i32_0 = arith.constant 0 : i32
    %c0_i32_1 = arith.constant 0 : i32
    return %c0_i32, %c0_i32_0 : i32, i32
  }
  func.func @transform_8(%arg0: i32) -> (i32, i32) {
    %c0_i32 = arith.constant 0 : i32
    %c0_i32_0 = arith.constant 0 : i32
    %c0_i32_1 = arith.constant 0 : i32
    return %c0_i32, %c0_i32_0 : i32, i32
  }
  func.func @transform_9(%arg0: i32) -> (i32, i32, i32) {
    %c0_i32 = arith.constant 0 : i32
    %c0_i32_0 = arith.constant 0 : i32
    %c0_i32_1 = arith.constant 0 : i32
    return %arg0, %c0_i32, %c0_i32_0 : i32, i32, i32
  }
}

</mosaic_0001>

<bundles_post_ra>
// kernel: mnist_clf_forward.1
= control target key start
LH: loop header
LB: loop body
LE: loop exit
PB: predicated region body
PF: predicated region fallthrough
CT: control target
= control target key end

     0   :  { %14 = vsyncpa [#allocation3], 0  ;;  %s6986_s0 = inlined_call_operand.vmem [shape: bf16[2,18,8,18], index: 0, kind: input, shape index: {}]   ;;  %s6987_s1 = inlined_call_operand.vmem [shape: bf16[3,18,512], index: 1, kind: input, shape index: {}]   ;;  %s6988_s2 = inlined_call_operand.vmem [shape: f32[1,256], index: 2, kind: input, shape index: {}]   ;;  %s6989_s3 = inlined_call_operand.hbm [shape: bf16[3,256,512], index: 3, kind: input, shape index: {}]   ;;  %s6990_s4 = inlined_call_operand.vmem [shape: f32[1,256], index: 4, kind: input, shape index: {}]   ;;  %s6991_s5 = inlined_call_operand.vmem [shape: bf16[3,256,128], index: 5, kind: input, shape index: {}]   ;;  %s6992_s6 = inlined_call_operand.vmem [shape: f32[1,128], index: 6, kind: input, shape index: {}]   ;;  %s6993_s7 = inlined_call_operand.vmem [shape: bf16[128,128], index: 7, kind: input, shape index: {}]   ;;  %s6994_s8 = inlined_call_operand.vmem [shape: f32[1,128], index: 8, kind: input, shape index: {}]   ;;  %s6995_s9 = inlined_call_operand.hbm [shape: f32[2,8,128], index: 9, kind: output, shape index: {}]  }
   0x1   :  { %15 = vsyncpa [#allocation4], 0 }
   0x2   :  { %17 = vsyncpa [#allocation4 + $0x1], 0  ;;  %s5843_s30 = smov 0   ;;  %s5845_s10 = smov 0  }
   0x3   :  { %s5847_s11 = smov 0   ;;  %s5849_s12 = smov 0  }
   0x4 LB: > { %s5864_s13 = sadd.s32 4294967295, %s5784_s12   ;;  %s4333_s14 = sadd.s32 4294967294, %s5784_s12   ;;  %s5784_s12 = sphi %s5849_s12, %s7064_s12   ;;  %s5780_s11 = sphi %s5847_s11, %s7063_s11   ;;  %s5776_s10 = sphi %s5845_s10, %s7062_s10   ;;  %s5772_s30 = sphi %s5843_s30, %s7061_s30  }
   0x5   : > { %s5868_s15 = sadd.s32 1, %s5784_s12   ;;  %s224_s16 = sadd.s32 1, %s5780_s11 }
   0x6   : > { %s221_s17 = ssub.s32 %s5784_s12, %s5868_s15  ;;  %p234_p0 = scmp.ne.s32.totalorder %s5780_s11, %s5776_s10 }
   0x7   : > { %p222_p1 = scmp.eq.s32.totalorder %s221_s17, 0  ;;  %p235_p2 = scmp.eq.s32.totalorder %s5864_s13, 1 }
   0x8   : > { %p240_p3 = scmp.ne.s32.totalorder %s5776_s10, %s5772_s30  ;;  %p241_p4 = scmp.eq.s32.totalorder %s4333_s14, 1 }
   0x9   : > { %s5879_s18 = scalar_select %p222_p1, %s5780_s11, %s224_s16  }
   0xa   : > { %p5881_p5 = por %p235_p2, %p234_p0  ;;  %p5885_p6 = por %p241_p4, %p240_p3 }
   0xb   : > { %p4334_p7 = scmp.ge.s32.totalorder %s5784_s12, 1  ;;  %p248_p8 = scmp.lt.s32.totalorder %s5784_s12, 3 }
   0xc   : > { %s7013_s19 = scalar_select %p5881_p5, 1, 0 }
   0xd   : > { %s7014_s20 = scalar_select %p5885_p6, 1, 0 }
   0xe   : > { %p6996_p9 = scmp.eq.s32.totalorder %s5864_s13, 0  ;;  %p5892_p10 = pnand %p4334_p7, %p248_p8 }
   0xf   : > { %s5786_s22 = smov [#allocation2]   ;;  %s5690_s27 = scalar_lea.hbm %s6989_s3, 24576 }
  0x10   : > { %s7015_s21 = scalar_select %p5892_p10, 1, 0 }
  0x11   : > { %s266_s23 = sshll.u32 %s5786_s22, 4  ;;  %p5072_p11 = pneg %p5892_p10  ;;  %s267_s23 = int_to_ptr.vmem [resolvable:$true] %s266_s23 }
  0x12   : > { %p5691_p13 = scmp.ne.s32.totalorder %s6989_s3, %s5690_s27  ;;  %p5697_p3 = scmp.lt.u32.totalorder %s5690_s27, %s6989_s3 }
  0x13   : > { %p5900_p12 = pnand %p6996_p9, %p5072_p11 }
  0x15   : > { %p5692_p0 = pneg %p5900_p12 }
  0x17   : > { %p5693_p1 = pnand %p5692_p0, %p5691_p13 }
  0x19   : > { %p5694_p2 = pneg %p5693_p1 }
  0x1b   : > { %p5699_p4 = pnand %p5697_p3, %p5694_p2 }
  0x1d   : > { %5702 = shalt.err (!%p5699_p4)
}
  0x1e   : > { %s5703_s17 = scalar_lea.vmem %s267_s23, 24576  ;;  %p5711_p9 = scmp.lt.s32.totalorder %s267_s23, %s267_s23 }
  0x1f   : > { %p5704_p7 = scmp.ne.s32.totalorder %s267_s23, %s5703_s17  ;;  %p5712_p6 = scmp.lt.s32.totalorder %s5703_s17, %s5703_s17 }
  0x21   : > { %p5706_p8 = pnand %p5704_p7, %p5692_p0  ;;  %p5713_p5 = por %p5712_p6, %p5711_p9 }
  0x23   : > { %p5707_p11 = pneg %p5706_p8 }
  0x25   : > { %p5714_p10 = pnand %p5713_p5, %p5707_p11 }
  0x27   : > { %5717 = shalt.err (!%p5714_p10)
}
  0x28   : > { %s5787_s22 = smov 256   ;;  %s5788_s25 = smov 16  }
  0x29   : > { %5075 = dma.hbm_to_vmem [thread:$0]  (!%p5900_p12), %s6989_s3, 24576, %s267_s23, [#allocation3], %s5787_s22, %s5787_s22, %s5788_s25  }
  0x2a   : > { %p7017_p13 = scmp.ne.s32.totalorder %s7015_s21, 0 }
  0x2c   : > { %305 = sbr.rel (%p7017_p13) target bundleno = 1361 (0x551), region = 56 }
  0x33   : > { %p7018_p1 = scmp.eq.s32.totalorder %s5864_s13, 0 }
  0x35   : > { %5763 = dma.done.wait (%p7018_p1), [#allocation3], 24576   ;;  %p7019_p0 = pmov %p7018_p1 }
  0x36   : > { %p341_p5 = scmp.lt.s32.totalorder %s5864_s13, 1  ;;  %v5789_v0 = vmov 0   ;;  %v5121_v1 = vld [vmem:[%s6987_s1 + $0x34] ss:$16 sps:$4 sm:$0xff]   ;;  %v5123_v2 = vld [vmem:[%s6987_s1 + $0x3c] ss:$16 sps:$4 sm:$0xff]  }
  0x37   : > { %5765 = vsyncadd (%p7019_p0), [#allocation3], 4294942720  ;;  %518 = vmatprep.mubr.bf16.mxu0 %v5789_v0  ;;  %631 = vmatprep.mubr.bf16.mxu1 %v5789_v0  ;;  %vm473_vm0 = vcmask 1040384   ;;  %v5125_v3 = vld [vmem:[%s6987_s1 + $0x30] ss:$16 sps:$4 sm:$0xff]   ;;  %vm448_vm1 = vcmask 146432  }
  0x38   : > { %s342_s24 = scalar_select %p341_p5, %s5864_s13, 1  ;;  %486 = vmatprep.subr.bf16.mxu0 %v5121_v1  ;;  %v5126_v4 = vld [vmem:[%s6987_s1 + $0x38] ss:$16 sps:$4 sm:$0xff]   ;;  %v4345_v5 = vld [vmem:[%s6987_s1 + $0x50] sm:$0x11]  ;;  %599 = vmatprep.subr.bf16.mxu1 %v5123_v2  ;;  %vm5791_vm2 = vmmov 0  }
  0x39   : > { %v4360_v6 = vcombine.high %v4345_v5, %v4345_v5  ;;  %v4346_v7 = vld [vmem:[%s6987_s1 + $0x58] sm:$0x11]  ;;  %v4359_v8 = vcombine.low %v4345_v5, %v4345_v5  ;;  %487 = vmatpush1.bf16.msra.mxu0 %v5125_v3  ;;  %600 = vmatpush1.bf16.msra.mxu1 %v5126_v4  ;;  %v5135_v16 = vld [vmem:[%s6987_s1 + $0x4] ss:$16 sps:$4 sm:$0xff]   ;;  %v5133_v18 = vld [vmem:[%s6987_s1] ss:$16 sps:$4 sm:$0xff]  }
  0x3a   : > { %s5065_s27 = smul.u32 72, %s342_s24  ;;  %v4362_v11 = vcombine.high %v4346_v7, %v4346_v7  ;;  %v4361_v12 = vcombine.low %v4346_v7, %v4346_v7  ;;  %v5138_v19 = vld [vmem:[%s6987_s1 + $0xc] ss:$16 sps:$4 sm:$0xff]   ;;  %v5136_v24 = vld [vmem:[%s6987_s1 + $0x8] ss:$16 sps:$4 sm:$0xff]   ;;  %s338_s21 = sand.u32 1, %s5776_s10  }
  0x3b   : > { %4363 = vmatprep.subr.msk.bf16.mxu0 %vm473_vm0, %v4360_v6  ;;  %v475_v15 = vsel %vm473_vm0, %v4359_v8, 0  ;;  %v369_v31 = vld [vmem:[%s6987_s1 + $0x20] sm:$0x11]  ;;  %v370_v35 = vld [vmem:[%s6987_s1 + $0x28] sm:$0x11]  ;;  %s4339_s14 = sshll.u32 %s338_s21, 3 }
  0x3c   : > { %s5936_s16 = scalar_lea.vmem %s6986_s0, %s5065_s27  ;;  %4372 = vmatprep.subr.msk.bf16.mxu1 %vm473_vm0, %v4362_v11  ;;  %v481_v17 = vsel %vm473_vm0, %v4361_v12, 0  ;;  %v4394_v34 = vcombine.high %v369_v31, %v369_v31  ;;  %v4393_v36 = vcombine.low %v369_v31, %v369_v31  ;;  %v4396_v39 = vcombine.high %v370_v35, %v370_v35  ;;  %v5152_v49 = vld [vmem:[%s6987_s1 + $0x64] ss:$16 sps:$4 sm:$0xff]   ;;  %v5155_v51 = vld [vmem:[%s6987_s1 + $0x6c] ss:$16 sps:$4 sm:$0xff]   ;;  %s4777_s25 = sshll.u32 %s5864_s13, 7 }
  0x3d   : > { %v347_v9 = vld [vmem:[%s5936_s16] sm:$0xf]  ;;  %v348_v10 = vld [vmem:[%s5936_s16 + $0x4] sm:$0xf]  ;;  %v349_v13 = vld [vmem:[%s5936_s16 + $0x8] sm:$0xf]  ;;  %489 = vmatpush1.bf16.msra.mxu0 %v475_v15  ;;  %602 = vmatpush1.bf16.msra.mxu1 %v481_v17  ;;  %v4395_v40 = vcombine.low %v370_v35, %v370_v35  ;;  %s6944_s27 = scalar_lea.hbm %s6995_s9, %s4777_s25 }
  0x3e   : > { %v5956_v14 = vcombine.low %v347_v9, %v348_v10  ;;  %v4347_v20 = vcombine.low %v348_v10, %v349_v13  ;;  %v350_v21 = vld [vmem:[%s5936_s16 + $0xc] sm:$0xf]  ;;  %v351_v22 = vld [vmem:[%s5936_s16 + $0x10] sm:$0xf]  ;;  %v352_v23 = vld [vmem:[%s5936_s16 + $0x14] sm:$0xf]  ;;  %788 = vmatprep.subr.bf16.mxu0 %v5135_v16  ;;  %901 = vmatprep.subr.bf16.mxu1 %v5138_v19 }
  0x3f   : > { %v353_v25 = vld [vmem:[%s5936_s16 + $0x18] sm:$0xf]  ;;  %v354_v26 = vld [vmem:[%s5936_s16 + $0x1c] sm:$0xf]  ;;  %v5979_v27 = vcombine.low %v349_v13, %v350_v21  ;;  %v5981_v28 = vcombine.low %v351_v22, %v352_v23  ;;  %v355_v29 = vld [vmem:[%s5936_s16 + $0x20] sm:$0xf]  ;;  %v4348_v52 = vcombine.low %v350_v21, %v351_v22 }
  0x40   : > { %v356_v30 = vld [vmem:[%s5936_s16 + $0x24] sm:$0xf]  ;;  %v5988_v32 = vcombine.low %v353_v25, %v354_v26  ;;  %v357_v33 = vld [vmem:[%s5936_s16 + $0x28] sm:$0xf]  ;;  %v358_v37 = vld [vmem:[%s5936_s16 + $0x2c] sm:$0xf]  ;;  %4364 = vmatmul.mubr.msk.bf16.vlgmr.msra.gmra.mrb[0].mxu0 %vm448_vm1, %v4347_v20  ;;  %4373 = vmatmul.mubr.msk.bf16.vlgmr.msra.gmra.mrb[0].mxu1 %vm448_vm1, %v4347_v20  ;;  %v4349_v53 = vcombine.low %v352_v23, %v353_v25  ;;  %v4350_v54 = vcombine.low %v354_v26, %v355_v29 }
  0x41   : > { %v5995_v38 = vcombine.low %v355_v29, %v356_v30  ;;  %v359_v41 = vld [vmem:[%s5936_s16 + $0x30] sm:$0xf]  ;;  %v360_v42 = vld [vmem:[%s5936_s16 + $0x34] sm:$0xf]  ;;  %v361_v43 = vld [vmem:[%s5936_s16 + $0x38] sm:$0xf]  ;;  %789 = vmatpush1.bf16.msra.mxu0 %v5133_v18  ;;  %902 = vmatpush1.bf16.msra.mxu1 %v5136_v24  ;;  %v6003_v45 = vcombine.low %v357_v33, %v358_v37  ;;  %v4351_v55 = vcombine.low %v356_v30, %v357_v33 }
  0x42   : > { %v362_v44 = vld [vmem:[%s5936_s16 + $0x3c] sm:$0xf]  ;;  %v6005_v46 = vcombine.low %v359_v41, %v360_v42  ;;  %528 = vmatprep.mubr.bf16.mxu0 %v5789_v0  ;;  %641 = vmatprep.mubr.bf16.mxu1 %v5789_v0  ;;  %v777_v47 = vsel %vm473_vm0, %v4393_v36, 0  ;;  %v783_v48 = vsel %vm473_vm0, %v4395_v40, 0  ;;  %v4352_v56 = vcombine.low %v358_v37, %v359_v41  ;;  %v363_v58 = vld [vmem:[%s5936_s16 + $0x40] sm:$0xf] }
  0x43   : > { %v6014_v50 = vcombine.low %v361_v43, %v362_v44  ;;  %4397 = vmatprep.subr.msk.bf16.mxu0 %vm473_vm0, %v4394_v34  ;;  %4406 = vmatprep.subr.msk.bf16.mxu1 %vm473_vm0, %v4396_v39  ;;  %v4353_v57 = vcombine.low %v360_v42, %v361_v43  ;;  %v364_v59 = vld [vmem:[%s5936_s16 + $0x44] sm:$0xf]  ;;  %v4354_v61 = vcombine.low %v362_v44, %v363_v58  ;;  %v4420_v63 = vld [vmem:[%s6987_s1 + $0x88] sm:$0x11]  ;;  %v5150_v1 = vld [vmem:[%s6987_s1 + $0x60] ss:$16 sps:$4 sm:$0xff]  }
  0x44   : > { %v6047_v60 = vcombine.low %v363_v58, %v364_v59  ;;  %v4419_v62 = vld [vmem:[%s6987_s1 + $0x80] sm:$0x11]  ;;  %v5153_v2 = vld [vmem:[%s6987_s1 + $0x68] ss:$16 sps:$4 sm:$0xff]   ;;  %v4428_v4 = vcombine.low %v4420_v63, %v4420_v63  ;;  %v4429_v6 = vcombine.high %v4420_v63, %v4420_v63  ;;  %v5173_v8 = vld [vmem:[#allocation2 + $0x20c] ss:$16 sps:$4 sm:$0xff]  }
  0x45   : > { %791 = vmatpush1.bf16.msra.mxu0 %v777_v47  ;;  %904 = vmatpush1.bf16.msra.mxu1 %v783_v48  ;;  %v4426_v3 = vcombine.low %v4419_v62, %v4419_v62  ;;  %v4427_v5 = vcombine.high %v4419_v62, %v4419_v62  ;;  %v5170_v7 = vld [vmem:[#allocation2 + $0x204] ss:$16 sps:$4 sm:$0xff]   ;;  %v5168_v11 = vld [vmem:[#allocation2 + $0x200] ss:$16 sps:$4 sm:$0xff]   ;;  %v5171_v12 = vld [vmem:[#allocation2 + $0x208] ss:$16 sps:$4 sm:$0xff]  }
  0x46   : > { %1069 = vmatprep.subr.bf16.mxu0 %v5152_v49  ;;  %1182 = vmatprep.subr.bf16.mxu1 %v5155_v51  ;;  %v1064_v10 = vsel %vm473_vm0, %v4428_v4, 0  ;;  %v5176_v13 = vld [vmem:[#allocation2 + $0x224] ss:$16 sps:$4 sm:$0xff]   ;;  %v5174_v15 = vld [vmem:[#allocation2 + $0x220] ss:$16 sps:$4 sm:$0xff]   ;;  %s340_s26 = scalar_lea.vmem [#allocation5], %s4339_s14 }
  0x47   : > { %v1058_v9 = vsel %vm473_vm0, %v4426_v3, 0  ;;  %v5177_v16 = vld [vmem:[#allocation2 + $0x228] ss:$16 sps:$4 sm:$0xff]   ;;  %v5182_v17 = vld [vmem:[#allocation2 + $0x244] ss:$16 sps:$4 sm:$0xff]   ;;  %s4262_s28 = sshll.u32 %s340_s26, 4  ;;  %s6946_s28 = int_to_ptr.vmem [resolvable:$true] %s4262_s28 }
  0x48   : > { %4365 = vmatmul.mubr.msk.bf16.gmra.mrb[4].mxu0 %vm448_vm1, %v4348_v52  ;;  %4374 = vmatmul.mubr.msk.bf16.gmra.mrb[4].mxu1 %vm448_vm1, %v4348_v52  ;;  %v5185_v18 = vld [vmem:[#allocation2 + $0x24c] ss:$16 sps:$4 sm:$0xff]   ;;  %v5180_v19 = vld [vmem:[#allocation2 + $0x240] ss:$16 sps:$4 sm:$0xff]   ;;  %v5183_v20 = vld [vmem:[#allocation2 + $0x248] ss:$16 sps:$4 sm:$0xff]  }
  0x49   : > { %538 = vmatprep.mubr.bf16.mxu0 %v5789_v0  ;;  %651 = vmatprep.mubr.bf16.mxu1 %v5789_v0  ;;  %v5188_v21 = vld [vmem:[#allocation2 + $0x264] ss:$16 sps:$4 sm:$0xff]   ;;  %v5191_v22 = vld [vmem:[#allocation2 + $0x26c] ss:$16 sps:$4 sm:$0xff]   ;;  %v5186_v23 = vld [vmem:[#allocation2 + $0x260] ss:$16 sps:$4 sm:$0xff]  }
  0x4a   : > { %v5189_v24 = vld [vmem:[#allocation2 + $0x268] ss:$16 sps:$4 sm:$0xff]   ;;  %v5194_v25 = vld [vmem:[#allocation2 + $0x284] ss:$16 sps:$4 sm:$0xff]   ;;  %v5197_v26 = vld [vmem:[#allocation2 + $0x28c] ss:$16 sps:$4 sm:$0xff]  }
  0x4b   : > { %v5195_v29 = vld [vmem:[#allocation2 + $0x288] ss:$16 sps:$4 sm:$0xff]   ;;  %v5203_v30 = vld [vmem:[#allocation2 + $0x2ac] ss:$16 sps:$4 sm:$0xff]   ;;  %v5198_v31 = vld [vmem:[#allocation2 + $0x2a0] ss:$16 sps:$4 sm:$0xff]  }
  0x4c   : > { %v5206_v33 = vld [vmem:[#allocation2 + $0x2c4] ss:$16 sps:$4 sm:$0xff]   ;;  %v5209_v34 = vld [vmem:[#allocation2 + $0x2cc] ss:$16 sps:$4 sm:$0xff]   ;;  %v5204_v35 = vld [vmem:[#allocation2 + $0x2c0] ss:$16 sps:$4 sm:$0xff]  }
  0x4d   : > { %v5207_v36 = vld [vmem:[#allocation2 + $0x2c8] ss:$16 sps:$4 sm:$0xff]   ;;  %v5215_v37 = vld [vmem:[#allocation2 + $0x2ec] ss:$16 sps:$4 sm:$0xff]   ;;  %v5218_v40 = vld [vmem:[#allocation2 + $0x304] ss:$16 sps:$4 sm:$0xff]  }
  0x4e   : > { %v5213_v39 = vld [vmem:[#allocation2 + $0x2e8] ss:$16 sps:$4 sm:$0xff]   ;;  %v5221_v41 = vld [vmem:[#allocation2 + $0x30c] ss:$16 sps:$4 sm:$0xff]   ;;  %v5216_v42 = vld [vmem:[#allocation2 + $0x300] ss:$16 sps:$4 sm:$0xff]  }
  0x4f   : > { %v5219_v43 = vld [vmem:[#allocation2 + $0x308] ss:$16 sps:$4 sm:$0xff]   ;;  %v5224_v44 = vld [vmem:[#allocation2 + $0x324] ss:$16 sps:$4 sm:$0xff]   ;;  %v5233_v49 = vld [vmem:[#allocation2 + $0x34c] ss:$16 sps:$4 sm:$0xff]  }
  0x50   : > { %4366 = vmatmul.mubr.msk.bf16.gmra.mrb[8].mxu0 %vm448_vm1, %v4349_v53  ;;  %4375 = vmatmul.mubr.msk.bf16.gmra.mrb[8].mxu1 %vm448_vm1, %v4349_v53  ;;  %v5225_v47 = vld [vmem:[#allocation2 + $0x328] ss:$16 sps:$4 sm:$0xff]   ;;  %v5230_v48 = vld [vmem:[#allocation2 + $0x344] ss:$16 sps:$4 sm:$0xff]   ;;  %v5239_v53 = vld [vmem:[#allocation2 + $0x36c] ss:$16 sps:$4 sm:$0xff]  }
  0x51   : > { %548 = vmatprep.mubr.bf16.mxu0 %v5789_v0  ;;  %661 = vmatprep.mubr.bf16.mxu1 %v5789_v0  ;;  %v5231_v51 = vld [vmem:[#allocation2 + $0x348] ss:$16 sps:$4 sm:$0xff]   ;;  %v5236_v52 = vld [vmem:[#allocation2 + $0x364] ss:$16 sps:$4 sm:$0xff]   ;;  %v5240_v58 = vld [vmem:[#allocation2 + $0x380] ss:$16 sps:$4 sm:$0xff]  }
  0x52   : > { %v5243_v59 = vld [vmem:[#allocation2 + $0x388] ss:$16 sps:$4 sm:$0xff]   ;;  %v5246_v62 = vld [vmem:[#allocation2 + $0x3a0] ss:$16 sps:$4 sm:$0xff]   ;;  %s4249_s16 = scalar_lea.sflag [#allocation4], %s338_s21  ;;  %s5718_s13 = scalar_lea.vmem %s6946_s28, 128 }
  0x53   : > { %v5249_v63 = vld [vmem:[#allocation2 + $0x3a8] ss:$16 sps:$4 sm:$0xff]   ;;  %v5252_v3 = vld [vmem:[#allocation2 + $0x3c0] ss:$16 sps:$4 sm:$0xff]   ;;  %p5719_p6 = scmp.ne.s32.totalorder %s6946_s28, %s5718_s13  ;;  %p7059_p9 = scmp.ne.s32.totalorder %s7013_s19, 0 }
  0x54   : > { %v5255_v4 = vld [vmem:[#allocation2 + $0x3c8] ss:$16 sps:$4 sm:$0xff]   ;;  %s5792_s29 = smov [#allocation5]  }
  0x55   : > { %p5720_p10 = pnand %p5719_p6, %p7059_p9  ;;  %s5722_s14 = sshll.u32 %s5792_s29, 4  ;;  %s5723_s14 = int_to_ptr.vmem [resolvable:$false] %s5722_s14 }
  0x56   : > { %s5724_s17 = scalar_lea.vmem %s5723_s14, 256  ;;  %p5725_p2 = scmp.lt.s32.totalorder %s6946_s28, %s5723_s14 }
  0x57   : > { %p5721_p12 = pneg %p5720_p10  ;;  %p5726_p3 = scmp.lt.s32.totalorder %s5724_s17, %s5718_s13 }
  0x58   : > { %4367 = vmatmul.mubr.msk.bf16.gmra.mrb[12].mxu0 %vm448_vm1, %v4350_v54  ;;  %4376 = vmatmul.mubr.msk.bf16.gmra.mrb[12].mxu1 %vm448_vm1, %v4350_v54  ;;  %v5234_v54 = vld [vmem:[#allocation2 + $0x360] ss:$16 sps:$4 sm:$0xff]  }
  0x59   : > { %558 = vmatprep.mubr.bf16.mxu0 %v5789_v0  ;;  %671 = vmatprep.mubr.bf16.mxu1 %v5789_v0  ;;  %p5727_p4 = por %p5726_p3, %p5725_p2 }
  0x5b   : > { %p5728_p7 = pnand %p5727_p4, %p5721_p12 }
  0x60   : > { %4368 = vmatmul.mubr.msk.bf16.gmra.mrb[16].mxu0 %vm448_vm1, %v4351_v55  ;;  %4377 = vmatmul.mubr.msk.bf16.gmra.mrb[16].mxu1 %vm448_vm1, %v4351_v55  ;;  %v5237_v55 = vld [vmem:[#allocation2 + $0x368] ss:$16 sps:$4 sm:$0xff]  }
  0x61   : > { %568 = vmatprep.mubr.bf16.mxu0 %v5789_v0  ;;  %681 = vmatprep.mubr.bf16.mxu1 %v5789_v0 }
  0x68   : > { %4369 = vmatmul.mubr.msk.bf16.gmra.mrb[20].mxu0 %vm448_vm1, %v4352_v56  ;;  %4378 = vmatmul.mubr.msk.bf16.gmra.mrb[20].mxu1 %vm448_vm1, %v4352_v56  ;;  %v5242_v56 = vld [vmem:[#allocation2 + $0x384] ss:$16 sps:$4 sm:$0xff]  }
  0x69   : > { %578 = vmatprep.mubr.bf16.mxu0 %v5789_v0  ;;  %691 = vmatprep.mubr.bf16.mxu1 %v5789_v0 }
  0x70   : > { %4370 = vmatmul.mubr.msk.bf16.gmra.mrb[24].mxu0 %vm448_vm1, %v4353_v57  ;;  %4379 = vmatmul.mubr.msk.bf16.gmra.mrb[24].mxu1 %vm448_vm1, %v4353_v57  ;;  %v5245_v57 = vld [vmem:[#allocation2 + $0x38c] ss:$16 sps:$4 sm:$0xff]  }
  0x71   : > { %588 = vmatprep.mubr.bf16.mxu0 %v5789_v0  ;;  %701 = vmatprep.mubr.bf16.mxu1 %v5789_v0 }
  0x78   : > { %4371 = vmatmul.mubr.msk.bf16.gmra.mrb[28].mxu0 %vm448_vm1, %v4354_v61  ;;  %4380 = vmatmul.mubr.msk.bf16.gmra.mrb[28].mxu1 %vm448_vm1, %v4354_v61  ;;  %v5251_v61 = vld [vmem:[#allocation2 + $0x3ac] ss:$16 sps:$4 sm:$0xff]  }
  0x79   : > { %820 = vmatprep.mubr.bf16.mxu0 %v5789_v0  ;;  %933 = vmatprep.mubr.bf16.mxu1 %v5789_v0 }
  0x80   : > { %4398 = vmatmul.mubr.msk.bf16.vlgmr.msra.gmra.mrb[0].mxu0 %vm448_vm1, %v5956_v14  ;;  %4407 = vmatmul.mubr.msk.bf16.vlgmr.msra.gmra.mrb[0].mxu1 %vm448_vm1, %v5956_v14  ;;  %v5179_v14 = vld [vmem:[#allocation2 + $0x22c] ss:$16 sps:$4 sm:$0xff]  }
  0x81   : > { %1070 = vmatpush1.bf16.msra.mxu0 %v5150_v1  ;;  %1183 = vmatpush1.bf16.msra.mxu1 %v5153_v2  ;;  %v5254_v1 = vld [vmem:[#allocation2 + $0x3c4] ss:$16 sps:$4 sm:$0xff]   ;;  %v5257_v2 = vld [vmem:[#allocation2 + $0x3cc] ss:$16 sps:$4 sm:$0xff]  }
  0x82   : > { %830 = vmatprep.mubr.bf16.mxu0 %v5789_v0  ;;  %943 = vmatprep.mubr.bf16.mxu1 %v5789_v0 }
  0x83   : > { %4430 = vmatprep.subr.msk.bf16.mxu0 %vm473_vm0, %v4427_v5  ;;  %4439 = vmatprep.subr.msk.bf16.mxu1 %vm473_vm0, %v4429_v6  ;;  %v5260_v5 = vld [vmem:[#allocation2 + $0x3e4] ss:$16 sps:$4 sm:$0xff]   ;;  %v5263_v6 = vld [vmem:[#allocation2 + $0x3ec] ss:$16 sps:$4 sm:$0xff]  }
  0x85   : > { %1072 = vmatpush1.bf16.msra.mxu0 %v1058_v9  ;;  %1185 = vmatpush1.bf16.msra.mxu1 %v1064_v10  ;;  %v5266_v9 = vld [vmem:[#allocation2 + $0x4] ss:$16 sps:$4 sm:$0xff]   ;;  %v5269_v10 = vld [vmem:[#allocation2 + $0xc] ss:$16 sps:$4 sm:$0xff]  }
  0x86   : > { %2308 = vmatprep.subr.bf16.mxu0 %v5170_v7  ;;  %2371 = vmatprep.subr.bf16.mxu1 %v5173_v8  ;;  %v5258_v7 = vld [vmem:[#allocation2 + $0x3e0] ss:$16 sps:$4 sm:$0xff]   ;;  %v5261_v8 = vld [vmem:[#allocation2 + $0x3e8] ss:$16 sps:$4 sm:$0xff]  }
  0x88   : > { %4399 = vmatmul.mubr.msk.bf16.gmra.mrb[4].mxu0 %vm448_vm1, %v5979_v27  ;;  %4408 = vmatmul.mubr.msk.bf16.gmra.mrb[4].mxu1 %vm448_vm1, %v5979_v27 }
  0x89   : > { %840 = vmatprep.mubr.bf16.mxu0 %v5789_v0  ;;  %953 = vmatprep.mubr.bf16.mxu1 %v5789_v0 }
  0x90   : > { %4400 = vmatmul.mubr.msk.bf16.gmra.mrb[8].mxu0 %vm448_vm1, %v5981_v28  ;;  %4409 = vmatmul.mubr.msk.bf16.gmra.mrb[8].mxu1 %vm448_vm1, %v5981_v28 }
  0x91   : > { %850 = vmatprep.mubr.bf16.mxu0 %v5789_v0  ;;  %963 = vmatprep.mubr.bf16.mxu1 %v5789_v0 }
  0x98   : > { %4401 = vmatmul.mubr.msk.bf16.gmra.mrb[12].mxu0 %vm448_vm1, %v5988_v32  ;;  %4410 = vmatmul.mubr.msk.bf16.gmra.mrb[12].mxu1 %vm448_vm1, %v5988_v32 }
  0x99   : > { %860 = vmatprep.mubr.bf16.mxu0 %v5789_v0  ;;  %973 = vmatprep.mubr.bf16.mxu1 %v5789_v0 }
  0xa0   : > { %4402 = vmatmul.mubr.msk.bf16.gmra.mrb[16].mxu0 %vm448_vm1, %v5995_v38  ;;  %4411 = vmatmul.mubr.msk.bf16.gmra.mrb[16].mxu1 %vm448_vm1, %v5995_v38 }
  0xa1   : > { %870 = vmatprep.mubr.bf16.mxu0 %v5789_v0  ;;  %983 = vmatprep.mubr.bf16.mxu1 %v5789_v0 }
  0xa8   : > { %4403 = vmatmul.mubr.msk.bf16.gmra.mrb[20].mxu0 %vm448_vm1, %v6003_v45  ;;  %4412 = vmatmul.mubr.msk.bf16.gmra.mrb[20].mxu1 %vm448_vm1, %v6003_v45 }
  0xa9   : > { %880 = vmatprep.mubr.bf16.mxu0 %v5789_v0  ;;  %993 = vmatprep.mubr.bf16.mxu1 %v5789_v0 }
  0xb0   : > { %4404 = vmatmul.mubr.msk.bf16.gmra.mrb[24].mxu0 %vm448_vm1, %v6005_v46  ;;  %4413 = vmatmul.mubr.msk.bf16.gmra.mrb[24].mxu1 %vm448_vm1, %v6005_v46 }
  0xb1   : > { %890 = vmatprep.mubr.bf16.mxu0 %v5789_v0  ;;  %1003 = vmatprep.mubr.bf16.mxu1 %v5789_v0 }
  0xb8   : > { %4405 = vmatmul.mubr.msk.bf16.gmra.mrb[28].mxu0 %vm448_vm1, %v6014_v50  ;;  %4414 = vmatmul.mubr.msk.bf16.gmra.mrb[28].mxu1 %vm448_vm1, %v6014_v50 }
  0xb9   : > { %1101 = vmatprep.mubr.bf16.mxu0 %v5789_v0  ;;  %1214 = vmatprep.mubr.bf16.mxu1 %v5789_v0 }
  0xc0   : > { %4431 = vmatmul.mubr.msk.bf16.vlgmr.msra.gmra.mrb[0].mxu0 %vm448_vm1, %v5979_v27  ;;  %4440 = vmatmul.mubr.msk.bf16.vlgmr.msra.gmra.mrb[0].mxu1 %vm448_vm1, %v5979_v27  ;;  %v5192_v27 = vld [vmem:[#allocation2 + $0x280] ss:$16 sps:$4 sm:$0xff]  }
  0xc1   : > { %1111 = vmatprep.mubr.bf16.mxu0 %v5789_v0  ;;  %1224 = vmatprep.mubr.bf16.mxu1 %v5789_v0 }
  0xc2   : > { %2309 = vmatpush1.bf16.msra.mxu0 %v5168_v11  ;;  %2372 = vmatpush1.bf16.msra.mxu1 %v5171_v12  ;;  %v1361_v11 = vlaneseq }
  0xc3   : > { %2310 = vmatprep.subr.bf16.mxu0 %v5176_v13  ;;  %2373 = vmatprep.subr.bf16.mxu1 %v5179_v14  ;;  %v1359_v14 = vld [vmem:[%s6988_s2] sm:$0x3] }
  0xc4   : > { %v6163_v12 = vshrl.u32 %v1361_v11, 7 }
  0xc6   : > { %2311 = vmatpush1.bf16.msra.mxu0 %v5174_v15  ;;  %2374 = vmatpush1.bf16.msra.mxu1 %v5177_v16  ;;  %7020 = vst [vmem:[#allocation8_spill] sm:$0xff] %v6163_v12  ;;  %v7000_v13 = vsub.s32 0, %v6163_v12  ;;  %v6999_v15 = vsub.s32 1, %v6163_v12 }
  0xc7   : > { %2312 = vmatprep.subr.bf16.mxu0 %v5182_v17  ;;  %2375 = vmatprep.subr.bf16.mxu1 %v5185_v18 }
  0xc8   : > { %4432 = vmatmul.mubr.msk.bf16.gmra.mrb[4].mxu0 %vm448_vm1, %v5981_v28  ;;  %4441 = vmatmul.mubr.msk.bf16.gmra.mrb[4].mxu1 %vm448_vm1, %v5981_v28  ;;  %v5200_v28 = vld [vmem:[#allocation2 + $0x2a4] ss:$16 sps:$4 sm:$0xff]   ;;  %v6172_v16 = vrot.slane %v1359_v14, %v7000_v13  ;;  %v6176_v17 = vrot.slane %v1359_v14, %v6999_v15 }
  0xc9   : > { %1121 = vmatprep.mubr.bf16.mxu0 %v5789_v0  ;;  %1234 = vmatprep.mubr.bf16.mxu1 %v5789_v0 }
  0xca   : > { %2313 = vmatpush1.bf16.msra.mxu0 %v5180_v19  ;;  %2376 = vmatpush1.bf16.msra.mxu1 %v5183_v20 }
  0xcb   : > { %2314 = vmatprep.subr.bf16.mxu0 %v5188_v21  ;;  %2377 = vmatprep.subr.bf16.mxu1 %v5191_v22 }
  0xce   : > { %2315 = vmatpush1.bf16.msra.mxu0 %v5186_v23  ;;  %2378 = vmatpush1.bf16.msra.mxu1 %v5189_v24 }
  0xcf   : > { %2316 = vmatprep.subr.bf16.mxu0 %v5194_v25  ;;  %2379 = vmatprep.subr.bf16.mxu1 %v5197_v26 }
  0xd0   : > { %4433 = vmatmul.mubr.msk.bf16.gmra.mrb[8].mxu0 %vm448_vm1, %v5988_v32  ;;  %4442 = vmatmul.mubr.msk.bf16.gmra.mrb[8].mxu1 %vm448_vm1, %v5988_v32  ;;  %v5201_v32 = vld [vmem:[#allocation2 + $0x2a8] ss:$16 sps:$4 sm:$0xff]  }
  0xd1   : > { %1131 = vmatprep.mubr.bf16.mxu0 %v5789_v0  ;;  %1244 = vmatprep.mubr.bf16.mxu1 %v5789_v0 }
  0xd2   : > { %2317 = vmatpush1.bf16.msra.mxu0 %v5192_v27  ;;  %2380 = vmatpush1.bf16.msra.mxu1 %v5195_v29 }
  0xd3   : > { %2318 = vmatprep.subr.bf16.mxu0 %v5200_v28  ;;  %2381 = vmatprep.subr.bf16.mxu1 %v5203_v30 }
  0xd6   : > { %2319 = vmatpush1.bf16.msra.mxu0 %v5198_v31  ;;  %2382 = vmatpush1.bf16.msra.mxu1 %v5201_v32 }
  0xd7   : > { %2320 = vmatprep.subr.bf16.mxu0 %v5206_v33  ;;  %2383 = vmatprep.subr.bf16.mxu1 %v5209_v34 }
  0xd8   : > { %4434 = vmatmul.mubr.msk.bf16.gmra.mrb[12].mxu0 %vm448_vm1, %v5995_v38  ;;  %4443 = vmatmul.mubr.msk.bf16.gmra.mrb[12].mxu1 %vm448_vm1, %v5995_v38  ;;  %v5210_v38 = vld [vmem:[#allocation2 + $0x2e0] ss:$16 sps:$4 sm:$0xff]  }
  0xd9   : > { %1141 = vmatprep.mubr.bf16.mxu0 %v5789_v0  ;;  %1254 = vmatprep.mubr.bf16.mxu1 %v5789_v0 }
  0xda   : > { %2321 = vmatpush1.bf16.msra.mxu0 %v5204_v35  ;;  %2384 = vmatpush1.bf16.msra.mxu1 %v5207_v36 }
  0xdb   : > { %2385 = vmatprep.subr.bf16.mxu1 %v5215_v37 }
  0xde   : > { %2386 = vmatpush1.bf16.msra.mxu1 %v5213_v39 }
  0xdf   : > { %2387 = vmatprep.subr.bf16.mxu1 %v5221_v41 }
  0xe0   : > { %4435 = vmatmul.mubr.msk.bf16.gmra.mrb[16].mxu0 %vm448_vm1, %v6003_v45  ;;  %4444 = vmatmul.mubr.msk.bf16.gmra.mrb[16].mxu1 %vm448_vm1, %v6003_v45  ;;  %v5227_v45 = vld [vmem:[#allocation2 + $0x32c] ss:$16 sps:$4 sm:$0xff]  }
  0xe1   : > { %1151 = vmatprep.mubr.bf16.mxu0 %v5789_v0  ;;  %1264 = vmatprep.mubr.bf16.mxu1 %v5789_v0 }
  0xe2   : > { %2388 = vmatpush1.bf16.msra.mxu1 %v5219_v43 }
  0xe3   : > { %2389 = vmatprep.subr.bf16.mxu1 %v5227_v45 }
  0xe6   : > { %2390 = vmatpush1.bf16.msra.mxu1 %v5225_v47 }
  0xe7   : > { %2391 = vmatprep.subr.bf16.mxu1 %v5233_v49 }
  0xe8   : > { %4436 = vmatmul.mubr.msk.bf16.gmra.mrb[20].mxu0 %vm448_vm1, %v6005_v46  ;;  %4445 = vmatmul.mubr.msk.bf16.gmra.mrb[20].mxu1 %vm448_vm1, %v6005_v46  ;;  %v5222_v46 = vld [vmem:[#allocation2 + $0x320] ss:$16 sps:$4 sm:$0xff]  }
  0xe9   : > { %1161 = vmatprep.mubr.bf16.mxu0 %v5789_v0  ;;  %1274 = vmatprep.mubr.bf16.mxu1 %v5789_v0 }
  0xea   : > { %2392 = vmatpush1.bf16.msra.mxu1 %v5231_v51 }
  0xeb   : > { %2393 = vmatprep.subr.bf16.mxu1 %v5239_v53 }
  0xee   : > { %2394 = vmatpush1.bf16.msra.mxu1 %v5237_v55 }
  0xef   : > { %2395 = vmatprep.subr.bf16.mxu1 %v5245_v57 }
  0xf0   : > { %4437 = vmatmul.mubr.msk.bf16.gmra.mrb[24].mxu0 %vm448_vm1, %v6014_v50  ;;  %4446 = vmatmul.mubr.msk.bf16.gmra.mrb[24].mxu1 %vm448_vm1, %v6014_v50  ;;  %v5228_v50 = vld [vmem:[#allocation2 + $0x340] ss:$16 sps:$4 sm:$0xff]  }
  0xf1   : > { %1171 = vmatprep.mubr.bf16.mxu0 %v5789_v0  ;;  %1284 = vmatprep.mubr.bf16.mxu1 %v5789_v0  ;;  %v5212_v0 = vld [vmem:[#allocation2 + $0x2e4] ss:$16 sps:$4 sm:$0xff]  }
  0xf2   : > { %2322 = vmatprep.subr.bf16.mxu0 %v5212_v0  ;;  %2396 = vmatpush1.bf16.msra.mxu1 %v5243_v59 }
  0xf3   : > { %2323 = vmatpush1.bf16.msra.mxu0 %v5210_v38  ;;  %2397 = vmatprep.subr.bf16.mxu1 %v5251_v61 }
  0xf4   : > { %2324 = vmatprep.subr.bf16.mxu0 %v5218_v40 }
  0xf6   : > { %2398 = vmatpush1.bf16.msra.mxu1 %v5249_v63 }
  0xf7   : > { %2325 = vmatpush1.bf16.msra.mxu0 %v5216_v42  ;;  %2399 = vmatprep.subr.bf16.mxu1 %v5257_v2 }
  0xf8   : > { %4438 = vmatmul.mubr.msk.bf16.gmra.mrb[28].mxu0 %vm448_vm1, %v6047_v60  ;;  %4447 = vmatmul.mubr.msk.bf16.gmra.mrb[28].mxu1 %vm448_vm1, %v6047_v60  ;;  %v5248_v60 = vld [vmem:[#allocation2 + $0x3a4] ss:$16 sps:$4 sm:$0xff]  }
  0xf9   : > { %2326 = vmatprep.subr.bf16.mxu0 %v5224_v44 }
  0xfa   : > { %2400 = vmatpush1.bf16.msra.mxu1 %v5255_v4 }
  0xfb   : > { %2327 = vmatpush1.bf16.msra.mxu0 %v5222_v46  ;;  %2401 = vmatprep.subr.bf16.mxu1 %v5263_v6 }
  0xfc   : > { %2328 = vmatprep.subr.bf16.mxu0 %v5230_v48 }
  0xfe   : > { %2402 = vmatpush1.bf16.msra.mxu1 %v5261_v8 }
  0xff   : > { %2329 = vmatpush1.bf16.msra.mxu0 %v5228_v50  ;;  %2829 = vmatprep.subr.bf16.mxu1 %v5269_v10 }
 0x100   : > { %2330 = vmatprep.subr.bf16.mxu0 %v5236_v52 }
 0x103   : > { %2331 = vmatpush1.bf16.msra.mxu0 %v5234_v54 }
 0x104   : > { %2332 = vmatprep.subr.bf16.mxu0 %v5242_v56 }
 0x107   : > { %2333 = vmatpush1.bf16.msra.mxu0 %v5240_v58 }
 0x108   : > { %2334 = vmatprep.subr.bf16.mxu0 %v5248_v60 }
 0x10b   : > { %2335 = vmatpush1.bf16.msra.mxu0 %v5246_v62 }
 0x10c   : > { %2336 = vmatprep.subr.bf16.mxu0 %v5254_v1 }
 0x10f   : > { %2337 = vmatpush1.bf16.msra.mxu0 %v5252_v3 }
 0x110   : > { %2338 = vmatprep.subr.bf16.mxu0 %v5260_v5 }
 0x113   : > { %2339 = vmatpush1.bf16.msra.mxu0 %v5258_v7 }
 0x114   : > { %2766 = vmatprep.subr.bf16.mxu0 %v5266_v9 }
 0x193   : > { %v1103_v18 = vpop.f32.mrb[0].mxu0  ;;  %v1216_v19 = vpop.f32.mrb[0].mxu1 }
 0x194   : > { %v1371_v20 = vadd.f32 %v6172_v16, %v1103_v18  ;;  %v1563_v21 = vadd.f32 %v6172_v16, %v1216_v19  ;;  %v1105_v22 = vpop.f32.mrb[1].mxu0  ;;  %v1218_v23 = vpop.f32.mrb[1].mxu1 }
 0x195   : > { %v1372_v24 = vadd.f32 %v6176_v17, %v1105_v22  ;;  %v1564_v25 = vadd.f32 %v6176_v17, %v1218_v23  ;;  %v1107_v26 = vpop.f32.mrb[2].mxu0  ;;  %v1220_v27 = vpop.f32.mrb[2].mxu1 }
 0x196   : > { %v1435_v29 = vmul.f32 0.70710677, %v1371_v20  ;;  %v1627_v28 = vmul.f32 0.70710677, %v1563_v21  ;;  %v1373_v32 = vadd.f32 %v6172_v16, %v1107_v26  ;;  %v1565_v33 = vadd.f32 %v6172_v16, %v1220_v27  ;;  %v1109_v34 = vpop.f32.mrb[3].mxu0  ;;  %v1222_v35 = vpop.f32.mrb[3].mxu1 }
 0x197   : > { %v1436_v30 = vmul.f32 0.70710677, %v1372_v24  ;;  %v1628_v31 = vmul.f32 0.70710677, %v1564_v25  ;;  %v1374_v36 = vadd.f32 %v6176_v17, %v1109_v34  ;;  %v1566_v0 = vadd.f32 %v6176_v17, %v1222_v35 }
 0x198   : > { %5512 = verf.f32 %v1435_v29  ;;  %v1437_v37 = vmul.f32 0.70710677, %v1373_v32  ;;  %v1629_v38 = vmul.f32 0.70710677, %v1565_v33  ;;  %v1403_v41 = vmul.f32 0.5, %v1371_v20 }
 0x199   : > { %5514 = verf.f32 %v1627_v28  ;;  %v1438_v39 = vmul.f32 0.70710677, %v1374_v36  ;;  %v1630_v42 = vmul.f32 0.70710677, %v1566_v0  ;;  %v1595_v46 = vmul.f32 0.5, %v1563_v21 }
 0x19a   : > { %5516 = verf.f32 %v1436_v30  ;;  %v1404_v51 = vmul.f32 0.5, %v1372_v24  ;;  %v1596_v56 = vmul.f32 0.5, %v1564_v25  ;;  %v1405_v57 = vmul.f32 0.5, %v1373_v32 }
 0x19b   : > { %5518 = verf.f32 %v1628_v31  ;;  %v1113_v40 = vpop.f32.mrb[4].mxu0  ;;  %v1226_v44 = vpop.f32.mrb[4].mxu1  ;;  %v1597_v60 = vmul.f32 0.5, %v1565_v33  ;;  %v1406_v4 = vmul.f32 0.5, %v1374_v36  ;;  %v1598_v5 = vmul.f32 0.5, %v1566_v0 }
 0x19c   : > { %5520 = verf.f32 %v1437_v37  ;;  %v1375_v43 = vadd.f32 %v6172_v16, %v1113_v40  ;;  %v1115_v45 = vpop.f32.mrb[5].mxu0  ;;  %v1567_v47 = vadd.f32 %v6172_v16, %v1226_v44  ;;  %v1228_v49 = vpop.f32.mrb[5].mxu1 }
 0x19d   : > { %5522 = verf.f32 %v1629_v38  ;;  %v1376_v48 = vadd.f32 %v6176_v17, %v1115_v45  ;;  %v1117_v50 = vpop.f32.mrb[6].mxu0  ;;  %v1568_v53 = vadd.f32 %v6176_v17, %v1228_v49  ;;  %v1230_v54 = vpop.f32.mrb[6].mxu1 }
 0x19e   : > { %5524 = verf.f32 %v1438_v39  ;;  %v1439_v52 = vmul.f32 0.70710677, %v1375_v43  ;;  %v1119_v55 = vpop.f32.mrb[7].mxu0  ;;  %v1631_v58 = vmul.f32 0.70710677, %v1567_v47  ;;  %v1232_v59 = vpop.f32.mrb[7].mxu1  ;;  %v1377_v63 = vadd.f32 %v6172_v16, %v1117_v50 }
 0x19f   : > { %5526 = verf.f32 %v1630_v42  ;;  %v1440_v61 = vmul.f32 0.70710677, %v1376_v48  ;;  %v1632_v62 = vmul.f32 0.70710677, %v1568_v53  ;;  %v1569_v1 = vadd.f32 %v6172_v16, %v1230_v54 }
 0x1a0   : > { %5528 = verf.f32 %v1439_v52  ;;  %v6193_v2 = vadd.f32 %v6176_v17, %v1119_v55  ;;  %v6195_v6 = vmul.f32 0.5, %v1375_v43  ;;  %v1441_v9 = vmul.f32 0.70710677, %v1377_v63 }
 0x1a1   : > { %5530 = verf.f32 %v1631_v58  ;;  %v6198_v10 = vadd.f32 %v6176_v17, %v1232_v59  ;;  %v1599_v20 = vmul.f32 0.5, %v1567_v47  ;;  %v6200_v21 = vmul.f32 0.5, %v1376_v48 }
 0x1a2   : > { %v5513_v3 = vpop.eup %5512  ;;  %5532 = verf.f32 %v1440_v61  ;;  %v1633_v22 = vmul.f32 0.70710677, %v1569_v1  ;;  %v1442_v27 = vmul.f32 0.70710677, %v6193_v2  ;;  %v1600_v33 = vmul.f32 0.5, %v1568_v53 }
 0x1a3   : > { %v5515_v7 = vpop.eup %5514  ;;  %v1499_v8 = vadd.f32 1.0, %v5513_v3  ;;  %5534 = verf.f32 %v1632_v62  ;;  %v1123_v11 = vpop.f32.mrb[8].mxu0  ;;  %v1634_v38 = vmul.f32 0.70710677, %v6198_v10  ;;  %v1409_v53 = vmul.f32 0.5, %v1377_v63 }
 0x1a4   : > { %v1236_v14 = vpop.f32.mrb[8].mxu1  ;;  %v5517_v18 = vpop.eup %5516  ;;  %v1691_v19 = vadd.f32 1.0, %v5515_v7  ;;  %5536 = verf.f32 %v1441_v9  ;;  %v1379_v44 = vadd.f32 %v6172_v16, %v1123_v11  ;;  %v1601_v58 = vmul.f32 0.5, %v1569_v1 }
 0x1a5   : > { %v1125_v23 = vpop.f32.mrb[9].mxu0  ;;  %v5519_v24 = vpop.eup %5518  ;;  %v1531_v25 = vmul.f32 %v1499_v8, %v1403_v41  ;;  %v1500_v26 = vadd.f32 1.0, %v5517_v18  ;;  %5538 = verf.f32 %v1633_v22  ;;  %v1571_v48 = vadd.f32 %v6172_v16, %v1236_v14 }
 0x1a6   : > { %v6203_v29 = vpop.f32.mrb[9].mxu1  ;;  %v6205_v28 = vpop.f32.mrb[10].mxu0  ;;  %v1723_v31 = vmul.f32 %v1691_v19, %v1595_v46  ;;  %v1692_v32 = vadd.f32 1.0, %v5519_v24  ;;  %5540 = verf.f32 %v1442_v27  ;;  %v1443_v59 = vmul.f32 0.70710677, %v1379_v44 }
 0x1a7   : > { %v5521_v30 = vpop.eup %5520  ;;  %v6207_v34 = vpop.f32.mrb[10].mxu1  ;;  %v6211_v0 = vmul.f32 %v1500_v26, %v1404_v51  ;;  %5542 = verf.f32 %v1634_v38  ;;  %v1635_v9 = vmul.f32 0.70710677, %v1571_v48  ;;  %v1380_v1 = vadd.f32 %v6176_v17, %v1125_v23 }
 0x1a8   : > { %v6209_v35 = vpop.f32.mrb[11].mxu0  ;;  %v5523_v36 = vpop.eup %5522  ;;  %v1501_v37 = vadd.f32 1.0, %v5521_v30  ;;  %v1755_v41 = vmax.f32 %v1531_v25, %v1723_v31  ;;  %v6216_v42 = vmul.f32 %v1692_v32, %v1596_v56  ;;  %5544 = verf.f32 %v1443_v59 }
 0x1a9   : > { %7021 = vst [vmem:[#allocation9_spill] sm:$0xff] %v6211_v0  ;;  %v6214_v39 = vpop.f32.mrb[11].mxu1  ;;  %v5525_v40 = vpop.eup %5524  ;;  %v1693_v43 = vadd.f32 1.0, %v5523_v36  ;;  %v1410_v23 = vmul.f32 0.5, %v6193_v2  ;;  %5546 = verf.f32 %v1635_v9  ;;  %v1444_v31 = vmul.f32 0.70710677, %v1380_v1 }
 0x1aa   : > { %7022 = vst [vmem:[#allocation10_spill] sm:$0xff] %v6216_v42  ;;  %v5527_v45 = vpop.eup %5526  ;;  %v1533_v46 = vmul.f32 %v1501_v37, %v1405_v57  ;;  %v1502_v47 = vadd.f32 1.0, %v5525_v40  ;;  %v1603_v59 = vmul.f32 0.5, %v1571_v48  ;;  %v1412_v48 = vmul.f32 0.5, %v1380_v1 }
 0x1ab   : > { %v5529_v49 = vpop.eup %5528  ;;  %v1725_v51 = vmul.f32 %v1693_v43, %v1597_v60  ;;  %v1694_v52 = vadd.f32 1.0, %v5527_v45  ;;  %v1133_v61 = vpop.f32.mrb[12].mxu0  ;;  %5548 = verf.f32 %v1444_v31  ;;  %v1381_v43 = vadd.f32 %v6172_v16, %v6205_v28 }
 0x1ac   : > { %v5531_v54 = vpop.eup %5530  ;;  %v6222_v55 = vmul.f32 %v1502_v47, %v1406_v4  ;;  %v1503_v56 = vadd.f32 1.0, %v5529_v49  ;;  %v6224_v62 = vpop.f32.mrb[12].mxu1 }
 0x1ad   : > { %v5533_v57 = vpop.eup %5532  ;;  %v1757_v3 = vmax.f32 %v1533_v46, %v1725_v51  ;;  %v6226_v7 = vmul.f32 %v1694_v52, %v1598_v5  ;;  %v1695_v8 = vadd.f32 1.0, %v5531_v54  ;;  %v6228_v11 = vpop.f32.mrb[13].mxu0  ;;  %v1411_v51 = vmul.f32 0.5, %v1379_v44 }
 0x1ae   : > { %7023 = vst [vmem:[#allocation11_spill] sm:$0xff] %v6222_v55  ;;  %v6230_v60 = vpop.f32.mrb[13].mxu1  ;;  %v5535_v63 = vpop.eup %5534  ;;  %v1535_v4 = vmul.f32 %v1503_v56, %v6195_v6  ;;  %v1504_v14 = vadd.f32 1.0, %v5533_v57  ;;  %v1445_v52 = vmul.f32 0.70710677, %v1381_v43  ;;  %v1574_v44 = vadd.f32 %v6176_v17, %v6214_v39 }
 0x1af   : > { %7024 = vst [vmem:[#allocation12_spill] sm:$0xff] %v6226_v7  ;;  %v6234_v18 = vpop.f32.mrb[14].mxu0  ;;  %v6236_v19 = vpop.f32.mrb[14].mxu1  ;;  %v1787_v22 = vmax.f32 %v1755_v41, %v1757_v3  ;;  %v1727_v24 = vmul.f32 %v1695_v8, %v1599_v20  ;;  %v1696_v25 = vadd.f32 1.0, %v5535_v63  ;;  %v1572_v20 = vadd.f32 %v6176_v17, %v6203_v29 }
 0x1b0   : > { %v6240_v26 = vpop.f32.mrb[15].mxu0  ;;  %v6242_v27 = vpop.f32.mrb[15].mxu1  ;;  %v6245_v6 = vmul.f32 %v1504_v14, %v6200_v21  ;;  %v1573_v21 = vadd.f32 %v6172_v16, %v6207_v34  ;;  %v1383_v63 = vadd.f32 %v6172_v16, %v1133_v61  ;;  %v1575_v39 = vadd.f32 %v6172_v16, %v6224_v62 }
 0x1b1   : > { %v5537_v30 = vpop.eup %5536  ;;  %v1759_v36 = vmax.f32 %v1535_v4, %v1727_v24  ;;  %v6248_v37 = vmul.f32 %v1696_v25, %v1600_v33  ;;  %v1602_v33 = vmul.f32 0.5, %v6198_v10  ;;  %v1636_v29 = vmul.f32 0.70710677, %v1572_v20 }
 0x1b2   : > { %v5539_v32 = vpop.eup %5538  ;;  %v1505_v38 = vadd.f32 1.0, %v5537_v30  ;;  %v1637_v57 = vmul.f32 0.70710677, %v1573_v21  ;;  %v1382_v10 = vadd.f32 %v6176_v17, %v6209_v35  ;;  %v1604_v31 = vmul.f32 0.5, %v1572_v20 }
 0x1b3   : > { %v5541_v40 = vpop.eup %5540  ;;  %v1697_v41 = vadd.f32 1.0, %v5539_v32  ;;  %v6259_v54 = vpop.f32.mrb[16].mxu0  ;;  %5550 = verf.f32 %v1636_v29  ;;  %v1638_v61 = vmul.f32 0.70710677, %v1574_v44  ;;  %v1576_v20 = vadd.f32 %v6176_v17, %v6230_v60 }
 0x1b4   : > { %v1537_v45 = vmul.f32 %v1505_v38, %v1409_v53  ;;  %v1506_v46 = vadd.f32 1.0, %v5541_v40  ;;  %v5543_v47 = vpop.eup %5542  ;;  %v6263_v34 = vpop.f32.mrb[16].mxu1  ;;  %5552 = verf.f32 %v1445_v52  ;;  %v1446_v35 = vmul.f32 0.70710677, %v1382_v10 }
 0x1b5   : > { %v1729_v49 = vmul.f32 %v1697_v41, %v1601_v58  ;;  %v1698_v28 = vadd.f32 1.0, %v5543_v47  ;;  %v6265_v3 = vpop.f32.mrb[17].mxu0  ;;  %v6271_v58 = vpop.f32.mrb[17].mxu1  ;;  %5554 = verf.f32 %v1637_v57  ;;  %v1413_v40 = vmul.f32 0.5, %v1381_v43 }
 0x1b6   : > { %v6261_v56 = vmul.f32 %v1506_v46, %v1410_v23  ;;  %v6273_v8 = vpop.f32.mrb[18].mxu0  ;;  %v6278_v4 = vpop.f32.mrb[18].mxu1  ;;  %5556 = verf.f32 %v1446_v35  ;;  %v1605_v46 = vmul.f32 0.5, %v1573_v21  ;;  %v1384_v47 = vadd.f32 %v6176_v17, %v6228_v11 }
 0x1b7   : > { %v1761_v53 = vmax.f32 %v1537_v45, %v1729_v49  ;;  %v6275_v9 = vmul.f32 %v1698_v28, %v1602_v33  ;;  %v6280_v14 = vpop.f32.mrb[19].mxu0  ;;  %v5545_v24 = vpop.eup %5544  ;;  %5558 = verf.f32 %v1638_v61  ;;  %v1639_v33 = vmul.f32 0.70710677, %v1575_v39 }
 0x1b8   : > { %v6286_v30 = vpop.f32.mrb[19].mxu1  ;;  %v1507_v23 = vadd.f32 1.0, %v5545_v24  ;;  %v5547_v32 = vpop.eup %5546  ;;  %v1385_v21 = vadd.f32 %v6172_v16, %v6234_v18  ;;  %v1577_v29 = vadd.f32 %v6172_v16, %v6236_v19  ;;  %v1414_v11 = vmul.f32 0.5, %v1382_v10 }
 0x1b9   : > { %v6282_v25 = vmax.f32 %v1759_v36, %v1761_v53  ;;  %v1447_v36 = vmul.f32 0.70710677, %v1383_v63  ;;  %v1699_v45 = vadd.f32 1.0, %v5547_v32  ;;  %v5549_v62 = vpop.eup %5548  ;;  %v1606_v57 = vmul.f32 0.5, %v1574_v44 }
 0x1ba   : > { %v6293_v41 = vmul.f32 %v1507_v23, %v1411_v51  ;;  %v1508_v51 = vadd.f32 1.0, %v5549_v62  ;;  %v1448_v60 = vmul.f32 0.70710677, %v1384_v47  ;;  %v1415_v35 = vmul.f32 0.5, %v1383_v63 }
 0x1bb   : > { %v6291_v38 = vpack.c.bf16 %v6282_v25, %v1787_v22  ;;  %5560 = verf.f32 %v1447_v36  ;;  %v6299_v49 = vpop.f32.mrb[20].mxu0  ;;  %v6301_v22 = vpop.f32.mrb[20].mxu1  ;;  %v6303_v43 = vmul.f32 %v1699_v45, %v1603_v59  ;;  %v6319_v18 = vmul.f32 0.5, %v1575_v39 }
 0x1bc   : > { %v6309_v52 = vpop.f32.mrb[21].mxu0  ;;  %v6311_v28 = vpop.f32.mrb[21].mxu1  ;;  %5562 = verf.f32 %v1639_v33  ;;  %v1640_v23 = vmul.f32 0.70710677, %v1576_v20  ;;  %v6325_v10 = vmul.f32 %v1508_v51, %v1412_v48  ;;  %v1449_v44 = vmul.f32 0.70710677, %v1385_v21 }
 0x1bd   : > { %7025 = vst [vmem:[#allocation13_spill] sm:$0xff] %v6291_v38  ;;  %v6313_v53 = vpop.f32.mrb[22].mxu0  ;;  %v6315_v24 = vpop.f32.mrb[22].mxu1  ;;  %v1763_v59 = vmax.f32 %v6293_v41, %v6303_v43  ;;  %5564 = verf.f32 %v1448_v60  ;;  %v1641_v36 = vmul.f32 0.70710677, %v1577_v29  ;;  %v1386_v41 = vadd.f32 %v6176_v17, %v6240_v26 }
 0x1be   : > { %v6321_v19 = vpop.f32.mrb[23].mxu0  ;;  %v6323_v61 = vpop.f32.mrb[23].mxu1  ;;  %5566 = verf.f32 %v1640_v23  ;;  %v1578_v63 = vadd.f32 %v6176_v17, %v6242_v27  ;;  %v1416_v43 = vmul.f32 0.5, %v1384_v47  ;;  %v6333_v48 = vadd.f32 %v6172_v16, %v6259_v54 }
 0x1bf   : > { %v5551_v32 = vpop.eup %5550  ;;  %5568 = verf.f32 %v1449_v44  ;;  %v1608_v15 = vmul.f32 0.5, %v1576_v20  ;;  %v1450_v13 = vmul.f32 0.70710677, %v1386_v41  ;;  %v6339_v27 = vadd.f32 %v6172_v16, %v6263_v34 }
 0x1c0   : > { %v5553_v45 = vpop.eup %5552  ;;  %v1700_v62 = vadd.f32 1.0, %v5551_v32  ;;  %5570 = verf.f32 %v1641_v36  ;;  %v1642_v26 = vmul.f32 0.70710677, %v1578_v63  ;;  %v1451_v34 = vmul.f32 0.70710677, %v6333_v48 }
 0x1c1   : > { %v5555_v39 = vpop.eup %5554  ;;  %v1509_v33 = vadd.f32 1.0, %v5553_v45  ;;  %5572 = verf.f32 %v1450_v13  ;;  %v1643_v13 = vmul.f32 0.70710677, %v6339_v27  ;;  %v1391_v7 = vadd.f32 %v6172_v16, %v6299_v49 }
 0x1c2   : > { %v6335_v51 = vmul.f32 %v1700_v62, %v1604_v31  ;;  %v1701_v60 = vadd.f32 1.0, %v5555_v39  ;;  %v5557_v23 = vpop.eup %5556  ;;  %v1417_v62 = vmul.f32 0.5, %v1385_v21  ;;  %5574 = verf.f32 %v1642_v26 }
 0x1c3   : > { %v1541_v32 = vmul.f32 %v1509_v33, %v1413_v40  ;;  %v6341_v45 = vpop.f32.mrb[24].mxu0  ;;  %v5559_v47 = vpop.eup %5558  ;;  %v1510_v31 = vadd.f32 1.0, %v5557_v23  ;;  %v1609_v33 = vmul.f32 0.5, %v1577_v29  ;;  %5576 = verf.f32 %v1451_v34 }
 0x1c4   : > { %v1733_v44 = vmul.f32 %v1701_v60, %v1605_v46  ;;  %v6345_v39 = vpop.f32.mrb[24].mxu1  ;;  %v6347_v20 = vpop.f32.mrb[25].mxu0  ;;  %v1702_v36 = vadd.f32 1.0, %v5559_v47  ;;  %v1388_v29 = vadd.f32 %v6176_v17, %v6265_v3  ;;  %5578 = verf.f32 %v1643_v13 }
 0x1c5   : > { %v5561_v40 = vpop.eup %5560  ;;  %v6350_v50 = vpop.f32.mrb[25].mxu1  ;;  %v6354_v1 = vmul.f32 %v1510_v31, %v1414_v11  ;;  %v1455_v49 = vmul.f32 0.70710677, %v1391_v7 }
 0x1c6   : > { %v6352_v5 = vpop.f32.mrb[26].mxu0  ;;  %v1765_v2 = vmax.f32 %v1541_v32, %v1733_v44  ;;  %v1511_v46 = vadd.f32 1.0, %v5561_v40  ;;  %v6356_v21 = vpop.f32.mrb[26].mxu1  ;;  %v6360_v54 = vmul.f32 %v1702_v36, %v1606_v57  ;;  %v1580_v44 = vadd.f32 %v6176_v17, %v6271_v58 }
 0x1c7   : > { %v6358_v60 = vpop.f32.mrb[27].mxu0  ;;  %v5563_v23 = vpop.eup %5562  ;;  %v1418_v40 = vmul.f32 0.5, %v1386_v41  ;;  %v1452_v36 = vmul.f32 0.70710677, %v1388_v29  ;;  %v1389_v57 = vadd.f32 %v6172_v16, %v6273_v8 }
 0x1c8   : > { %v6365_v47 = vpop.f32.mrb[27].mxu1  ;;  %v6367_v32 = vmax.f32 %v1763_v59, %v1765_v2  ;;  %v6369_v11 = vmul.f32 %v1511_v46, %v1415_v35  ;;  %v1703_v26 = vadd.f32 1.0, %v5563_v23  ;;  %v5565_v31 = vpop.eup %5564  ;;  %v1610_v35 = vmul.f32 0.5, %v1578_v63 }
 0x1c9   : > { %v5567_v34 = vpop.eup %5566  ;;  %v1512_v59 = vadd.f32 1.0, %v5565_v31  ;;  %5580 = verf.f32 %v1452_v36  ;;  %v1644_v58 = vmul.f32 0.70710677, %v1580_v44  ;;  %v1581_v63 = vadd.f32 %v6172_v16, %v6278_v4 }
 0x1ca   : > { %7026 = vst [vmem:[#allocation14_spill] sm:$0xff] %v6367_v32  ;;  %7027 = vst [vmem:[#allocation15_spill] sm:$0xff] %v6369_v11  ;;  %v6377_v3 = vpack.c.bf16 %v6367_v32, %v6282_v25  ;;  %v6380_v2 = vmul.f32 %v1703_v26, %v6319_v18  ;;  %v5569_v46 = vpop.eup %5568  ;;  %v1704_v23 = vadd.f32 1.0, %v5567_v34  ;;  %v1419_v34 = vmul.f32 0.5, %v6333_v48 }
 0x1cb   : > { %v6384_v41 = vpop.f32.mrb[28].mxu0  ;;  %v6386_v13 = vpop.f32.mrb[28].mxu1  ;;  %v6390_v38 = vmul.f32 %v1512_v59, %v1416_v43  ;;  %v1513_v18 = vadd.f32 1.0, %v5569_v46  ;;  %5582 = verf.f32 %v1644_v58  ;;  %v1611_v59 = vmul.f32 0.5, %v6339_v27 }
 0x1cc   : > { %7028 = vst [vmem:[#allocation16_spill] sm:$0xff] %v6380_v2  ;;  %v5571_v12 = vpop.eup %5570  ;;  %v6394_v26 = vpop.f32.mrb[29].mxu0  ;;  %v6398_v36 = vmul.f32 %v1704_v23, %v1608_v15  ;;  %v1453_v46 = vmul.f32 0.70710677, %v1389_v57  ;;  %v1645_v4 = vmul.f32 0.70710677, %v1581_v63  ;;  %v1390_v48 = vadd.f32 %v6176_v17, %v6280_v14 }
 0x1cd   : > { %7029 = vst [vmem:[#allocation17_spill] sm:$0xff] %v6390_v38  ;;  %v6396_v31 = vpop.f32.mrb[29].mxu1  ;;  %v1705_v8 = vadd.f32 1.0, %v5571_v12  ;;  %v6401_v32 = vpop.f32.mrb[30].mxu0  ;;  %v6405_v43 = vmul.f32 %v1513_v18, %v1417_v62  ;;  %v1582_v23 = vadd.f32 %v6176_v17, %v6286_v30  ;;  %v1420_v18 = vmul.f32 0.5, %v1388_v29 }
 0x1ce   : > { %7030 = vst [vmem:[#allocation18_spill] sm:$0xff] %v6398_v36  ;;  %v6403_v42 = vpop.f32.mrb[30].mxu1  ;;  %v6408_v25 = vpop.f32.mrb[31].mxu0  ;;  %5584 = verf.f32 %v1453_v46  ;;  %v1583_v14 = vadd.f32 %v6172_v16, %v6301_v22  ;;  %v1612_v2 = vmul.f32 0.5, %v1580_v44  ;;  %v1454_v11 = vmul.f32 0.70710677, %v1390_v48 }
 0x1cf   : > { %v5573_v0 = vpop.eup %5572  ;;  %v6412_v12 = vmul.f32 %v1705_v8, %v1609_v33  ;;  %v6418_v62 = vpop.f32.mrb[31].mxu1  ;;  %5586 = verf.f32 %v1645_v4  ;;  %v1421_v46 = vmul.f32 0.5, %v1389_v57  ;;  %v1646_v36 = vmul.f32 0.70710677, %v1582_v23 }
 0x1d0   : > { %7031 = vst [vmem:[#allocation19_spill] sm:$0xff] %v6418_v62  ;;  %v5575_v58 = vpop.eup %5574  ;;  %v1514_v27 = vadd.f32 1.0, %v5573_v0  ;;  %v1613_v33 = vmul.f32 0.5, %v1581_v63  ;;  %5588 = verf.f32 %v1454_v11  ;;  %v1584_v57 = vadd.f32 %v6176_v17, %v6311_v28 }
 0x1d1   : > { %v5577_v55 = vpop.eup %5576  ;;  %v1706_v8 = vadd.f32 1.0, %v5575_v58  ;;  %5590 = verf.f32 %v1646_v36  ;;  %v1422_v58 = vmul.f32 0.5, %v1390_v48  ;;  %v1393_v63 = vadd.f32 %v6172_v16, %v6313_v53 }
 0x1d2   : > { %v6426_v15 = vmul.f32 %v1514_v27, %v1418_v40  ;;  %v1515_v30 = vadd.f32 1.0, %v5577_v55  ;;  %v5579_v0 = vpop.eup %5578  ;;  %v1647_v40 = vmul.f32 0.70710677, %v1583_v14  ;;  %v1392_v55 = vadd.f32 %v6176_v17, %v6309_v52 }
 0x1d3   : > { %v6428_v29 = vmul.f32 %v1706_v8, %v1610_v35  ;;  %v1707_v62 = vadd.f32 1.0, %v5579_v0  ;;  %v5581_v4 = vpop.eup %5580  ;;  %5592 = verf.f32 %v1455_v49  ;;  %v1648_v8 = vmul.f32 0.70710677, %v1584_v57 }
 0x1d4   : > { %v6430_v38 = vmul.f32 %v1515_v30, %v1419_v34  ;;  %v1516_v35 = vadd.f32 1.0, %v5581_v4  ;;  %5594 = verf.f32 %v1647_v40  ;;  %v1456_v11 = vmul.f32 0.70710677, %v1392_v55 }
 0x1d5   : > { %v1770_v22 = vmax.f32 %v6426_v15, %v6428_v29  ;;  %v6436_v44 = vmul.f32 %v1707_v62, %v1611_v59  ;;  %v5583_v34 = vpop.eup %5582  ;;  %v1614_v59 = vmul.f32 0.5, %v1582_v23  ;;  %v1423_v62 = vmul.f32 0.5, %v1391_v7  ;;  %v7041_v29 = vld [vmem:[#allocation15_spill] sm:$0xff] }
 0x1d6   : > { %v6444_v27 = vmul.f32 %v1516_v35, %v1420_v18  ;;  %v1708_v52 = vadd.f32 1.0, %v5583_v34  ;;  %5596 = verf.f32 %v1456_v11  ;;  %v1457_v30 = vmul.f32 0.70710677, %v1393_v63 }
 0x1d7   : > { %v1585_v48 = vadd.f32 %v6172_v16, %v6315_v24  ;;  %v1394_v53 = vadd.f32 %v6176_v17, %v6321_v19  ;;  %v6454_v49 = vadd.f32 %v6176_v17, %v6323_v61  ;;  %5598 = verf.f32 %v1648_v8 }
 0x1d8   : > { %v5585_v0 = vpop.eup %5584  ;;  %v6446_v28 = vmul.f32 %v1708_v52, %v1612_v2  ;;  %v7032_v7 = vmax.f32 %v6261_v56, %v6275_v9  ;;  %v7033_v2 = vmax.f32 %v6245_v6, %v6248_v37  ;;  %v7034_v24 = vmax.f32 %v6354_v1, %v6360_v54  ;;  %v5264_v56 = vld [vmem:[#allocation2] ss:$16 sps:$4 sm:$0xff]   ;;  %v5267_v54 = vld [vmem:[#allocation2 + $0x8] ss:$16 sps:$4 sm:$0xff]  }
 0x1d9   : > { %v5587_v18 = vpop.eup %5586  ;;  %v1517_v4 = vadd.f32 1.0, %v5585_v0  ;;  %v7035_v19 = vmax.f32 %v6325_v10, %v6335_v51  ;;  %v1615_v34 = vmul.f32 0.5, %v1583_v14  ;;  %5600 = verf.f32 %v1457_v30  ;;  %v5272_v30 = vld [vmem:[#allocation2 + $0x24] ss:$16 sps:$4 sm:$0xff]  }
 0x1da   : > { %v6462_v23 = vmax.f32 %v7033_v2, %v7032_v7  ;;  %v1772_v61 = vmax.f32 %v6444_v27, %v6446_v28  ;;  %v1709_v35 = vadd.f32 1.0, %v5587_v18  ;;  %v1424_v6 = vmul.f32 0.5, %v1392_v55  ;;  %v5589_v52 = vpop.eup %5588  ;;  %v5270_v2 = vld [vmem:[#allocation2 + $0x20] ss:$16 sps:$4 sm:$0xff]  }
 0x1db   : > { %v6470_v40 = vmax.f32 %v7035_v19, %v7034_v24  ;;  %v6474_v9 = vmul.f32 %v1517_v4, %v1421_v46  ;;  %v1649_v37 = vmul.f32 0.70710677, %v1585_v48  ;;  %v1458_v11 = vmul.f32 0.70710677, %v1394_v53  ;;  %v5591_v0 = vpop.eup %5590 }
 0x1dc   : > { %v6476_v8 = vmul.f32 %v1709_v35, %v1613_v33  ;;  %v6478_v1 = vmul.f32 0.5, %v1584_v57  ;;  %v1650_v10 = vmul.f32 0.70710677, %v6454_v49  ;;  %v1518_v14 = vadd.f32 1.0, %v5589_v52  ;;  %v5275_v33 = vld [vmem:[#allocation2 + $0x2c] ss:$16 sps:$4 sm:$0xff]  }
 0x1dd   : > { %v4781_v51 = vpack.c.bf16 %v6470_v40, %v6462_v23  ;;  %5602 = verf.f32 %v1649_v37  ;;  %v1395_v46 = vadd.f32 %v6172_v16, %v6341_v45  ;;  %v1587_v55 = vadd.f32 %v6172_v16, %v6345_v39  ;;  %v5593_v18 = vpop.eup %5592  ;;  %v5273_v35 = vld [vmem:[#allocation2 + $0x28] ss:$16 sps:$4 sm:$0xff]   ;;  %v5278_v37 = vld [vmem:[#allocation2 + $0x44] ss:$16 sps:$4 sm:$0xff]  }
 0x1de   : > { %v1773_v57 = vmax.f32 %v6474_v9, %v6476_v8  ;;  %v1710_v4 = vadd.f32 1.0, %v5591_v0  ;;  %5604 = verf.f32 %v1458_v11  ;;  %v6491_v7 = vadd.f32 %v6176_v17, %v6347_v20  ;;  %v5595_v24 = vpop.eup %5594  ;;  %v5281_v0 = vld [vmem:[#allocation2 + $0x4c] ss:$16 sps:$4 sm:$0xff]  }
 0x1df   : > { %2340 = vmatprep.mubr.bf16.mxu0 %v4781_v51  ;;  %2403 = vmatprep.mubr.bf16.mxu1 %v4781_v51  ;;  %v6493_v45 = vmul.f32 %v1518_v14, %v1422_v58  ;;  %v1519_v19 = vadd.f32 1.0, %v5593_v18  ;;  %v1425_v39 = vmul.f32 0.5, %v1393_v63  ;;  %5606 = verf.f32 %v1650_v10 }
 0x1e0   : > { %2341 = vmatmul.mubr.bf16.vlgmr.msra.gmra.mrb[32].mxu0 %v6377_v3  ;;  %2404 = vmatmul.mubr.bf16.vlgmr.msra.gmra.mrb[32].mxu1 %v6377_v3  ;;  %v6497_v11 = vmul.f32 %v1710_v4, %v1614_v59  ;;  %v1711_v52 = vadd.f32 1.0, %v5595_v24  ;;  %v6499_v51 = vmul.f32 0.5, %v1585_v48  ;;  %v1459_v20 = vmul.f32 0.70710677, %v1395_v46  ;;  %v5597_v58 = vpop.eup %5596 }
 0x1e1   : > { %2767 = vmatpush1.bf16.msra.mxu0 %v5264_v56  ;;  %2830 = vmatpush1.bf16.msra.mxu1 %v5267_v54  ;;  %v6501_v14 = vmul.f32 %v1519_v19, %v1423_v62  ;;  %v1426_v63 = vmul.f32 0.5, %v1394_v53  ;;  %v1651_v10 = vmul.f32 0.70710677, %v1587_v55  ;;  %v1460_v18 = vmul.f32 0.70710677, %v6491_v7  ;;  %v5599_v56 = vpop.eup %5598 }
 0x1e2   : > { %2768 = vmatprep.subr.bf16.mxu0 %v5272_v30  ;;  %2831 = vmatprep.subr.bf16.mxu1 %v5275_v33  ;;  %v1774_v3 = vmax.f32 %v6493_v45, %v6497_v11  ;;  %v6506_v59 = vmul.f32 %v1711_v52, %v1615_v34  ;;  %v1520_v48 = vadd.f32 1.0, %v5597_v58  ;;  %5608 = verf.f32 %v1459_v20  ;;  %v5276_v30 = vld [vmem:[#allocation2 + $0x40] ss:$16 sps:$4 sm:$0xff]   ;;  %v5279_v33 = vld [vmem:[#allocation2 + $0x48] ss:$16 sps:$4 sm:$0xff]  }
 0x1e3   : > { %5610 = verf.f32 %v1651_v10  ;;  %v1588_v54 = vadd.f32 %v6176_v17, %v6350_v50  ;;  %v1397_v62 = vadd.f32 %v6172_v16, %v6352_v5  ;;  %v6514_v53 = vadd.f32 %v6172_v16, %v6356_v21  ;;  %v5601_v4 = vpop.eup %5600  ;;  %v5284_v50 = vld [vmem:[#allocation2 + $0x64] ss:$16 sps:$4 sm:$0xff]   ;;  %v5287_v52 = vld [vmem:[#allocation2 + $0x6c] ss:$16 sps:$4 sm:$0xff]  }
 0x1e4   : > { %v6518_v24 = vmul.f32 %v1520_v48, %v1424_v6  ;;  %v1712_v19 = vadd.f32 1.0, %v5599_v56  ;;  %5612 = verf.f32 %v1460_v18  ;;  %v1521_v20 = vadd.f32 1.0, %v5601_v4 }
 0x1e5   : > { %2769 = vmatpush1.bf16.msra.mxu0 %v5270_v2  ;;  %2832 = vmatpush1.bf16.msra.mxu1 %v5273_v35  ;;  %v1618_v5 = vmul.f32 0.5, %v6454_v49  ;;  %v1427_v58 = vmul.f32 0.5, %v1395_v46  ;;  %v1652_v21 = vmul.f32 0.70710677, %v1588_v54  ;;  %v1619_v36 = vmul.f32 0.5, %v1587_v55 }
 0x1e6   : > { %2770 = vmatprep.subr.bf16.mxu0 %v5278_v37  ;;  %2833 = vmatprep.subr.bf16.mxu1 %v5281_v0  ;;  %v6522_v10 = vmul.f32 %v1712_v19, %v6478_v1  ;;  %v1461_v34 = vmul.f32 0.70710677, %v1397_v62  ;;  %v1653_v6 = vmul.f32 0.70710677, %v6514_v53  ;;  %v6525_v18 = vmul.f32 %v1521_v20, %v1425_v39  ;;  %v5282_v46 = vld [vmem:[#allocation2 + $0x60] ss:$16 sps:$4 sm:$0xff]  }
 0x1e7   : > { %v5603_v48 = vpop.eup %5602  ;;  %5614 = verf.f32 %v1652_v21  ;;  %v1398_v2 = vadd.f32 %v6176_v17, %v6358_v60  ;;  %v1590_v49 = vadd.f32 %v6176_v17, %v6365_v47  ;;  %v6535_v55 = vadd.f32 %v6172_v16, %v6384_v41  ;;  %v5285_v39 = vld [vmem:[#allocation2 + $0x68] ss:$16 sps:$4 sm:$0xff]   ;;  %v5290_v0 = vld [vmem:[#allocation2 + $0x84] ss:$16 sps:$4 sm:$0xff]   ;;  %v5293_v19 = vld [vmem:[#allocation2 + $0x8c] ss:$16 sps:$4 sm:$0xff]  }
 0x1e8   : > { %v5605_v35 = vpop.eup %5604  ;;  %v1713_v37 = vadd.f32 1.0, %v5603_v48  ;;  %5616 = verf.f32 %v1461_v34  ;;  %v1428_v4 = vmul.f32 0.5, %v6491_v7  ;;  %v6543_v41 = vmul.f32 0.5, %v1397_v62  ;;  %v5297_v7 = vld [vmem:[#allocation2 + $0xa8] ss:$16 sps:$4 sm:$0xff]  }
 0x1e9   : > { %2771 = vmatpush1.bf16.msra.mxu0 %v5276_v30  ;;  %2834 = vmatpush1.bf16.msra.mxu1 %v5279_v33  ;;  %v5607_v56 = vpop.eup %5606  ;;  %v1522_v60 = vadd.f32 1.0, %v5605_v35  ;;  %5618 = verf.f32 %v1653_v6  ;;  %v1462_v47 = vmul.f32 0.70710677, %v1398_v2  ;;  %v1620_v33 = vmul.f32 0.5, %v1588_v54  ;;  %v5288_v54 = vld [vmem:[#allocation2 + $0x80] ss:$16 sps:$4 sm:$0xff]  }
 0x1ea   : > { %2772 = vmatprep.subr.bf16.mxu0 %v5284_v50  ;;  %2835 = vmatprep.subr.bf16.mxu1 %v5287_v52  ;;  %v6539_v20 = vmul.f32 %v1713_v37, %v6499_v51  ;;  %v1714_v30 = vadd.f32 1.0, %v5607_v56  ;;  %v1654_v34 = vmul.f32 0.70710677, %v1590_v49  ;;  %v1463_v48 = vmul.f32 0.70710677, %v6535_v55 }
 0x1eb   : > { %v6541_v21 = vmul.f32 %v1522_v60, %v1426_v63  ;;  %5620 = verf.f32 %v1462_v47  ;;  %v1591_v51 = vadd.f32 %v6172_v16, %v6386_v13  ;;  %v5291_v63 = vld [vmem:[#allocation2 + $0x88] ss:$16 sps:$4 sm:$0xff]   ;;  %v1400_v6 = vadd.f32 %v6176_v17, %v6394_v26  ;;  %v5299_v56 = vld [vmem:[#allocation2 + $0xac] ss:$16 sps:$4 sm:$0xff]  }
 0x1ec   : > { %v5609_v35 = vpop.eup %5608  ;;  %v6548_v50 = vmul.f32 %v1714_v30, %v1618_v5  ;;  %5622 = verf.f32 %v1654_v34  ;;  %v6556_v37 = vadd.f32 %v6176_v17, %v6396_v31  ;;  %v5296_v5 = vld [vmem:[#allocation2 + $0xa4] ss:$16 sps:$4 sm:$0xff]   ;;  %v1430_v26 = vmul.f32 0.5, %v1398_v2  ;;  %v5305_v2 = vld [vmem:[#allocation2 + $0xcc] ss:$16 sps:$4 sm:$0xff]  }
 0x1ed   : > { %2773 = vmatpush1.bf16.msra.mxu0 %v5282_v46  ;;  %2836 = vmatpush1.bf16.msra.mxu1 %v5285_v39  ;;  %v5611_v52 = vpop.eup %5610  ;;  %v1523_v62 = vadd.f32 1.0, %v5609_v35  ;;  %5624 = verf.f32 %v1463_v48  ;;  %v1621_v39 = vmul.f32 0.5, %v6514_v53  ;;  %v1655_v47 = vmul.f32 0.70710677, %v1591_v51  ;;  %v5294_v35 = vld [vmem:[#allocation2 + $0xa0] ss:$16 sps:$4 sm:$0xff]  }
 0x1ee   : > { %2774 = vmatprep.subr.bf16.mxu0 %v5290_v0  ;;  %2837 = vmatprep.subr.bf16.mxu1 %v5293_v19  ;;  %v5613_v60 = vpop.eup %5612  ;;  %v1778_v13 = vmax.f32 %v6541_v21, %v6548_v50  ;;  %v1715_v46 = vadd.f32 1.0, %v5611_v52  ;;  %v1464_v48 = vmul.f32 0.70710677, %v1400_v6  ;;  %v1622_v0 = vmul.f32 0.5, %v1590_v49 }
 0x1ef   : > { %v6561_v30 = vmul.f32 %v1523_v62, %v1427_v58  ;;  %v1524_v34 = vadd.f32 1.0, %v5613_v60  ;;  %5626 = verf.f32 %v1655_v47  ;;  %v1656_v19 = vmul.f32 0.70710677, %v6556_v37 }
 0x1f0   : > { %v6563_v31 = vmul.f32 %v1715_v46, %v1619_v36  ;;  %5628 = verf.f32 %v1464_v48  ;;  %v6570_v53 = vadd.f32 %v6172_v16, %v6401_v32  ;;  %v6574_v58 = vadd.f32 %v6172_v16, %v6403_v42  ;;  %v5302_v36 = vld [vmem:[#allocation2 + $0xc4] ss:$16 sps:$4 sm:$0xff]   ;;  %v5300_v32 = vld [vmem:[#allocation2 + $0xc0] ss:$16 sps:$4 sm:$0xff]  }
 0x1f1   : > { %2775 = vmatpush1.bf16.msra.mxu0 %v5288_v54  ;;  %2838 = vmatpush1.bf16.msra.mxu1 %v5291_v63  ;;  %v5615_v1 = vpop.eup %5614  ;;  %v6566_v52 = vmul.f32 %v1524_v34, %v1428_v4  ;;  %5630 = verf.f32 %v1656_v19  ;;  %v6580_v4 = vadd.f32 %v6176_v17, %v6408_v25  ;;  %v1431_v16 = vmul.f32 0.5, %v6535_v55  ;;  %v5303_v25 = vld [vmem:[#allocation2 + $0xc8] ss:$16 sps:$4 sm:$0xff]  }
 0x1f2   : > { %2776 = vmatprep.subr.bf16.mxu0 %v5296_v5  ;;  %2839 = vmatprep.subr.bf16.mxu1 %v5299_v56  ;;  %v5617_v49 = vpop.eup %5616  ;;  %v1779_v54 = vmax.f32 %v6561_v30, %v6563_v31  ;;  %v1716_v63 = vadd.f32 1.0, %v5615_v1  ;;  %v6583_v42 = vmul.f32 0.5, %v1591_v51  ;;  %v1465_v5 = vmul.f32 0.70710677, %v6570_v53  ;;  %v7036_v51 = vld [vmem:[#allocation19_spill] sm:$0xff] }
 0x1f3   : > { %v5619_v62 = vpop.eup %5618  ;;  %v1525_v60 = vadd.f32 1.0, %v5617_v49  ;;  %v6588_v47 = vmul.f32 0.5, %v1400_v6  ;;  %v1657_v1 = vmul.f32 0.70710677, %v6574_v58  ;;  %v1466_v55 = vmul.f32 0.70710677, %v6580_v4 }
 0x1f4   : > { %v6586_v56 = vmul.f32 %v1716_v63, %v1620_v33  ;;  %v1717_v46 = vadd.f32 1.0, %v5619_v62  ;;  %5632 = verf.f32 %v1465_v5  ;;  %v6595_v48 = vadd.f32 %v6176_v17, %v7036_v51  ;;  %v5308_v33 = vld [vmem:[#allocation2 + $0xe4] ss:$16 sps:$4 sm:$0xff]   ;;  %v5311_v6 = vld [vmem:[#allocation2 + $0xec] ss:$16 sps:$4 sm:$0xff]  }
 0x1f5   : > { %2777 = vmatpush1.bf16.msra.mxu0 %v5294_v35  ;;  %2840 = vmatpush1.bf16.msra.mxu1 %v5297_v7  ;;  %v5621_v30 = vpop.eup %5620  ;;  %v1557_v34 = vmul.f32 %v1525_v60, %v6543_v41  ;;  %5634 = verf.f32 %v1657_v1  ;;  %v1624_v63 = vmul.f32 0.5, %v6556_v37  ;;  %v7038_v5 = vld [vmem:[#allocation18_spill] sm:$0xff]  ;;  %v1796_v37 = vmax.f32 %v1772_v61, %v1774_v3 }
 0x1f6   : > { %2778 = vmatprep.subr.bf16.mxu0 %v5302_v36  ;;  %2841 = vmatprep.subr.bf16.mxu1 %v5305_v2  ;;  %v5623_v31 = vpop.eup %5622  ;;  %v1780_v35 = vmax.f32 %v6566_v52, %v6586_v56  ;;  %v1749_v7 = vmul.f32 %v1717_v46, %v1621_v39  ;;  %v1526_v19 = vadd.f32 1.0, %v5621_v30  ;;  %5636 = verf.f32 %v1466_v55  ;;  %v7037_v2 = vld [vmem:[#allocation17_spill] sm:$0xff]  ;;  %v5306_v39 = vld [vmem:[#allocation2 + $0xe0] ss:$16 sps:$4 sm:$0xff]  }
 0x1f7   : > { %v5625_v49 = vpop.eup %5624  ;;  %v1718_v41 = vadd.f32 1.0, %v5623_v31  ;;  %v1658_v62 = vmul.f32 0.70710677, %v6595_v48  ;;  %v7039_v51 = vmax.f32 %v7037_v2, %v7038_v5  ;;  %v5309_v56 = vld [vmem:[#allocation2 + $0xe8] ss:$16 sps:$4 sm:$0xff]   ;;  %v7040_v15 = vmax.f32 %v6405_v43, %v6412_v12 }
 0x1f8   : > { %v1781_v17 = vmax.f32 %v1557_v34, %v1749_v7  ;;  %v1558_v60 = vmul.f32 %v1526_v19, %v1430_v26  ;;  %v1527_v36 = vadd.f32 1.0, %v5625_v49  ;;  %v7042_v26 = vld [vmem:[#allocation16_spill] sm:$0xff]  ;;  %v7044_v45 = vmax.f32 %v6430_v38, %v6436_v44  ;;  %v5317_v44 = vld [vmem:[#allocation2 + $0x10c] ss:$16 sps:$4 sm:$0xff]   ;;  %v5321_v5 = vld [vmem:[#allocation2 + $0x128] ss:$16 sps:$4 sm:$0xff]  }
 0x1f9   : > { %v1794_v52 = vmax.f32 %v7039_v51, %v1770_v22  ;;  %2779 = vmatpush1.bf16.msra.mxu0 %v5300_v32  ;;  %2842 = vmatpush1.bf16.msra.mxu1 %v5303_v25  ;;  %v1750_v46 = vmul.f32 %v1718_v41, %v1622_v0  ;;  %5638 = verf.f32 %v1658_v62  ;;  %v7043_v1 = vmax.f32 %v7041_v29, %v7042_v26  ;;  %v5627_v32 = vpop.eup %5626  ;;  %v5314_v38 = vld [vmem:[#allocation2 + $0x104] ss:$16 sps:$4 sm:$0xff]   ;;  %v5323_v41 = vld [vmem:[#allocation2 + $0x12c] ss:$16 sps:$4 sm:$0xff]  }
 0x1fa   : > { %2780 = vmatprep.subr.bf16.mxu0 %v5308_v33  ;;  %2843 = vmatprep.subr.bf16.mxu1 %v5311_v6  ;;  %v6619_v25 = vmul.f32 %v1527_v36, %v1431_v16  ;;  %v1795_v27 = vmax.f32 %v7044_v45, %v1773_v57  ;;  %v7045_v43 = vmax.f32 %v6518_v24, %v6522_v10  ;;  %v5629_v3 = vpop.eup %5628  ;;  %v1719_v8 = vadd.f32 1.0, %v5627_v32  ;;  %v5312_v24 = vld [vmem:[#allocation2 + $0x100] ss:$16 sps:$4 sm:$0xff]   ;;  %v5315_v10 = vld [vmem:[#allocation2 + $0x108] ss:$16 sps:$4 sm:$0xff]  }
 0x1fb   : > { %v1793_v22 = vmax.f32 %v7043_v1, %v7040_v15  ;;  %v7046_v28 = vmax.f32 %v6525_v18, %v6539_v20  ;;  %v7047_v61 = vmax.f32 %v6501_v14, %v6506_v59  ;;  %v1782_v9 = vmax.f32 %v1558_v60, %v1750_v46  ;;  %v5631_v21 = vpop.eup %5630  ;;  %v7048_v18 = vld [vmem:[#allocation11_spill] sm:$0xff]  ;;  %v7049_v20 = vld [vmem:[#allocation12_spill] sm:$0xff]  ;;  %v7051_v14 = vld [vmem:[#allocation9_spill] sm:$0xff] }
 0x1fc   : > { %v1798_v12 = vmax.f32 %v7045_v43, %v1778_v13  ;;  %v4783_v0 = vpack.c.bf16 %v1796_v37, %v1794_v52  ;;  %v6639_v57 = vmax.f32 %v1779_v54, %v1781_v17  ;;  %v1528_v50 = vadd.f32 1.0, %v5629_v3  ;;  %v7052_v59 = vld [vmem:[#allocation10_spill] sm:$0xff]  ;;  %v5329_v29 = vld [vmem:[#allocation2 + $0x14c] ss:$16 sps:$4 sm:$0xff]   ;;  %v5333_v3 = vld [vmem:[#allocation2 + $0x168] ss:$16 sps:$4 sm:$0xff]  }
 0x1fd   : > { %v1797_v11 = vmax.f32 %v7047_v61, %v7046_v28  ;;  %v4782_v16 = vpack.c.bf16 %v1795_v27, %v1793_v22  ;;  %2781 = vmatpush1.bf16.msra.mxu0 %v5306_v39  ;;  %2844 = vmatpush1.bf16.msra.mxu1 %v5309_v56  ;;  %v7050_v13 = vmax.f32 %v7048_v18, %v7049_v20  ;;  %v1720_v33 = vadd.f32 1.0, %v5631_v21  ;;  %v5320_v49 = vld [vmem:[#allocation2 + $0x124] ss:$16 sps:$4 sm:$0xff]   ;;  %v5335_v28 = vld [vmem:[#allocation2 + $0x16c] ss:$16 sps:$4 sm:$0xff]  }
 0x1fe   : > { %v7053_v30 = vmax.f32 %v7051_v14, %v7052_v59  ;;  %v6648_v55 = vpack.c.bf16 %v1794_v52, %v6470_v40  ;;  %v1751_v54 = vmul.f32 %v1719_v8, %v6583_v42  ;;  %2350 = vmatprep.mubr.bf16.mxu0 %v4783_v0  ;;  %2413 = vmatprep.mubr.bf16.mxu1 %v4783_v0  ;;  %v7054_v40 = vld [vmem:[#allocation14_spill] sm:$0xff]  ;;  %v5633_v42 = vpop.eup %5632  ;;  %v1434_v26 = vmul.f32 0.5, %v6580_v4  ;;  %v5341_v8 = vld [vmem:[#allocation2 + $0x18c] ss:$16 sps:$4 sm:$0xff]   ;;  %v5339_v21 = vld [vmem:[#allocation2 + $0x188] ss:$16 sps:$4 sm:$0xff]  }
 0x1ff   : > { %v6651_v6 = vmax.f32 %v1780_v35, %v1782_v9  ;;  %v4784_v31 = vpack.c.bf16 %v6639_v57, %v1797_v11  ;;  %v6655_v7 = vmul.f32 %v1528_v50, %v6588_v47  ;;  %2351 = vmatmul.mubr.bf16.gmra.mrb[36].mxu0 %v4782_v16  ;;  %2414 = vmatmul.mubr.bf16.gmra.mrb[36].mxu1 %v4782_v16  ;;  %v5635_v36 = vpop.eup %5634  ;;  %v1433_v47 = vmul.f32 0.5, %v6570_v53  ;;  %v5326_v15 = vld [vmem:[#allocation2 + $0x144] ss:$16 sps:$4 sm:$0xff]   ;;  %v5345_v18 = vld [vmem:[#allocation2 + $0x1a8] ss:$16 sps:$4 sm:$0xff]  }
 0x200   : > { %v1788_v34 = vmax.f32 %v7053_v30, %v7050_v13  ;;  %v6659_v62 = vpack.c.bf16 %v1793_v22, %v7054_v40  ;;  %v1783_v17 = vmax.f32 %v6619_v25, %v1751_v54  ;;  %v1752_v60 = vmul.f32 %v1720_v33, %v1624_v63  ;;  %2782 = vmatprep.subr.bf16.mxu0 %v5314_v38  ;;  %v5637_v39 = vpop.eup %5636  ;;  %v5338_v9 = vld [vmem:[#allocation2 + $0x184] ss:$16 sps:$4 sm:$0xff]   ;;  %v5353_v20 = vld [vmem:[#allocation2 + $0x1cc] ss:$16 sps:$4 sm:$0xff]   ;;  %v5348_v13 = vld [vmem:[#allocation2 + $0x1c0] ss:$16 sps:$4 sm:$0xff]  }
 0x201   : > { %v4785_v35 = vpack.c.bf16 %v6651_v6, %v1798_v12  ;;  %2845 = vmatprep.subr.bf16.mxu1 %v5317_v44  ;;  %v1529_v2 = vadd.f32 1.0, %v5633_v42  ;;  %2783 = vmatpush1.bf16.msra.mxu0 %v5312_v24  ;;  %v6664_v51 = vpack.c.bf16 %v1798_v12, %v1796_v37  ;;  %v6666_v52 = vpack.c.bf16 %v1797_v11, %v1795_v27  ;;  %v5327_v27 = vld [vmem:[#allocation2 + $0x148] ss:$16 sps:$4 sm:$0xff]   ;;  %v5332_v12 = vld [vmem:[#allocation2 + $0x164] ss:$16 sps:$4 sm:$0xff]  }
 0x202   : > { %v4787_v19 = vpack.c.bf16 %v6462_v23, %v1788_v34  ;;  %2846 = vmatpush1.bf16.msra.mxu1 %v5315_v10  ;;  %v5318_v23 = vld [vmem:[#allocation2 + $0x120] ss:$16 sps:$4 sm:$0xff]   ;;  %v1784_v56 = vmax.f32 %v6655_v7, %v1752_v60  ;;  %v1625_v63 = vmul.f32 0.5, %v6574_v58  ;;  %v1721_v46 = vadd.f32 1.0, %v5635_v36  ;;  %2784 = vmatprep.subr.bf16.mxu0 %v5320_v49  ;;  %v5344_v16 = vld [vmem:[#allocation2 + $0x1a4] ss:$16 sps:$4 sm:$0xff]  }
 0x203   : > { %2360 = vmatprep.mubr.bf16.mxu0 %v4785_v35  ;;  %2423 = vmatprep.mubr.bf16.mxu1 %v4785_v35  ;;  %v1561_v53 = vmul.f32 %v1529_v2, %v1433_v47  ;;  %v1530_v1 = vadd.f32 1.0, %v5637_v39  ;;  %v5639_v37 = vpop.eup %5638  ;;  %v1626_v25 = vmul.f32 0.5, %v6595_v48  ;;  %v5324_v58 = vld [vmem:[#allocation2 + $0x140] ss:$16 sps:$4 sm:$0xff]   ;;  %v5347_v24 = vld [vmem:[#allocation2 + $0x1ac] ss:$16 sps:$4 sm:$0xff]  }
 0x204   : > { %2847 = vmatprep.subr.bf16.mxu1 %v5323_v41  ;;  %v1753_v22 = vmul.f32 %v1721_v46, %v1625_v63  ;;  %v1722_v45 = vadd.f32 1.0, %v5639_v37  ;;  %v5330_v48 = vld [vmem:[#allocation2 + $0x160] ss:$16 sps:$4 sm:$0xff]   ;;  %v5351_v14 = vld [vmem:[#allocation2 + $0x1c8] ss:$16 sps:$4 sm:$0xff]  }
 0x205   : > { %v1562_v32 = vmul.f32 %v1530_v1, %v1434_v26  ;;  %2785 = vmatpush1.bf16.msra.mxu0 %v5318_v23  ;;  %v5336_v44 = vld [vmem:[#allocation2 + $0x180] ss:$16 sps:$4 sm:$0xff]   ;;  %v5356_v59 = vld [vmem:[#allocation2 + $0x1e4] ss:$16 sps:$4 sm:$0xff]   ;;  %v5359_v30 = vld [vmem:[#allocation2 + $0x1ec] ss:$16 sps:$4 sm:$0xff]  }
 0x206   : > { %2848 = vmatpush1.bf16.msra.mxu1 %v5321_v5  ;;  %v1785_v43 = vmax.f32 %v1561_v53, %v1753_v22  ;;  %2786 = vmatprep.subr.bf16.mxu0 %v5326_v15  ;;  %v1754_v61 = vmul.f32 %v1722_v45, %v1626_v25  ;;  %v5342_v10 = vld [vmem:[#allocation2 + $0x1a0] ss:$16 sps:$4 sm:$0xff]   ;;  %v5357_v54 = vld [vmem:[#allocation2 + $0x1e8] ss:$16 sps:$4 sm:$0xff]   ;;  %v5362_v33 = vld [vmem:[#allocation2 + $0x404] ss:$16 sps:$4 sm:$0xff]  }
 0x207   : > { %2849 = vmatprep.subr.bf16.mxu1 %v5329_v29  ;;  %2361 = vmatmul.mubr.bf16.gmra.mrb[40].mxu0 %v4784_v31  ;;  %v5354_v34 = vld [vmem:[#allocation2 + $0x1e0] ss:$16 sps:$4 sm:$0xff]   ;;  %v5363_v7 = vld [vmem:[#allocation2 + $0x408] ss:$16 sps:$4 sm:$0xff]   ;;  %v5371_v49 = vld [vmem:[#allocation2 + $0x42c] ss:$16 sps:$4 sm:$0xff]  }
 0x208   : > { %2424 = vmatmul.mubr.bf16.gmra.mrb[40].mxu1 %v4784_v31  ;;  %2798 = vmatprep.mubr.bf16.mxu0 %v4787_v19  ;;  %v1801_v4 = vmax.f32 %v1783_v17, %v1785_v43  ;;  %v1786_v11 = vmax.f32 %v1562_v32, %v1754_v61  ;;  %v5360_v31 = vld [vmem:[#allocation2 + $0x400] ss:$16 sps:$4 sm:$0xff]   ;;  %v7055_v41 = vld [vmem:[#allocation13_spill] sm:$0xff]  ;;  %v5374_v17 = vld [vmem:[#allocation2 + $0x444] ss:$16 sps:$4 sm:$0xff]  }
 0x209   : > { %2861 = vmatprep.mubr.bf16.mxu1 %v4787_v19  ;;  %2787 = vmatpush1.bf16.msra.mxu0 %v5324_v58  ;;  %v5368_v19 = vld [vmem:[#allocation2 + $0x424] ss:$16 sps:$4 sm:$0xff]   ;;  %v5366_v40 = vld [vmem:[#allocation2 + $0x420] ss:$16 sps:$4 sm:$0xff]   ;;  %v5369_v42 = vld [vmem:[#allocation2 + $0x428] ss:$16 sps:$4 sm:$0xff]  }
 0x20a   : > { %2850 = vmatpush1.bf16.msra.mxu1 %v5327_v27  ;;  %2788 = vmatprep.subr.bf16.mxu0 %v5332_v12  ;;  %v6673_v0 = vpack.c.bf16 %v1801_v4, %v6639_v57  ;;  %v1802_v38 = vmax.f32 %v1784_v56, %v1786_v11  ;;  %v5350_v57 = vld [vmem:[#allocation2 + $0x1c4] ss:$16 sps:$4 sm:$0xff]   ;;  %v5377_v60 = vld [vmem:[#allocation2 + $0x44c] ss:$16 sps:$4 sm:$0xff]   ;;  %v5372_v35 = vld [vmem:[#allocation2 + $0x440] ss:$16 sps:$4 sm:$0xff]  }
 0x20b   : > { %2851 = vmatprep.subr.bf16.mxu1 %v5335_v28  ;;  %v5375_v36 = vld [vmem:[#allocation2 + $0x448] ss:$16 sps:$4 sm:$0xff]   ;;  %v5380_v47 = vld [vmem:[#allocation2 + $0x464] ss:$16 sps:$4 sm:$0xff]   ;;  %v5383_v2 = vld [vmem:[#allocation2 + $0x46c] ss:$16 sps:$4 sm:$0xff]  }
 0x20c   : > { %v6676_v50 = vpack.c.bf16 %v1802_v38, %v6651_v6  ;;  %v5365_v6 = vld [vmem:[#allocation2 + $0x40c] ss:$16 sps:$4 sm:$0xff]   ;;  %v5378_v23 = vld [vmem:[#allocation2 + $0x460] ss:$16 sps:$4 sm:$0xff]   ;;  %v5381_v5 = vld [vmem:[#allocation2 + $0x468] ss:$16 sps:$4 sm:$0xff]  }
 0x20d   : > { %2789 = vmatpush1.bf16.msra.mxu0 %v5330_v48  ;;  %v5386_v39 = vld [vmem:[#allocation2 + $0x484] ss:$16 sps:$4 sm:$0xff]   ;;  %v5389_v56 = vld [vmem:[#allocation2 + $0x48c] ss:$16 sps:$4 sm:$0xff]   ;;  %v5384_v63 = vld [vmem:[#allocation2 + $0x480] ss:$16 sps:$4 sm:$0xff]  }
 0x20e   : > { %2852 = vmatpush1.bf16.msra.mxu1 %v5333_v3  ;;  %2790 = vmatprep.subr.bf16.mxu0 %v5338_v9  ;;  %v5387_v46 = vld [vmem:[#allocation2 + $0x488] ss:$16 sps:$4 sm:$0xff]   ;;  %v5392_v15 = vld [vmem:[#allocation2 + $0x4a4] ss:$16 sps:$4 sm:$0xff]   ;;  %v5395_v29 = vld [vmem:[#allocation2 + $0x4ac] ss:$16 sps:$4 sm:$0xff]  }
 0x20f   : > { %2853 = vmatprep.subr.bf16.mxu1 %v5341_v8  ;;  %v5390_v53 = vld [vmem:[#allocation2 + $0x4a0] ss:$16 sps:$4 sm:$0xff]   ;;  %v5393_v26 = vld [vmem:[#allocation2 + $0x4a8] ss:$16 sps:$4 sm:$0xff]   ;;  %v5398_v1 = vld [vmem:[#allocation2 + $0x4c4] ss:$16 sps:$4 sm:$0xff]  }
 0x210   : > { %v5401_v37 = vld [vmem:[#allocation2 + $0x4cc] ss:$16 sps:$4 sm:$0xff]   ;;  %v5396_v22 = vld [vmem:[#allocation2 + $0x4c0] ss:$16 sps:$4 sm:$0xff]   ;;  %v5399_v32 = vld [vmem:[#allocation2 + $0x4c8] ss:$16 sps:$4 sm:$0xff]  }
 0x211   : > { %2791 = vmatpush1.bf16.msra.mxu0 %v5336_v44  ;;  %v5404_v25 = vld [vmem:[#allocation2 + $0x4e4] ss:$16 sps:$4 sm:$0xff]   ;;  %v5407_v45 = vld [vmem:[#allocation2 + $0x4ec] ss:$16 sps:$4 sm:$0xff]   ;;  %v5402_v58 = vld [vmem:[#allocation2 + $0x4e0] ss:$16 sps:$4 sm:$0xff]  }
 0x212   : > { %2854 = vmatpush1.bf16.msra.mxu1 %v5339_v21  ;;  %2792 = vmatprep.subr.bf16.mxu0 %v5344_v16  ;;  %v5410_v27 = vld [vmem:[#allocation2 + $0x504] ss:$16 sps:$4 sm:$0xff]   ;;  %v5413_v43 = vld [vmem:[#allocation2 + $0x50c] ss:$16 sps:$4 sm:$0xff]   ;;  %v5408_v12 = vld [vmem:[#allocation2 + $0x500] ss:$16 sps:$4 sm:$0xff]  }
 0x213   : > { %2855 = vmatprep.subr.bf16.mxu1 %v5347_v24  ;;  %v5411_v28 = vld [vmem:[#allocation2 + $0x508] ss:$16 sps:$4 sm:$0xff]   ;;  %v5416_v61 = vld [vmem:[#allocation2 + $0x524] ss:$16 sps:$4 sm:$0xff]   ;;  %v5419_v4 = vld [vmem:[#allocation2 + $0x52c] ss:$16 sps:$4 sm:$0xff]  }
 0x214   : > { %v5414_v11 = vld [vmem:[#allocation2 + $0x520] ss:$16 sps:$4 sm:$0xff]   ;;  %v5417_v48 = vld [vmem:[#allocation2 + $0x528] ss:$16 sps:$4 sm:$0xff]   ;;  %v5422_v3 = vld [vmem:[#allocation2 + $0x544] ss:$16 sps:$4 sm:$0xff]  }
 0x215   : > { %2793 = vmatpush1.bf16.msra.mxu0 %v5342_v10  ;;  %v5425_v9 = vld [vmem:[#allocation2 + $0x54c] ss:$16 sps:$4 sm:$0xff]   ;;  %v5420_v8 = vld [vmem:[#allocation2 + $0x540] ss:$16 sps:$4 sm:$0xff]   ;;  %v5423_v38 = vld [vmem:[#allocation2 + $0x548] ss:$16 sps:$4 sm:$0xff]  }
 0x216   : > { %2856 = vmatpush1.bf16.msra.mxu1 %v5345_v18  ;;  %2794 = vmatprep.subr.bf16.mxu0 %v5350_v57  ;;  %v5428_v44 = vld [vmem:[#allocation2 + $0x564] ss:$16 sps:$4 sm:$0xff]   ;;  %v5431_v21 = vld [vmem:[#allocation2 + $0x56c] ss:$16 sps:$4 sm:$0xff]   ;;  %v5426_v16 = vld [vmem:[#allocation2 + $0x560] ss:$16 sps:$4 sm:$0xff]  }
 0x217   : > { %2857 = vmatprep.subr.bf16.mxu1 %v5353_v20  ;;  %v5429_v24 = vld [vmem:[#allocation2 + $0x568] ss:$16 sps:$4 sm:$0xff]   ;;  %v5434_v10 = vld [vmem:[#allocation2 + $0x584] ss:$16 sps:$4 sm:$0xff]   ;;  %v5437_v18 = vld [vmem:[#allocation2 + $0x58c] ss:$16 sps:$4 sm:$0xff]  }
 0x218   : > { %v5432_v57 = vld [vmem:[#allocation2 + $0x580] ss:$16 sps:$4 sm:$0xff]   ;;  %v5435_v20 = vld [vmem:[#allocation2 + $0x588] ss:$16 sps:$4 sm:$0xff]  }
 0x219   : > { %2795 = vmatpush1.bf16.msra.mxu0 %v5348_v13  ;;  %v5440_v13 = vld [vmem:[#allocation2 + $0x5a4] ss:$16 sps:$4 sm:$0xff]  }
 0x21a   : > { %2858 = vmatpush1.bf16.msra.mxu1 %v5351_v14  ;;  %2796 = vmatprep.subr.bf16.mxu0 %v5356_v59  ;;  %v5443_v14 = vld [vmem:[#allocation2 + $0x5ac] ss:$16 sps:$4 sm:$0xff]   ;;  %v5438_v59 = vld [vmem:[#allocation2 + $0x5a0] ss:$16 sps:$4 sm:$0xff]  }
 0x21b   : > { %2859 = vmatprep.subr.bf16.mxu1 %v5359_v30  ;;  %v5441_v30 = vld [vmem:[#allocation2 + $0x5a8] ss:$16 sps:$4 sm:$0xff]  }
 0x21d   : > { %2797 = vmatpush1.bf16.msra.mxu0 %v5354_v34  ;;  %v5446_v34 = vld [vmem:[#allocation2 + $0x5c4] ss:$16 sps:$4 sm:$0xff]  }
 0x21e   : > { %2860 = vmatpush1.bf16.msra.mxu1 %v5357_v54  ;;  %3285 = vmatprep.subr.bf16.mxu0 %v5362_v33  ;;  %v5449_v54 = vld [vmem:[#allocation2 + $0x5cc] ss:$16 sps:$4 sm:$0xff]   ;;  %v5444_v33 = vld [vmem:[#allocation2 + $0x5c0] ss:$16 sps:$4 sm:$0xff]  }
 0x21f   : > { %3348 = vmatprep.subr.bf16.mxu1 %v5365_v6  ;;  %v5447_v6 = vld [vmem:[#allocation2 + $0x5c8] ss:$16 sps:$4 sm:$0xff]  }
 0x220   : > { %2799 = vmatmul.mubr.bf16.vlgmr.msra.gmra.mrb[32].mxu0 %v7055_v41 }
 0x221   : > { %2862 = vmatmul.mubr.bf16.vlgmr.msra.gmra.mrb[32].mxu1 %v7055_v41  ;;  %2808 = vmatprep.mubr.bf16.mxu0 %v6648_v55  ;;  %v5456_v41 = vld [vmem:[%s6991_s5 + $0x40] sm:$0xff]  }
 0x222   : > { %2871 = vmatprep.mubr.bf16.mxu1 %v6648_v55  ;;  %3286 = vmatpush1.bf16.msra.mxu0 %v5360_v31  ;;  %v5452_v31 = vld [vmem:[#allocation2 + $0x5e4] ss:$16 sps:$4 sm:$0xff]  }
 0x223   : > { %3349 = vmatpush1.bf16.msra.mxu1 %v5363_v7  ;;  %3287 = vmatprep.subr.bf16.mxu0 %v5368_v19  ;;  %v5455_v7 = vld [vmem:[#allocation2 + $0x5ec] ss:$16 sps:$4 sm:$0xff]   ;;  %v5450_v19 = vld [vmem:[#allocation2 + $0x5e0] ss:$16 sps:$4 sm:$0xff]  }
 0x224   : > { %3350 = vmatprep.subr.bf16.mxu1 %v5371_v49  ;;  %v5453_v49 = vld [vmem:[#allocation2 + $0x5e8] ss:$16 sps:$4 sm:$0xff]  }
 0x226   : > { %3288 = vmatpush1.bf16.msra.mxu0 %v5366_v40  ;;  %v5457_v40 = vld [vmem:[%s6991_s5] sm:$0xff]  }
 0x227   : > { %3351 = vmatpush1.bf16.msra.mxu1 %v5369_v42  ;;  %3289 = vmatprep.subr.bf16.mxu0 %v5374_v17  ;;  %v5464_v42 = vld [vmem:[%s6991_s5 + $0xc8] sm:$0xff]   ;;  %v5463_v17 = vld [vmem:[%s6991_s5 + $0x10] sm:$0xff]  }
 0x228   : > { %3352 = vmatprep.subr.bf16.mxu1 %v5377_v60  ;;  %2809 = vmatmul.mubr.bf16.gmra.mrb[36].mxu0 %v6659_v62  ;;  %v5465_v60 = vld [vmem:[%s6991_s5 + $0x88] sm:$0xff]  }
 0x229   : > { %2872 = vmatmul.mubr.bf16.gmra.mrb[36].mxu1 %v6659_v62  ;;  %2818 = vmatprep.mubr.bf16.mxu0 %v6664_v51 }
 0x22a   : > { %2881 = vmatprep.mubr.bf16.mxu1 %v6664_v51  ;;  %3290 = vmatpush1.bf16.msra.mxu0 %v5372_v35  ;;  %v5466_v35 = vld [vmem:[%s6991_s5 + $0x58] sm:$0xff]  }
 0x22b   : > { %3353 = vmatpush1.bf16.msra.mxu1 %v5375_v36  ;;  %3291 = vmatprep.subr.bf16.mxu0 %v5380_v47  ;;  %v5467_v36 = vld [vmem:[%s6991_s5 + $0x18] sm:$0xff]   ;;  %v5468_v47 = vld [vmem:[%s6991_s5 + $0xd0] sm:$0xff]  }
 0x22c   : > { %3354 = vmatprep.subr.bf16.mxu1 %v5383_v2  ;;  %v5470_v2 = vld [vmem:[%s6991_s5 + $0x60] sm:$0xff]  }
 0x22e   : > { %3292 = vmatpush1.bf16.msra.mxu0 %v5378_v23  ;;  %v5469_v23 = vld [vmem:[%s6991_s5 + $0x90] sm:$0xff]  }
 0x22f   : > { %3355 = vmatpush1.bf16.msra.mxu1 %v5381_v5  ;;  %3293 = vmatprep.subr.bf16.mxu0 %v5386_v39  ;;  %v5471_v5 = vld [vmem:[%s6991_s5 + $0x20] sm:$0xff]   ;;  %v5472_v39 = vld [vmem:[%s6991_s5 + $0xd8] sm:$0xff]  }
 0x230   : > { %3356 = vmatprep.subr.bf16.mxu1 %v5389_v56  ;;  %2819 = vmatmul.mubr.bf16.gmra.mrb[40].mxu0 %v6666_v52  ;;  %v5473_v56 = vld [vmem:[%s6991_s5 + $0x98] sm:$0xff]  }
 0x231   : > { %2882 = vmatmul.mubr.bf16.gmra.mrb[40].mxu1 %v6666_v52  ;;  %3317 = vmatprep.mubr.bf16.mxu0 %v6648_v55 }
 0x232   : > { %3380 = vmatprep.mubr.bf16.mxu1 %v6648_v55  ;;  %3294 = vmatpush1.bf16.msra.mxu0 %v5384_v63  ;;  %v5405_v55 = vld [vmem:[#allocation2 + $0x4e8] ss:$16 sps:$4 sm:$0xff]  }
 0x233   : > { %3357 = vmatpush1.bf16.msra.mxu1 %v5387_v46  ;;  %3295 = vmatprep.subr.bf16.mxu0 %v5392_v15  ;;  %v5474_v63 = vld [vmem:[%s6991_s5 + $0x68] sm:$0xff]   ;;  %v5476_v15 = vld [vmem:[%s6991_s5 + $0xe0] sm:$0xff]  }
 0x234   : > { %3358 = vmatprep.subr.bf16.mxu1 %v5395_v29  ;;  %v5475_v46 = vld [vmem:[%s6991_s5 + $0x28] sm:$0xff]   ;;  %v5478_v29 = vld [vmem:[%s6991_s5 + $0x70] sm:$0xff]  }
 0x236   : > { %3296 = vmatpush1.bf16.msra.mxu0 %v5390_v53  ;;  %v5477_v53 = vld [vmem:[%s6991_s5 + $0xa0] sm:$0xff]  }
 0x237   : > { %3359 = vmatpush1.bf16.msra.mxu1 %v5393_v26  ;;  %3297 = vmatprep.subr.bf16.mxu0 %v5398_v1  ;;  %v5479_v26 = vld [vmem:[%s6991_s5 + $0x30] sm:$0xff]   ;;  %v5480_v1 = vld [vmem:[%s6991_s5 + $0xe8] sm:$0xff]  }
 0x238   : > { %3360 = vmatprep.subr.bf16.mxu1 %v5401_v37  ;;  %v5482_v37 = vld [vmem:[%s6991_s5 + $0x78] sm:$0xff]  }
 0x23a   : > { %3298 = vmatpush1.bf16.msra.mxu0 %v5396_v22  ;;  %v5481_v22 = vld [vmem:[%s6991_s5 + $0xa8] sm:$0xff]  }
 0x23b   : > { %3361 = vmatpush1.bf16.msra.mxu1 %v5399_v32  ;;  %3299 = vmatprep.subr.bf16.mxu0 %v5404_v25  ;;  %v5483_v32 = vld [vmem:[%s6991_s5 + $0x38] sm:$0xff]   ;;  %v5484_v25 = vld [vmem:[%s6991_s5 + $0xf0] sm:$0xff]  }
 0x23c   : > { %3362 = vmatprep.subr.bf16.mxu1 %v5407_v45  ;;  %v5485_v45 = vld [vmem:[%s6991_s5 + $0xb0] sm:$0xff]  }
 0x23e   : > { %3300 = vmatpush1.bf16.msra.mxu0 %v5402_v58  ;;  %v5486_v58 = vld [vmem:[%s6991_s5 + $0xf8] sm:$0xff]  }
 0x23f   : > { %3363 = vmatpush1.bf16.msra.mxu1 %v5405_v55  ;;  %3301 = vmatprep.subr.bf16.mxu0 %v5410_v27  ;;  %v5487_v55 = vld [vmem:[%s6991_s5 + $0xb8] sm:$0xff]   ;;  %v5488_v27 = vld [vmem:[%s6991_s5 + $0x140] sm:$0xff]  }
 0x240   : > { %3364 = vmatprep.subr.bf16.mxu1 %v5413_v43  ;;  %v3435_v43 = vld [vmem:[%s6990_s4] sm:$0x3] }
 0x242   : > { %3302 = vmatpush1.bf16.msra.mxu0 %v5408_v12  ;;  %v7056_v12 = vld [vmem:[#allocation8_spill] sm:$0xff] }
 0x243   : > { %3365 = vmatpush1.bf16.msra.mxu1 %v5411_v28  ;;  %3303 = vmatprep.subr.bf16.mxu0 %v5416_v61  ;;  %v7057_v28 = vsub.s32 0, %v7056_v12 }
 0x244   : > { %3366 = vmatprep.subr.bf16.mxu1 %v5419_v4  ;;  %v7058_v4 = vsub.s32 1, %v7056_v12 }
 0x245   : > { %v6804_v61 = vrot.slane %v3435_v43, %v7057_v28 }
 0x246   : > { %3304 = vmatpush1.bf16.msra.mxu0 %v5414_v11  ;;  %v6808_v11 = vrot.slane %v3435_v43, %v7058_v4 }
 0x247   : > { %3367 = vmatpush1.bf16.msra.mxu1 %v5417_v48  ;;  %3305 = vmatprep.subr.bf16.mxu0 %v5422_v3 }
 0x248   : > { %3368 = vmatprep.subr.bf16.mxu1 %v5425_v9 }
 0x24a   : > { %3306 = vmatpush1.bf16.msra.mxu0 %v5420_v8 }
 0x24b   : > { %3369 = vmatpush1.bf16.msra.mxu1 %v5423_v38  ;;  %3307 = vmatprep.subr.bf16.mxu0 %v5428_v44 }
 0x24c   : > { %3370 = vmatprep.subr.bf16.mxu1 %v5431_v21 }
 0x24e   : > { %3308 = vmatpush1.bf16.msra.mxu0 %v5426_v16 }
 0x24f   : > { %3371 = vmatpush1.bf16.msra.mxu1 %v5429_v24  ;;  %3309 = vmatprep.subr.bf16.mxu0 %v5434_v10 }
 0x250   : > { %3372 = vmatprep.subr.bf16.mxu1 %v5437_v18 }
 0x252   : > { %3310 = vmatpush1.bf16.msra.mxu0 %v5432_v57 }
 0x253   : > { %3373 = vmatpush1.bf16.msra.mxu1 %v5435_v20  ;;  %3311 = vmatprep.subr.bf16.mxu0 %v5440_v13 }
 0x254   : > { %3374 = vmatprep.subr.bf16.mxu1 %v5443_v14 }
 0x256   : > { %3312 = vmatpush1.bf16.msra.mxu0 %v5438_v59 }
 0x257   : > { %3375 = vmatpush1.bf16.msra.mxu1 %v5441_v30  ;;  %3313 = vmatprep.subr.bf16.mxu0 %v5446_v34 }
 0x258   : > { %3376 = vmatprep.subr.bf16.mxu1 %v5449_v54 }
 0x25a   : > { %3314 = vmatpush1.bf16.msra.mxu0 %v5444_v33 }
 0x25b   : > { %3377 = vmatpush1.bf16.msra.mxu1 %v5447_v6  ;;  %3315 = vmatprep.subr.bf16.mxu0 %v5452_v31 }
 0x25c   : > { %3378 = vmatprep.subr.bf16.mxu1 %v5455_v7 }
 0x25e   : > { %3316 = vmatpush1.bf16.msra.mxu0 %v5450_v19 }
 0x25f   : > { %3379 = vmatpush1.bf16.msra.mxu1 %v5453_v49 }
 0x260   : > { %4816 = vmatprep.subr.bf16.mxu1 %v5456_v41 }
 0x261   : > { %3318 = vmatmul.mubr.bf16.vlgmr.msra.gmra.mrb[32].mxu0 %v6659_v62 }
 0x262   : > { %3381 = vmatmul.mubr.bf16.vlgmr.msra.gmra.mrb[32].mxu1 %v6659_v62  ;;  %3327 = vmatprep.mubr.bf16.mxu0 %v6664_v51  ;;  %v5458_v62 = vld [vmem:[%s6991_s5 + $0x48] sm:$0xff]  }
 0x263   : > { %3390 = vmatprep.mubr.bf16.mxu1 %v6664_v51  ;;  %4817 = vmatpush3.bf16.msra.mxu1 %v5457_v40  ;;  %v5459_v51 = vld [vmem:[%s6991_s5 + $0x8] sm:$0xff]  }
 0x264   : > { %4818 = vmatprep.subr.bf16.mxu1 %v5458_v62 }
 0x267   : > { %4819 = vmatpush3.bf16.msra.mxu1 %v5459_v51 }
 0x269   : > { %3328 = vmatmul.mubr.bf16.gmra.mrb[36].mxu0 %v6666_v52 }
 0x26a   : > { %3391 = vmatmul.mubr.bf16.gmra.mrb[36].mxu1 %v6666_v52  ;;  %3337 = vmatprep.mubr.bf16.mxu0 %v6676_v50  ;;  %v5460_v52 = vld [vmem:[%s6991_s5 + $0xc0] sm:$0xff]  }
 0x26b   : > { %3400 = vmatprep.mubr.bf16.mxu1 %v6676_v50  ;;  %v5461_v50 = vld [vmem:[%s6991_s5 + $0x80] sm:$0xff]   ;;  %4794 = vmatprep.subr.bf16.mxu0 %v5460_v52 }
 0x26c   : > { %4795 = vmatpush3.bf16.msra.mxu0 %v5461_v50 }
 0x26d   : > { %4796 = vmatprep.subr.bf16.mxu0 %v5464_v42 }
 0x270   : > { %4797 = vmatpush3.bf16.msra.mxu0 %v5465_v60 }
 0x271   : > { %3338 = vmatmul.mubr.bf16.gmra.mrb[40].mxu0 %v6673_v0  ;;  %4798 = vmatprep.subr.bf16.mxu0 %v5468_v47 }
 0x272   : > { %3401 = vmatmul.mubr.bf16.gmra.mrb[40].mxu1 %v6673_v0  ;;  %v5462_v0 = vld [vmem:[%s6991_s5 + $0x50] sm:$0xff]  }
 0x273   : > { %4820 = vmatprep.subr.bf16.mxu1 %v5462_v0 }
 0x274   : > { %4821 = vmatpush3.bf16.msra.mxu1 %v5463_v17  ;;  %4799 = vmatpush3.bf16.msra.mxu0 %v5469_v23 }
 0x275   : > { %4822 = vmatprep.subr.bf16.mxu1 %v5466_v35  ;;  %4800 = vmatprep.subr.bf16.mxu0 %v5472_v39 }
 0x278   : > { %4823 = vmatpush3.bf16.msra.mxu1 %v5467_v36  ;;  %4801 = vmatpush3.bf16.msra.mxu0 %v5473_v56 }
 0x279   : > { %4824 = vmatprep.subr.bf16.mxu1 %v5470_v2  ;;  %4802 = vmatprep.subr.bf16.mxu0 %v5476_v15 }
 0x27c   : > { %4825 = vmatpush3.bf16.msra.mxu1 %v5471_v5  ;;  %4803 = vmatpush3.bf16.msra.mxu0 %v5477_v53 }
 0x27d   : > { %4826 = vmatprep.subr.bf16.mxu1 %v5474_v63  ;;  %4804 = vmatprep.subr.bf16.mxu0 %v5480_v1 }
 0x280   : > { %4827 = vmatpush3.bf16.msra.mxu1 %v5475_v46  ;;  %4805 = vmatpush3.bf16.msra.mxu0 %v5481_v22 }
 0x281   : > { %4828 = vmatprep.subr.bf16.mxu1 %v5478_v29  ;;  %4806 = vmatprep.subr.bf16.mxu0 %v5484_v25 }
 0x284   : > { %4829 = vmatpush3.bf16.msra.mxu1 %v5479_v26  ;;  %4807 = vmatpush3.bf16.msra.mxu0 %v5485_v45 }
 0x285   : > { %4830 = vmatprep.subr.bf16.mxu1 %v5482_v37  ;;  %4808 = vmatprep.subr.bf16.mxu0 %v5486_v58 }
 0x288   : > { %4831 = vmatpush3.bf16.msra.mxu1 %v5483_v32  ;;  %4809 = vmatpush3.bf16.msra.mxu0 %v5487_v55 }
 0x289   : > { %4838 = vmatprep.subr.bf16.mxu0 %v5488_v27 }
 0x334   : > { %v3319_v48 = vpop.f32.mrb[32].mxu0 }
 0x335   : > { %v3382_v3 = vpop.f32.mrb[32].mxu1  ;;  %v3447_v9 = vadd.f32 %v6804_v61, %v3319_v48  ;;  %v3321_v38 = vpop.f32.mrb[33].mxu0 }
 0x336   : > { %v3519_v8 = vadd.f32 %v6804_v61, %v3382_v3  ;;  %v3384_v44 = vpop.f32.mrb[33].mxu1  ;;  %v3448_v21 = vadd.f32 %v6808_v11, %v3321_v38  ;;  %v3323_v24 = vpop.f32.mrb[34].mxu0 }
 0x337   : > { %v3520_v16 = vadd.f32 %v6808_v11, %v3384_v44  ;;  %v3386_v10 = vpop.f32.mrb[34].mxu1  ;;  %v3471_v18 = vmul.f32 0.70710677, %v3447_v9  ;;  %v3449_v14 = vadd.f32 %v6804_v61, %v3323_v24  ;;  %v3325_v30 = vpop.f32.mrb[35].mxu0  ;;  %v3459_v36 = vmul.f32 0.5, %v3447_v9 }
 0x338   : > { %v3543_v57 = vmul.f32 0.70710677, %v3519_v8  ;;  %v3472_v20 = vmul.f32 0.70710677, %v3448_v21  ;;  %v3521_v59 = vadd.f32 %v6804_v61, %v3386_v10  ;;  %v3388_v34 = vpop.f32.mrb[35].mxu1  ;;  %v3450_v54 = vadd.f32 %v6808_v11, %v3325_v30 }
 0x339   : > { %v3544_v13 = vmul.f32 0.70710677, %v3520_v16  ;;  %5640 = verf.f32 %v3471_v18  ;;  %v3522_v33 = vadd.f32 %v6808_v11, %v3388_v34  ;;  %v3473_v6 = vmul.f32 0.70710677, %v3449_v14 }
 0x33a   : > { %5642 = verf.f32 %v3543_v57  ;;  %v3545_v31 = vmul.f32 0.70710677, %v3521_v59  ;;  %v3474_v7 = vmul.f32 0.70710677, %v3450_v54  ;;  %v3531_v47 = vmul.f32 0.5, %v3519_v8 }
 0x33b   : > { %5644 = verf.f32 %v3472_v20  ;;  %v3546_v49 = vmul.f32 0.70710677, %v3522_v33  ;;  %v6822_v5 = vmul.f32 0.5, %v3448_v21  ;;  %v6827_v53 = vmul.f32 0.5, %v3520_v16 }
 0x33c   : > { %5646 = verf.f32 %v3544_v13  ;;  %v3329_v19 = vpop.f32.mrb[36].mxu0  ;;  %v3461_v26 = vmul.f32 0.5, %v3449_v14  ;;  %v3533_v1 = vmul.f32 0.5, %v3521_v59  ;;  %v6830_v43 = vmul.f32 0.5, %v3450_v54 }
 0x33d   : > { %5648 = verf.f32 %v3473_v6  ;;  %v3451_v41 = vadd.f32 %v6804_v61, %v3329_v19  ;;  %v3392_v40 = vpop.f32.mrb[36].mxu1  ;;  %v3331_v62 = vpop.f32.mrb[37].mxu0  ;;  %v6832_v12 = vmul.f32 0.5, %v3522_v33 }
 0x33e   : > { %5650 = verf.f32 %v3545_v31  ;;  %v3523_v51 = vadd.f32 %v6804_v61, %v3392_v40  ;;  %v3452_v52 = vadd.f32 %v6808_v11, %v3331_v62  ;;  %v3394_v50 = vpop.f32.mrb[37].mxu1  ;;  %v3333_v0 = vpop.f32.mrb[38].mxu0 }
 0x33f   : > { %5652 = verf.f32 %v3474_v7  ;;  %v3475_v42 = vmul.f32 0.70710677, %v3451_v41  ;;  %v3524_v17 = vadd.f32 %v6808_v11, %v3394_v50  ;;  %v3396_v60 = vpop.f32.mrb[38].mxu1  ;;  %v3335_v35 = vpop.f32.mrb[39].mxu0  ;;  %v3453_v63 = vadd.f32 %v6804_v61, %v3333_v0 }
 0x340   : > { %5654 = verf.f32 %v3546_v49  ;;  %v3547_v2 = vmul.f32 0.70710677, %v3523_v51  ;;  %v3398_v23 = vpop.f32.mrb[39].mxu1  ;;  %v3476_v39 = vmul.f32 0.70710677, %v3452_v52  ;;  %v3525_v46 = vadd.f32 %v6804_v61, %v3396_v60 }
 0x341   : > { %5656 = verf.f32 %v3475_v42  ;;  %v3548_v56 = vmul.f32 0.70710677, %v3524_v17  ;;  %v3454_v15 = vadd.f32 %v6808_v11, %v3335_v35  ;;  %v3477_v32 = vmul.f32 0.70710677, %v3453_v63 }
 0x342   : > { %5658 = verf.f32 %v3547_v2  ;;  %v3526_v25 = vadd.f32 %v6808_v11, %v3398_v23  ;;  %v3549_v28 = vmul.f32 0.70710677, %v3525_v46  ;;  %v3463_v9 = vmul.f32 0.5, %v3451_v41 }
 0x343   : > { %v5641_v29 = vpop.eup %5640  ;;  %5660 = verf.f32 %v3476_v39  ;;  %v3478_v8 = vmul.f32 0.70710677, %v3454_v15  ;;  %v3535_v24 = vmul.f32 0.5, %v3523_v51  ;;  %v3464_v10 = vmul.f32 0.5, %v3452_v52 }
 0x344   : > { %v5643_v37 = vpop.eup %5642  ;;  %v3495_v22 = vadd.f32 1.0, %v5641_v29  ;;  %5662 = verf.f32 %v3548_v56  ;;  %v3339_v45 = vpop.f32.mrb[40].mxu0  ;;  %v3536_v14 = vmul.f32 0.5, %v3524_v17  ;;  %v3550_v59 = vmul.f32 0.70710677, %v3526_v25 }
 0x345   : > { %v3402_v58 = vpop.f32.mrb[40].mxu1  ;;  %v5645_v55 = vpop.eup %5644  ;;  %v3567_v27 = vadd.f32 1.0, %v5643_v37  ;;  %5664 = verf.f32 %v3477_v32  ;;  %v3465_v6 = vmul.f32 0.5, %v3453_v63  ;;  %v3455_v31 = vadd.f32 %v6804_v61, %v3339_v45 }
 0x346   : > { %v3341_v4 = vpop.f32.mrb[41].mxu0  ;;  %v5647_v48 = vpop.eup %5646  ;;  %v3507_v3 = vmul.f32 %v3495_v22, %v3459_v36  ;;  %5666 = verf.f32 %v3549_v28  ;;  %v3537_v49 = vmul.f32 0.5, %v3525_v46  ;;  %v3527_v41 = vadd.f32 %v6804_v61, %v3402_v58 }
 0x347   : > { %v3404_v38 = vpop.f32.mrb[41].mxu1  ;;  %v3343_v44 = vpop.f32.mrb[42].mxu0  ;;  %v3579_v16 = vmul.f32 %v3567_v27, %v3531_v47  ;;  %5668 = verf.f32 %v3478_v8  ;;  %v3496_v62 = vadd.f32 1.0, %v5645_v55  ;;  %v3466_v52 = vmul.f32 0.5, %v3454_v15 }
 0x348   : > { %v5649_v21 = vpop.eup %5648  ;;  %v6834_v18 = vpop.f32.mrb[42].mxu1  ;;  %5670 = verf.f32 %v3550_v59  ;;  %v3479_v50 = vmul.f32 0.70710677, %v3455_v31  ;;  %v3568_v42 = vadd.f32 1.0, %v5647_v48  ;;  %v3538_v60 = vmul.f32 0.5, %v3526_v25 }
 0x349   : > { %v6836_v57 = vpop.f32.mrb[43].mxu0  ;;  %v5651_v20 = vpop.eup %5650  ;;  %v3497_v13 = vadd.f32 1.0, %v5649_v21  ;;  %v3591_v54 = vmax.f32 %v3507_v3, %v3579_v16  ;;  %v3551_v35 = vmul.f32 0.70710677, %v3527_v41  ;;  %v3456_v46 = vadd.f32 %v6808_v11, %v3341_v4 }
 0x34a   : > { %v3408_v30 = vpop.f32.mrb[43].mxu1  ;;  %v5653_v34 = vpop.eup %5652  ;;  %v3569_v33 = vadd.f32 1.0, %v5651_v20  ;;  %5672 = verf.f32 %v3479_v50  ;;  %v3508_v22 = vmul.f32 %v3496_v62, %v6822_v5  ;;  %v3580_v32 = vmul.f32 %v3568_v42, %v6827_v53 }
 0x34b   : > { %v5655_v7 = vpop.eup %5654  ;;  %v3509_v19 = vmul.f32 %v3497_v13, %v3461_v26  ;;  %v3498_v2 = vadd.f32 1.0, %v5653_v34  ;;  %5674 = verf.f32 %v3551_v35  ;;  %v3480_v25 = vmul.f32 0.70710677, %v3456_v46 }
 0x34c   : > { %v5657_v40 = vpop.eup %5656  ;;  %v3581_v51 = vmul.f32 %v3569_v33, %v3533_v1  ;;  %v3570_v56 = vadd.f32 1.0, %v5655_v7  ;;  %v6844_v1 = vadd.f32 %v6808_v11, %v3404_v38  ;;  %v6849_v45 = vadd.f32 %v6804_v61, %v3343_v44 }
 0x34d   : > { %v5659_v0 = vpop.eup %5658  ;;  %v3499_v17 = vadd.f32 1.0, %v5657_v40  ;;  %v3510_v55 = vmul.f32 %v3498_v2, %v6830_v43  ;;  %5676 = verf.f32 %v3480_v25  ;;  %v3529_v43 = vadd.f32 %v6804_v61, %v6834_v18  ;;  %v5489_v2 = vld [vmem:[%s6991_s5 + $0x100] sm:$0xff]  }
 0x34e   : > { %v5661_v36 = vpop.eup %5660  ;;  %v3593_v47 = vmax.f32 %v3509_v19, %v3581_v51  ;;  %v3571_v23 = vadd.f32 1.0, %v5659_v0  ;;  %v3582_v3 = vmul.f32 %v3570_v56, %v6832_v12  ;;  %v3552_v8 = vmul.f32 0.70710677, %v6844_v1 }
 0x34f   : > { %v5663_v39 = vpop.eup %5662  ;;  %v3511_v63 = vmul.f32 %v3499_v17, %v3463_v9  ;;  %v3500_v26 = vadd.f32 1.0, %v5661_v36  ;;  %v3481_v21 = vmul.f32 0.70710677, %v6849_v45  ;;  %v3530_v13 = vadd.f32 %v6808_v11, %v3408_v30 }
 0x350   : > { %v6841_v29 = vmax.f32 %v3591_v54, %v3593_v47  ;;  %v3583_v15 = vmul.f32 %v3571_v23, %v3535_v24  ;;  %v5665_v37 = vpop.eup %5664  ;;  %v3572_v28 = vadd.f32 1.0, %v5663_v39  ;;  %5678 = verf.f32 %v3552_v8 }
 0x351   : > { %v5667_v58 = vpop.eup %5666  ;;  %v3501_v4 = vadd.f32 1.0, %v5665_v37  ;;  %v3512_v5 = vmul.f32 %v3500_v26, %v3464_v10  ;;  %v3458_v24 = vadd.f32 %v6808_v11, %v6836_v57  ;;  %5680 = verf.f32 %v3481_v21 }
 0x352   : > { %v3595_v27 = vmax.f32 %v3511_v63, %v3583_v15  ;;  %v5669_v48 = vpop.eup %5668  ;;  %v3573_v9 = vadd.f32 1.0, %v5667_v58  ;;  %v3584_v20 = vmul.f32 %v3572_v28, %v3536_v14  ;;  %v3467_v34 = vmul.f32 0.5, %v3455_v31 }
 0x353   : > { %v3513_v38 = vmul.f32 %v3501_v4, %v3465_v6  ;;  %v3502_v53 = vadd.f32 1.0, %v5669_v48  ;;  %v5671_v44 = vpop.eup %5670  ;;  %v3553_v54 = vmul.f32 0.70710677, %v3529_v43  ;;  %v3539_v7 = vmul.f32 0.5, %v3527_v41 }
 0x354   : > { %v3585_v16 = vmul.f32 %v3573_v9, %v3537_v49  ;;  %v3574_v12 = vadd.f32 1.0, %v5671_v44  ;;  %v5673_v33 = vpop.eup %5672  ;;  %v3482_v19 = vmul.f32 0.70710677, %v3458_v24  ;;  %v3554_v49 = vmul.f32 0.70710677, %v3530_v13  ;;  %v5494_v44 = vld [vmem:[%s6991_s5 + $0x158] sm:$0xff]  }
 0x355   : > { %v3514_v10 = vmul.f32 %v3502_v53, %v3466_v52  ;;  %v5675_v40 = vpop.eup %5674  ;;  %v3503_v61 = vadd.f32 1.0, %v5673_v33  ;;  %5682 = verf.f32 %v3553_v54  ;;  %v3592_v18 = vmax.f32 %v3508_v22, %v3580_v32  ;;  %v5491_v32 = vld [vmem:[%s6991_s5 + $0x108] sm:$0xff]   ;;  %v5500_v54 = vld [vmem:[%s6991_s5 + $0x170] sm:$0xff]  }
 0x356   : > { %v3597_v59 = vmax.f32 %v3513_v38, %v3585_v16  ;;  %v3586_v6 = vmul.f32 %v3574_v12, %v3538_v60  ;;  %v3575_v57 = vadd.f32 1.0, %v5675_v40  ;;  %5684 = verf.f32 %v3482_v19  ;;  %v5493_v38 = vld [vmem:[%s6991_s5 + $0x110] sm:$0xff]   ;;  %v5496_v12 = vld [vmem:[%s6991_s5 + $0x160] sm:$0xff]  }
 0x357   : > { %v3594_v14 = vmax.f32 %v3510_v55, %v3582_v3  ;;  %v3596_v51 = vmax.f32 %v3512_v5, %v3584_v20  ;;  %v3515_v50 = vmul.f32 %v3503_v61, %v3467_v34  ;;  %5686 = verf.f32 %v3554_v49  ;;  %v5677_v52 = vpop.eup %5676  ;;  %v5499_v34 = vld [vmem:[%s6991_s5 + $0x128] sm:$0xff]   ;;  %v5501_v33 = vld [vmem:[%s6991_s5 + $0x130] sm:$0xff]   ;;  %v5504_v49 = vld [vmem:[%s6993_s7] sm:$0xff]  }
 0x358   : > { %v3605_v62 = vmax.f32 %v3595_v27, %v3597_v59  ;;  %v3598_v11 = vmax.f32 %v3514_v10, %v3586_v6  ;;  %v3587_v30 = vmul.f32 %v3575_v57, %v3539_v7  ;;  %v3468_v41 = vmul.f32 0.5, %v3456_v46  ;;  %v5490_v46 = vld [vmem:[%s6991_s5 + $0x148] sm:$0xff]   ;;  %v5492_v27 = vld [vmem:[%s6991_s5 + $0x150] sm:$0xff]   ;;  %v5497_v59 = vld [vmem:[%s6991_s5 + $0x120] sm:$0xff]  }
 0x359   : > { %v3604_v31 = vmax.f32 %v3592_v18, %v3594_v14  ;;  %v3504_v17 = vadd.f32 1.0, %v5677_v52  ;;  %v3609_v36 = vpack.c.bf16 %v6841_v29, %v6841_v29  ;;  %v3540_v63 = vmul.f32 0.5, %v6844_v1  ;;  %v5498_v10 = vld [vmem:[%s6991_s5 + $0x168] sm:$0xff]   ;;  %v5502_v6 = vld [vmem:[%s6991_s5 + $0x178] sm:$0xff]   ;;  %v5506_v61 = vld [vmem:[%s6993_s7 + $0x10] sm:$0xff]  }
 0x35a   : > { %v3606_v0 = vmax.f32 %v3596_v51, %v3598_v11  ;;  %v3599_v42 = vmax.f32 %v3515_v50, %v3587_v30  ;;  %v5679_v35 = vpop.eup %5678  ;;  %v3611_v39 = vpack.c.bf16 %v3605_v62, %v3605_v62  ;;  %v3469_v37 = vmul.f32 0.5, %v6849_v45  ;;  %v5503_v7 = vld [vmem:[%s6991_s5 + $0x138] sm:$0xff]   ;;  %v5505_v62 = vld [vmem:[%s6993_s7 + $0x8] sm:$0xff]   ;;  %v5508_v57 = vld [vmem:[%s6993_s7 + $0x20] sm:$0xff]  }
 0x35b   : > { %v3610_v60 = vpack.c.bf16 %v3604_v31, %v3604_v31  ;;  %v5681_v23 = vpop.eup %5680  ;;  %v3516_v56 = vmul.f32 %v3504_v17, %v3468_v41  ;;  %v3576_v15 = vadd.f32 1.0, %v5679_v35  ;;  %v3541_v58 = vmul.f32 0.5, %v3529_v43  ;;  %v5507_v18 = vld [vmem:[%s6993_s7 + $0x18] sm:$0xff]   ;;  %v5509_v14 = vld [vmem:[%s6993_s7 + $0x28] sm:$0xff]   ;;  %v5510_v51 = vld [vmem:[%s6993_s7 + $0x30] sm:$0xff]  }
 0x35c   : > { %v3612_v47 = vpack.c.bf16 %v3606_v0, %v3606_v0  ;;  %v3505_v26 = vadd.f32 1.0, %v5681_v23  ;;  %v3470_v48 = vmul.f32 0.5, %v3458_v24  ;;  %v3542_v9 = vmul.f32 0.5, %v3530_v13  ;;  %v5495_v24 = vld [vmem:[%s6991_s5 + $0x118] sm:$0xff]  }
 0x35d   : > { %3944 = vmatprep.mubr.bf16.mxu1 %v3610_v60  ;;  %v3588_v29 = vmul.f32 %v3576_v15, %v3540_v63  ;;  %v5790_v40 = vmov 0.0   ;;  %v5511_v50 = vld [vmem:[%s6993_s7 + $0x38] sm:$0xff]  }
 0x35e   : > { %3945 = vmatmul.mubr.bf16.vlgmr.msra.gmra.mrb[44].mxu1 %v3609_v36  ;;  %3808 = vmatprep.mubr.bf16.mxu0 %v3612_v47  ;;  %v3517_v25 = vmul.f32 %v3505_v26, %v3469_v37 }
 0x35f   : > { %3809 = vmatmul.mubr.bf16.vlgmr.msra.gmra.mrb[44].mxu0 %v3611_v39  ;;  %v5683_v22 = vpop.eup %5682  ;;  %v3600_v28 = vmax.f32 %v3516_v56, %v3588_v29  ;;  %4869 = vmatprep.subr.bf16.mxu1 %v5790_v40  ;;  %v4766_v56 = vld [vmem:[%s6992_s6] ss:$0 sm:$0xff] }
 0x360   : > { %4839 = vmatpush3.bf16.msra.mxu0 %v5489_v2  ;;  %v5685_v1 = vpop.eup %5684  ;;  %v3577_v55 = vadd.f32 1.0, %v5683_v22  ;;  %4870 = vmatpush3.bf16.msra.mxu1 %v5504_v49 }
 0x361   : > { %4840 = vmatprep.subr.bf16.mxu0 %v5490_v46  ;;  %v5687_v4 = vpop.eup %5686  ;;  %v3506_v45 = vadd.f32 1.0, %v5685_v1  ;;  %4871 = vmatprep.subr.bf16.mxu1 %v5790_v40 }
 0x362   : > { %v3589_v3 = vmul.f32 %v3577_v55, %v3541_v58  ;;  %v3578_v8 = vadd.f32 1.0, %v5687_v4  ;;  %4885 = vmatprep.mubr.msk.bf16.mxu1 %vm5791_vm2, %v5790_v40 }
 0x363   : > { %v3518_v5 = vmul.f32 %v3506_v45, %v3470_v48 }
 0x364   : > { %4841 = vmatpush3.bf16.msra.mxu0 %v5491_v32  ;;  %v3601_v53 = vmax.f32 %v3517_v25, %v3589_v3  ;;  %v3590_v21 = vmul.f32 %v3578_v8, %v3542_v9  ;;  %4872 = vmatpush3.bf16.msra.mxu1 %v5505_v62  ;;  %v4767_v25 = vld [vmem:[%s6994_s8] ss:$0 sm:$0xff] }
 0x365   : > { %4842 = vmatprep.subr.bf16.mxu0 %v5492_v27  ;;  %4873 = vmatprep.subr.bf16.mxu1 %v5790_v40 }
 0x366   : > { %v3602_v16 = vmax.f32 %v3518_v5, %v3590_v21  ;;  %v3607_v43 = vmax.f32 %v3599_v42, %v3601_v53 }
 0x368   : > { %4843 = vmatpush3.bf16.msra.mxu0 %v5493_v38  ;;  %v3608_v20 = vmax.f32 %v3600_v28, %v3602_v16  ;;  %v3613_v19 = vpack.c.bf16 %v3607_v43, %v3607_v43  ;;  %4874 = vmatpush3.bf16.msra.mxu1 %v5506_v61 }
 0x369   : > { %4844 = vmatprep.subr.bf16.mxu0 %v5494_v44  ;;  %4875 = vmatprep.subr.bf16.mxu1 %v5790_v40 }
 0x36a   : > { %v3614_v13 = vpack.c.bf16 %v3608_v20, %v3608_v20 }
 0x36c   : > { %4845 = vmatpush3.bf16.msra.mxu0 %v5495_v24  ;;  %4113 = vmatprep.mubr.bf16.mxu0 %v3614_v13 }
 0x36d   : > { %4846 = vmatprep.subr.bf16.mxu0 %v5496_v12  ;;  %4876 = vmatpush3.bf16.msra.mxu1 %v5507_v18 }
 0x36e   : > { %4877 = vmatprep.subr.bf16.mxu1 %v5790_v40 }
 0x370   : > { %4847 = vmatpush3.bf16.msra.mxu0 %v5497_v59 }
 0x371   : > { %4848 = vmatprep.subr.bf16.mxu0 %v5498_v10  ;;  %4878 = vmatpush3.bf16.msra.mxu1 %v5508_v57 }
 0x372   : > { %4879 = vmatprep.subr.bf16.mxu1 %v5790_v40 }
 0x374   : > { %4849 = vmatpush3.bf16.msra.mxu0 %v5499_v34 }
 0x375   : > { %4850 = vmatprep.subr.bf16.mxu0 %v5500_v54  ;;  %4880 = vmatpush3.bf16.msra.mxu1 %v5509_v14 }
 0x376   : > { %4881 = vmatprep.subr.bf16.mxu1 %v5790_v40 }
 0x378   : > { %4851 = vmatpush3.bf16.msra.mxu0 %v5501_v33 }
 0x379   : > { %4852 = vmatprep.subr.bf16.mxu0 %v5502_v6  ;;  %4882 = vmatpush3.bf16.msra.mxu1 %v5510_v51 }
 0x37a   : > { %4883 = vmatprep.subr.bf16.mxu1 %v5790_v40 }
 0x37c   : > { %4853 = vmatpush3.bf16.msra.mxu0 %v5503_v7 }
 0x37d   : > { %4884 = vmatpush3.bf16.msra.mxu1 %v5511_v50 }
 0x37f   : > { %4114 = vmatmul.mubr.bf16.vlgmr.msra.gmra.mrb[48].mxu0 %v3613_v19 }
 0x431   : > { %v4832_v11 = vpop.f32.mrb[44].mxu1 }
 0x432   : > { %v4833_v30 = vpop.f32.mrb[45].mxu1  ;;  %v4810_v31 = vpop.f32.mrb[44].mxu0 }
 0x433   : > { %v4834_v52 = vadd.f32 %v4833_v30, %v4832_v11  ;;  %v4835_v0 = vpop.f32.mrb[46].mxu1  ;;  %v4811_v42 = vpop.f32.mrb[45].mxu0 }
 0x434   : > { %v4836_v41 = vpop.f32.mrb[47].mxu1  ;;  %v4812_v17 = vadd.f32 %v4811_v42, %v4810_v31  ;;  %v4813_v60 = vpop.f32.mrb[46].mxu0 }
 0x435   : > { %v4814_v35 = vpop.f32.mrb[47].mxu0 }
 0x436   : > { %v3947_v36 = vadd.f32 %v4834_v52, %v4812_v17 }
 0x452   : > { %v4854_v47 = vpop.f32.mrb[48].mxu0 }
 0x453   : > { %v4855_v2 = vpop.f32.mrb[49].mxu0 }
 0x454   : > { %v4856_v23 = vadd.f32 %v4855_v2, %v4854_v47  ;;  %v4857_v39 = vpop.f32.mrb[50].mxu0 }
 0x455   : > { %v4858_v63 = vpop.f32.mrb[51].mxu0 }
 0x456   : > { %v4121_v15 = vadd.f32 %v4856_v23, %v3947_v36 }
 0x458   : > { %v4129_v46 = vadd.f32 %v4766_v56, %v4121_v15 }
 0x45a   : > { %v4131_v26 = vmul.f32 0.70710677, %v4129_v46  ;;  %v4130_v37 = vmul.f32 0.5, %v4129_v46 }
 0x45c   : > { %5688 = verf.f32 %v4131_v26 }
 0x466   : > { %v5689_v29 = vpop.eup %5688 }
 0x467   : > { %v4133_v22 = vadd.f32 1.0, %v5689_v29 }
 0x469   : > { %v4134_v32 = vmul.f32 %v4133_v22, %v4130_v37 }
 0x46b   : > { %v4135_v1 = vpack.c.bf16 %v4134_v32, %v4134_v32 }
 0x46d   : > { %4886 = vmatmul.mubr.bf16.vlgmr.msra.gmra.mrb[48].mxu1 %v4135_v1 }
 0x540   : > { %v4241_v58 = vpop.f32.mrb[48].mxu1 }
 0x541   : > { %v4242_v55 = vadd.f32 %v4767_v25, %v4241_v58  ;;  %v4887_v27 = vpop.f32.mrb[49].mxu1 }
 0x542   : > { %v4244_v28 = vpop.f32.mrb[50].mxu1 }
 0x543   : > { %4247 = vst [vmem:[%s340_s26] sm:$0xff] %v4242_v55  ;;  %v4888_v4 = vpop.f32.mrb[51].mxu1 }
 0x544   : > { %5731 = shalt.err (!%p5728_p7)
}
 0x545   : > { %s5732_s21 = scalar_lea.hbm %s6944_s27, 128  ;;  %s5736_s26 = scalar_lea.hbm %s6995_s9, 256 }
 0x546   : > { %p5733_p8 = scmp.ne.s32.totalorder %s6944_s27, %s5732_s21  ;;  %p5737_p1 = scmp.lt.u32.totalorder %s6944_s27, %s6995_s9 }
 0x547   : > { %p5738_p0 = scmp.lt.u32.totalorder %s5736_s26, %s5732_s21  ;;  %p5740_p6 = scmp.lt.u32.totalorder %s5732_s21, %s6944_s27 }
 0x548   : > { %p5734_p11 = pnand %p5733_p8, %p7059_p9 }
 0x549   : > { %p5739_p5 = por %p5738_p0, %p5737_p1 }
 0x54a   : > { %p5735_p13 = pneg %p5734_p11 }
 0x54b   : > { %p5741_p10 = por %p5740_p6, %p5739_p5 }
 0x54d   : > { %p5742_p12 = pnand %p5741_p10, %p5735_p13 }
 0x54f   : > { %5745 = shalt.err (!%p5742_p12)
}
 0x550   : > { %5070 = dma.vmem_to_hbm [thread:$0]  (%p7059_p9), %s6946_s28, 128, %s6944_s27, %s4249_s16  }
 0x551 PF: > { %p5082_p2 = scmp.ge.s32.totalorder %s5784_s12, 2  ;;  %s4274_s13 = sand.u32 1, %s5772_s30  }
 0x552   : > { %p7060_p3 = scmp.ne.s32.totalorder %s7014_s20, 0  ;;  %s4275_s29 = scalar_lea.sflag [#allocation4], %s4274_s13 }
 0x554   : > { %p5077_p4 = pnand %p5082_p2, %p7060_p3 }
 0x556   : > { %5767 = dma.done.wait (!%p5077_p4), %s4275_s29, 128  }
 0x557   : > { %5769 = vsyncadd (!%p5077_p4), %s4275_s29, 4294967168  ;;  %p20_p7 = scmp.ge.s32.totalorder %s5868_s15, 4   ;;  %s7061_s30 = smov %s5776_s10 }
 0x558   : > { %s7062_s10 = smov %s5780_s11  ;;  %s7063_s11 = smov %s5879_s18 }
 0x559   : > { %s7064_s12 = smov %s5868_s15  ;;  %22 = sbr.rel (!%p20_p7) target bundleno = 4 (0x4), region = 102 }
 0x560   :  { %4280 = vsyncpa [#allocation3], 1 }
 0x561   :  { %4282 = vsyncpa [#allocation3 + $0x1], 1 }
 0x562   :  { %4283 = vsyncpa [#allocation4], 1 }
 0x563   :  { %4285 = vsyncpa [#allocation4 + $0x1], 1 }

</bundles_post_ra>
